<compile_context>
chip_gen: v5e
topology: v5e:2x2
jax: 0.10.0
libtpu: 0.0.40
codegen_flags: <defaults>
</compile_context>

<pallas_src>
import math
from functools import partial

import jax
import jax.numpy as jnp
from jax.experimental import pallas as pl
from jax.experimental.pallas import tpu as pltpu


# ---------------------------------------------------------------------------
# Kernel: mu = x @ Wmu' + bmu' ; h = relu(x @ W1' + b1') ; logvar = h @ W2' + b2'
# (all BN / gamma / beta already folded into the primed weights/biases;
#  x arrives as bf16, already K-padded to match w_cat)
# ---------------------------------------------------------------------------
def reghead_kernel(x_ref, wcat_ref, bcat_ref, w2_ref, b2_ref, mu_ref, logvar_ref):
    F = mu_ref.shape[-1]
    x = x_ref[...]                                            # (bn, Kp) bf16

    # One 2F-wide contraction over K for both heads (mu | logvar-layer1).
    y = jnp.dot(x, wcat_ref[...],
                preferred_element_type=jnp.float32) + bcat_ref[...]   # (bn, 2F) f32

    mu_ref[...] = y[:, :F]                                    # mu head done

    h = jnp.maximum(y[:, F:], 0.0).astype(jnp.bfloat16)       # ReLU, bf16 for MXU
    logvar_ref[...] = jnp.dot(h, w2_ref[...],
                              preferred_element_type=jnp.float32) + b2_ref[...]


# ---------------------------------------------------------------------------
# One-time weight preparation: fold eval-mode BN stats (+ gamma/beta) into the
# Linear weights/biases, transpose to (in, out), concat mu|logvar layer-1,
# zero-pad K to a multiple of 128, cast weights to bf16.
# Call this ONCE per weight set, outside the hot path.
# ---------------------------------------------------------------------------
def prepare_reghead_params(p, H, W, *, k_pad_multiple=128):
    HW = H * W
    F = p["w_mu"].shape[0]

    # ---- mu head: BN2d(affine=False) -> Linear(bias) -> BN1d(affine) ----
    s2d_mu = 1.0 / jnp.sqrt(p["bn2d_mu_var"] + 2e-5)                  # (C,)
    sk_mu = jnp.repeat(s2d_mu, HW)                                    # (K,)
    bk_mu = jnp.repeat(-p["bn2d_mu_mean"] * s2d_mu, HW)               # (K,)
    mubn_s = p["mubn_w"] / jnp.sqrt(p["mubn_var"] + 2e-5)             # (F,)
    mubn_sh = p["mubn_b"] - p["mubn_mean"] * mubn_s
    wmu = p["w_mu"].T * sk_mu[:, None] * mubn_s[None, :]              # (K, F)
    bmu = (bk_mu @ p["w_mu"].T + p["b_mu"]) * mubn_s + mubn_sh        # (F,)

    # ---- logvar head layer 1: BN2d(affine=False) -> Linear(no bias) -> BN1d(affine) ----
    s2d_lv = 1.0 / jnp.sqrt(p["bn2d_lv_var"] + 2e-5)
    sk_lv = jnp.repeat(s2d_lv, HW)
    bk_lv = jnp.repeat(-p["bn2d_lv_mean"] * s2d_lv, HW)
    bn1a_s = p["bn1a_w"] / jnp.sqrt(p["bn1a_var"] + 1e-3)
    bn1a_sh = p["bn1a_b"] - p["bn1a_mean"] * bn1a_s
    w1 = p["w1"].T * sk_lv[:, None] * bn1a_s[None, :]                 # (K, F)
    b1 = (bk_lv @ p["w1"].T) * bn1a_s + bn1a_sh                       # (F,)

    # ---- logvar head layer 2: Linear(no bias) -> BN1d(affine=False); fold gamma/beta ----
    bn1b_s = 1.0 / jnp.sqrt(p["bn1b_var"] + 1e-3)
    g = p["gamma"][0]
    bt = p["beta"][0]
    w2 = p["w2"].T * (g * bn1b_s)[None, :]                            # (F, F)
    b2 = g * (-p["bn1b_mean"] * bn1b_s) + bt                          # (F,)

    # Concat the two K-contractions into one 2F-wide RHS, then zero-pad K so
    # the lane dimension is a clean multiple of 128 (unmasked x loads).
    w_cat = jnp.concatenate([wmu, w1], axis=1)                        # (K, 2F) f32
    K = w_cat.shape[0]
    Kp = ((K + k_pad_multiple - 1) // k_pad_multiple) * k_pad_multiple
    if Kp != K:
        w_cat = jnp.pad(w_cat, ((0, Kp - K), (0, 0)))

    # NOTE: int8 (v5e/v6e) or fp8-e4m3 (v7x) weights with per-output-column
    # scales would halve w_cat DMA again, but require generation gating and
    # scale calibration; bf16 is the portable default here.
    return {
        "w_cat": w_cat.astype(jnp.bfloat16),                                    # (Kp, 2F)
        "b_cat": jnp.concatenate([bmu, b1], axis=0).reshape(1, 2 * F)
                   .astype(jnp.float32),                                        # (1, 2F)
        "w2": w2.astype(jnp.bfloat16),                                          # (F, F)
        "b2": b2.reshape(1, F).astype(jnp.float32),                             # (1, F)
    }


# ---------------------------------------------------------------------------
# Forward wrapper (per-call path: reshape/cast/pad of x + the pallas_call).
# ---------------------------------------------------------------------------
@partial(jax.jit, static_argnames=("block_n",))
def reg_head_pallas(x_nchw, prepped, block_n=256):
    N = x_nchw.shape[0]
    K = math.prod(x_nchw.shape[1:])
    Kp, twoF = prepped["w_cat"].shape
    F = twoF // 2

    # bf16 x (halves x HBM traffic + VMEM double-buffer; no in-kernel cast),
    # zero-padded on K to match the padded weights.
    x_flat = x_nchw.reshape(N, K).astype(jnp.bfloat16)
    if Kp != K:
        x_flat = jnp.pad(x_flat, ((0, 0), (0, Kp - K)))

    bn = min(block_n, N)                       # batch tile (N=8 -> single tile)
    grid = (pl.cdiv(N, bn),)

    # Megacore: only shard the batch axis across TensorCores when per-core x
    # traffic clearly exceeds the per-core-replicated weight fetch; otherwise
    # (weight-DMA-bound regime) splitting would double the dominant traffic.
    w_bytes = Kp * twoF * 2 + F * F * 2
    x_bytes_per_core = (N * Kp * 2) // 2
    batch_parallel = (grid[0] > 1) and (x_bytes_per_core > w_bytes)
    semantics = ("parallel",) if batch_parallel else ("arbitrary",)

    # Cost estimate kept in sync with bf16 x / bf16 weights / padded K.
    flops = 2 * N * Kp * twoF + 2 * N * F * F
    bytes_accessed = (N * Kp * 2                        # x bf16
                      + Kp * twoF * 2 + F * F * 2       # bf16 weights
                      + twoF * 4 + F * 4                # f32 biases
                      + 2 * N * F * 4)                  # f32 outputs

    # Explicit VMEM budget: double-buffered x/output tiles + (double-buffered)
    # resident weights, with generous margin; keeps larger bn safe under v5e's
    # 16 MiB scoped default and v7x's 64 MiB physical VMEM.
    # (pipeline_mode=pl.Buffered(1) on the constant-index weight specs is the
    #  next lever if F grows and weight double-buffering gets VMEM-tight.)
    vmem_need = (2 * bn * Kp * 2                                    # x tiles
                 + 2 * (Kp * twoF * 2 + F * F * 2 + twoF * 4 + F * 4)  # weights/biases
                 + 2 * 2 * bn * F * 4)                              # mu/logvar tiles
    vmem_limit = int(min(4 * vmem_need + (8 << 20), 48 << 20))

    mu, logvar = pl.pallas_call(
        reghead_kernel,
        out_shape=(jax.ShapeDtypeStruct((N, F), jnp.float32),
                   jax.ShapeDtypeStruct((N, F), jnp.float32)),
        grid=grid,
        in_specs=[
            pl.BlockSpec((bn, Kp), lambda i: (i, 0)),     # x tile streams over N
            pl.BlockSpec((Kp, twoF), lambda i: (0, 0)),   # fused weights, resident
            pl.BlockSpec((1, twoF), lambda i: (0, 0)),
            pl.BlockSpec((F, F), lambda i: (0, 0)),
            pl.BlockSpec((1, F), lambda i: (0, 0)),
        ],
        out_specs=(pl.BlockSpec((bn, F), lambda i: (i, 0)),
                   pl.BlockSpec((bn, F), lambda i: (i, 0))),
        compiler_params=pltpu.CompilerParams(
            dimension_semantics=semantics,
            vmem_limit_bytes=vmem_limit,
            # Let XLA fuse the x reshape/cast/pad producer into this call so
            # x_flat never materializes as a separate HBM round-trip.
            allow_input_fusion=[True, False, False, False, False],
        ),
        cost_estimate=pl.CostEstimate(flops=flops, transcendentals=0,
                                      bytes_accessed=bytes_accessed),
    )(x_flat, prepped["w_cat"], prepped["b_cat"], prepped["w2"], prepped["b2"])
    return mu, logvar


# ---------------------------------------------------------------------------
# Pure-JAX f32 reference matching the PyTorch eval-mode forward.
# ---------------------------------------------------------------------------
def reg_head_reference(x_nchw, p):
    N = x_nchw.shape[0]
    H, W = x_nchw.shape[2], x_nchw.shape[3]
    xf = x_nchw.reshape(N, -1)

    def bn2d(xflat, mean, var):
        mk = jnp.repeat(mean, H * W)
        vk = jnp.repeat(var, H * W)
        return (xflat - mk) / jnp.sqrt(vk + 2e-5)

    # mu head
    xn_mu = bn2d(xf, p["bn2d_mu_mean"], p["bn2d_mu_var"])
    mu = xn_mu @ p["w_mu"].T + p["b_mu"]
    mu = (mu - p["mubn_mean"]) / jnp.sqrt(p["mubn_var"] + 2e-5) * p["mubn_w"] + p["mubn_b"]

    # logvar head
    xn_lv = bn2d(xf, p["bn2d_lv_mean"], p["bn2d_lv_var"])
    h = xn_lv @ p["w1"].T
    h = (h - p["bn1a_mean"]) / jnp.sqrt(p["bn1a_var"] + 1e-3) * p["bn1a_w"] + p["bn1a_b"]
    h = jnp.maximum(h, 0.0)
    h = h @ p["w2"].T
    h = (h - p["bn1b_mean"]) / jnp.sqrt(p["bn1b_var"] + 1e-3)       # pre-gamma h
    logvar = p["gamma"] * h + p["beta"]
    return mu, logvar, h


if __name__ == "__main__":
    # Small shapes consistent with the module: (N, C, 7, 7) -> feat_dim.
    N, C, H, W = 8, 64, 7, 7
    FEAT = 128
    K = C * H * W

    key = jax.random.PRNGKey(0)
    ks = iter(jax.random.split(key, 24))
    nrm = lambda shape, scale=1.0: scale * jax.random.normal(next(ks), shape, jnp.float32)
    uni = lambda shape: jax.random.uniform(next(ks), shape, jnp.float32, 0.5, 1.5)

    x = nrm((N, C, H, W))

    params = {
        # mu head BatchNorm2d(C, eps=2e-5, affine=False) running stats
        "bn2d_mu_mean": nrm((C,), 0.1), "bn2d_mu_var": uni((C,)),
        # logvar head has its OWN BatchNorm2d instance (separate running stats)
        "bn2d_lv_mean": nrm((C,), 0.1), "bn2d_lv_var": uni((C,)),
        # mu head: Linear(K, FEAT, bias) + BatchNorm1d(FEAT, eps=2e-5, affine)
        "w_mu": nrm((FEAT, K), 0.02), "b_mu": nrm((FEAT,), 0.02),
        "mubn_w": uni((FEAT,)), "mubn_b": nrm((FEAT,), 0.1),
        "mubn_mean": nrm((FEAT,), 0.1), "mubn_var": uni((FEAT,)),
        # logvar head: Linear(K, FEAT, no bias) + BN1d(eps=1e-3, affine) + ReLU
        #              + Linear(FEAT, FEAT, no bias) + BN1d(eps=1e-3, affine=False)
        "w1": nrm((FEAT, K), 0.02),
        "bn1a_w": uni((FEAT,)), "bn1a_b": nrm((FEAT,), 0.1),
        "bn1a_mean": nrm((FEAT,), 0.1), "bn1a_var": uni((FEAT,)),
        "w2": nrm((FEAT, FEAT), 0.05),
        "bn1b_mean": nrm((FEAT,), 0.1), "bn1b_var": uni((FEAT,)),
        # gamma = 0.0001, beta = -7 (nn.Parameter init in __init__)
        "gamma": jnp.full((1,), 1e-4, jnp.float32),
        "beta": jnp.full((1,), -7.0, jnp.float32),
    }
    # TODO(synk): nn.Dropout(p=0.4) is identity in eval mode; training-time RNG
    # masking is not implemented in this kernel.

    # One-time weight prep (BN folding, transpose, concat, K-pad, bf16 cast).
    prepped = prepare_reghead_params(params, H, W)
    jax.block_until_ready(prepped)

    mu, logvar = reg_head_pallas(x, prepped)
    jax.block_until_ready((mu, logvar))

    mu_ref, logvar_ref, h_ref = reg_head_reference(x, params)
    assert mu.shape == (N, FEAT) and logvar.shape == (N, FEAT)

    # mu comparison (bf16-weight tolerance against f32 reference).
    assert jnp.allclose(mu, mu_ref, rtol=3e-2, atol=3e-2)

    # logvar: compare the pre-gamma quantity so gamma=1e-4 can't hide errors,
    # plus an absolute check on logvar itself.
    h_kernel = (logvar - params["beta"]) / params["gamma"]
    assert jnp.allclose(h_kernel, h_ref, rtol=3e-2, atol=3e-2)
    assert jnp.allclose(logvar, logvar_ref, rtol=0.0, atol=1e-4)

    print("KERNEL_OK")
</pallas_src>

<mosaic_0001>
module attributes {stable_mosaic.version = 11 : i64} {
  func.func @reghead_kernel(%arg0: i32, %arg1: memref<8x3200xbf16, #tpu.memory_space<vmem>>, %arg2: memref<3200x256xbf16, #tpu.memory_space<vmem>>, %arg3: memref<1x256xf32, #tpu.memory_space<vmem>>, %arg4: memref<128x128xbf16, #tpu.memory_space<vmem>>, %arg5: memref<1x128xf32, #tpu.memory_space<vmem>>, %arg6: memref<8x128xf32, #tpu.memory_space<vmem>>, %arg7: memref<8x128xf32, #tpu.memory_space<vmem>>) attributes {dimension_semantics = [#tpu.dimension_semantics<arbitrary>], iteration_bounds = array<i64: 1>, scalar_prefetch = 0 : i64, scratch_operands = 0 : i64, tpu.core_type = #tpu.core_type<tc>, window_params = [{transform_indices = @transform_0, window_bounds = array<i64: 8, 3200>}, {pipeline_mode = #tpu.pipeline_mode<synchronous>, transform_indices = @transform_1, window_bounds = array<i64: 3200, 256>}, {pipeline_mode = #tpu.pipeline_mode<synchronous>, transform_indices = @transform_2, window_bounds = array<i64: 1, 256>}, {pipeline_mode = #tpu.pipeline_mode<synchronous>, transform_indices = @transform_3, window_bounds = array<i64: 128, 128>}, {pipeline_mode = #tpu.pipeline_mode<synchronous>, transform_indices = @transform_4, window_bounds = array<i64: 1, 128>}, {transform_indices = @transform_5, window_bounds = array<i64: 8, 128>}, {transform_indices = @transform_6, window_bounds = array<i64: 8, 128>}]} {
    %c0 = arith.constant 0 : index
    %c0_0 = arith.constant 0 : index
    %0 = vector.load %arg1[%c0, %c0_0] : memref<8x3200xbf16, #tpu.memory_space<vmem>>, vector<8x3200xbf16>
    %c0_1 = arith.constant 0 : index
    %c0_2 = arith.constant 0 : index
    %1 = vector.load %arg2[%c0_1, %c0_2] : memref<3200x256xbf16, #tpu.memory_space<vmem>>, vector<3200x256xbf16>
    %cst = arith.constant dense<0.000000e+00> : vector<8x256xf32>
    %2 = tpu.matmul %0, %1, %cst {dimension_numbers = #tpu.dot_dimension_numbers<[1], [0], [0], [1], [0, 0, 1, 1], [], []>} : vector<8x3200xbf16>, vector<3200x256xbf16>, vector<8x256xf32> -> vector<8x256xf32>
    %c0_3 = arith.constant 0 : index
    %c0_4 = arith.constant 0 : index
    %3 = vector.load %arg3[%c0_3, %c0_4] : memref<1x256xf32, #tpu.memory_space<vmem>>, vector<1x256xf32>
    %4 = vector.broadcast %3 : vector<1x256xf32> to vector<8x256xf32>
    %5 = arith.addf %2, %4 : vector<8x256xf32>
    %6 = vector.extract_strided_slice %5 {offsets = [0, 0], sizes = [8, 128], strides = [1, 1]} : vector<8x256xf32> to vector<8x128xf32>
    %c0_5 = arith.constant 0 : index
    %c0_6 = arith.constant 0 : index
    %7 = vector.load %arg6[%c0_5, %c0_6] : memref<8x128xf32, #tpu.memory_space<vmem>>, vector<8x128xf32>
    tpu.vector_store %arg6[%c0_5, %c0_6], %6 {strides = array<i32>} : memref<8x128xf32, #tpu.memory_space<vmem>>, vector<8x128xf32>,
    %8 = vector.extract_strided_slice %5 {offsets = [0, 128], sizes = [8, 128], strides = [1, 1]} : vector<8x256xf32> to vector<8x128xf32>
    %cst_7 = arith.constant 0.000000e+00 : f32
    %9 = vector.broadcast %cst_7 : f32 to vector<8x128xf32>
    %10 = arith.maximumf %8, %9 : vector<8x128xf32>
    %11 = arith.truncf %10 : vector<8x128xf32> to vector<8x128xbf16>
    %c0_8 = arith.constant 0 : index
    %c0_9 = arith.constant 0 : index
    %12 = vector.load %arg4[%c0_8, %c0_9] : memref<128x128xbf16, #tpu.memory_space<vmem>>, vector<128x128xbf16>
    %cst_10 = arith.constant dense<0.000000e+00> : vector<8x128xf32>
    %13 = tpu.matmul %11, %12, %cst_10 {dimension_numbers = #tpu.dot_dimension_numbers<[1], [0], [0], [1], [0, 0, 1, 1], [], []>} : vector<8x128xbf16>, vector<128x128xbf16>, vector<8x128xf32> -> vector<8x128xf32>
    %c0_11 = arith.constant 0 : index
    %c0_12 = arith.constant 0 : index
    %14 = vector.load %arg5[%c0_11, %c0_12] : memref<1x128xf32, #tpu.memory_space<vmem>>, vector<1x128xf32>
    %15 = vector.broadcast %14 : vector<1x128xf32> to vector<8x128xf32>
    %16 = arith.addf %13, %15 : vector<8x128xf32>
    %c0_13 = arith.constant 0 : index
    %c0_14 = arith.constant 0 : index
    %17 = vector.load %arg7[%c0_13, %c0_14] : memref<8x128xf32, #tpu.memory_space<vmem>>, vector<8x128xf32>
    tpu.vector_store %arg7[%c0_13, %c0_14], %16 {strides = array<i32>} : memref<8x128xf32, #tpu.memory_space<vmem>>, vector<8x128xf32>,
    return
  }
  func.func @transform_0(%arg0: i32) -> (i32, i32) {
    %c0_i32 = arith.constant 0 : i32
    %c0_i32_0 = arith.constant 0 : i32
    return %arg0, %c0_i32 : i32, i32
  }
  func.func @transform_1(%arg0: i32) -> (i32, i32) {
    %c0_i32 = arith.constant 0 : i32
    %c0_i32_0 = arith.constant 0 : i32
    %c0_i32_1 = arith.constant 0 : i32
    return %c0_i32, %c0_i32_0 : i32, i32
  }
  func.func @transform_2(%arg0: i32) -> (i32, i32) {
    %c0_i32 = arith.constant 0 : i32
    %c0_i32_0 = arith.constant 0 : i32
    %c0_i32_1 = arith.constant 0 : i32
    return %c0_i32, %c0_i32_0 : i32, i32
  }
  func.func @transform_3(%arg0: i32) -> (i32, i32) {
    %c0_i32 = arith.constant 0 : i32
    %c0_i32_0 = arith.constant 0 : i32
    %c0_i32_1 = arith.constant 0 : i32
    return %c0_i32, %c0_i32_0 : i32, i32
  }
  func.func @transform_4(%arg0: i32) -> (i32, i32) {
    %c0_i32 = arith.constant 0 : i32
    %c0_i32_0 = arith.constant 0 : i32
    %c0_i32_1 = arith.constant 0 : i32
    return %c0_i32, %c0_i32_0 : i32, i32
  }
  func.func @transform_5(%arg0: i32) -> (i32, i32) {
    %c0_i32 = arith.constant 0 : i32
    %c0_i32_0 = arith.constant 0 : i32
    return %arg0, %c0_i32 : i32, i32
  }
  func.func @transform_6(%arg0: i32) -> (i32, i32) {
    %c0_i32 = arith.constant 0 : i32
    %c0_i32_0 = arith.constant 0 : i32
    return %arg0, %c0_i32 : i32, i32
  }
}

</mosaic_0001>

<bundles_post_ra>
// kernel: reg_head_pallas.2
= control target key start
LH: loop header
LB: loop body
LE: loop exit
PB: predicated region body
PF: predicated region fallthrough
CT: control target
= control target key end

     0   :  { %s8597_s0 = inlined_call_operand.vmem [shape: bf16[3200,256], index: 0, kind: input, shape index: {}]   ;;  %s8598_s1 = inlined_call_operand.vmem [shape: f32[1,256], index: 1, kind: input, shape index: {}]   ;;  %s8599_s2 = inlined_call_operand.vmem [shape: bf16[128,128], index: 2, kind: input, shape index: {}]   ;;  %s8600_s3 = inlined_call_operand.vmem [shape: f32[1,128], index: 3, kind: input, shape index: {}]   ;;  %s8601_s4 = inlined_call_operand.vmem [shape: bf16[8,3136], index: 4, kind: input, shape index: {}]   ;;  %s8602_s5 = inlined_call_operand.<no memory space> [shape: bf16[], index: 5, kind: input, shape index: {}]   ;;  %s8603_s6 = inlined_call_operand.hbm [shape: f32[8,128], index: 6, kind: output, shape index: {0}]   ;;  %s8604_s7 = inlined_call_operand.hbm [shape: f32[8,128], index: 7, kind: output, shape index: {1}]  }
   0x1   :  { %v13_v0 = vstv %s8602_s5 }
   0x2   :  { %v5936_v1 = vunpack.i.l.bf16 %v13_v0 }
   0x3   :  { %18 = vsyncpa [#allocation8], 0  ;;  %v3743_v2 = vld [vmem:[%s8597_s0 + $0x70] sm:$0xf]  ;;  %v5332_v3 = vld [vmem:[%s8597_s0 + $0x74] sm:$0xf0] }
   0x4   :  { %v3807_v4 = vld [vmem:[%s8597_s0 + $0xf0] sm:$0xf]  ;;  %v3744_v5 = vor.u32 %v5332_v3, %v3743_v2  ;;  %v5348_v6 = vld [vmem:[%s8597_s0 + $0xf4] sm:$0xf0]  ;;  %v3735_v13 = vld [vmem:[%s8597_s0 + $0x60] sm:$0xf] }
   0x5   :  { %v3871_v7 = vld [vmem:[%s8597_s0 + $0x170] sm:$0xf]  ;;  %v5364_v8 = vld [vmem:[%s8597_s0 + $0x174] sm:$0xf0]  ;;  %v3808_v9 = vor.u32 %v5348_v6, %v3807_v4  ;;  %v5330_v15 = vld [vmem:[%s8597_s0 + $0x64] sm:$0xf0] }
   0x6   :  { %v3872_v10 = vor.u32 %v5364_v8, %v3871_v7  ;;  %v3935_v11 = vld [vmem:[%s8597_s0 + $0x1f0] sm:$0xf]  ;;  %v5380_v12 = vld [vmem:[%s8597_s0 + $0x1f4] sm:$0xf0]  ;;  %2894 = vmatpush.bf16.msra.mxu0 %v3744_v5  ;;  %v3799_v16 = vld [vmem:[%s8597_s0 + $0xe0] sm:$0xf]  ;;  %v3736_v18 = vor.u32 %v5330_v15, %v3735_v13 }
   0x7   :  { %v3936_v14 = vor.u32 %v5380_v12, %v3935_v11  ;;  %v5346_v17 = vld [vmem:[%s8597_s0 + $0xe4] sm:$0xf0]  ;;  %2907 = vmatpush.bf16.msra.mxu1 %v3808_v9  ;;  %v3863_v20 = vld [vmem:[%s8597_s0 + $0x160] sm:$0xf]  ;;  %v3727_v25 = vld [vmem:[%s8597_s0 + $0x50] sm:$0xf] }
   0x8   :  { %2920 = vmatpush.bf16.msra.mxu2 %v3872_v10  ;;  %v3800_v19 = vor.u32 %v5346_v17, %v3799_v16  ;;  %v5362_v21 = vld [vmem:[%s8597_s0 + $0x164] sm:$0xf0]  ;;  %v3927_v22 = vld [vmem:[%s8597_s0 + $0x1e0] sm:$0xf]  ;;  %v5328_v26 = vld [vmem:[%s8597_s0 + $0x54] sm:$0xf0] }
   0x9   :  { %2933 = vmatpush.bf16.msra.mxu3 %v3936_v14  ;;  %v3864_v23 = vor.u32 %v5362_v21, %v3863_v20  ;;  %v5378_v24 = vld [vmem:[%s8597_s0 + $0x1e4] sm:$0xf0]  ;;  %v3791_v28 = vld [vmem:[%s8597_s0 + $0xd0] sm:$0xf]  ;;  %v5344_v29 = vld [vmem:[%s8597_s0 + $0xd4] sm:$0xf0]  ;;  %v3728_v31 = vor.u32 %v5328_v26, %v3727_v25 }
   0xa   :  { %v3928_v27 = vor.u32 %v5378_v24, %v3927_v22  ;;  %v3855_v30 = vld [vmem:[%s8597_s0 + $0x150] sm:$0xf]  ;;  %2895 = vmatpush.bf16.msra.mxu0 %v3736_v18  ;;  %v5360_v32 = vld [vmem:[%s8597_s0 + $0x154] sm:$0xf0]  ;;  %v3792_v35 = vor.u32 %v5344_v29, %v3791_v28  ;;  %v3719_v37 = vld [vmem:[%s8597_s0 + $0x40] sm:$0xf] }
   0xb   :  { %v3919_v33 = vld [vmem:[%s8597_s0 + $0x1d0] sm:$0xf]  ;;  %v5376_v34 = vld [vmem:[%s8597_s0 + $0x1d4] sm:$0xf0]  ;;  %2908 = vmatpush.bf16.msra.mxu1 %v3800_v19  ;;  %v3856_v36 = vor.u32 %v5360_v32, %v3855_v30  ;;  %v5326_v38 = vld [vmem:[%s8597_s0 + $0x44] sm:$0xf0] }
   0xc   :  { %2921 = vmatpush.bf16.msra.mxu2 %v3864_v23  ;;  %v3783_v39 = vld [vmem:[%s8597_s0 + $0xc0] sm:$0xf]  ;;  %v3920_v40 = vor.u32 %v5376_v34, %v3919_v33  ;;  %v5342_v41 = vld [vmem:[%s8597_s0 + $0xc4] sm:$0xf0]  ;;  %v3720_v46 = vor.u32 %v5326_v38, %v3719_v37  ;;  %v3711_v49 = vld [vmem:[%s8597_s0 + $0x30] sm:$0xf] }
   0xd   :  { %2934 = vmatpush.bf16.msra.mxu3 %v3928_v27  ;;  %v3847_v42 = vld [vmem:[%s8597_s0 + $0x140] sm:$0xf]  ;;  %v5358_v43 = vld [vmem:[%s8597_s0 + $0x144] sm:$0xf0]  ;;  %v3784_v47 = vor.u32 %v5342_v41, %v3783_v39  ;;  %v5324_v50 = vld [vmem:[%s8597_s0 + $0x34] sm:$0xf0] }
   0xe   :  { %v3911_v44 = vld [vmem:[%s8597_s0 + $0x1c0] sm:$0xf]  ;;  %v5374_v45 = vld [vmem:[%s8597_s0 + $0x1c4] sm:$0xf0]  ;;  %2896 = vmatpush.bf16.msra.mxu0 %v3728_v31  ;;  %v3848_v48 = vor.u32 %v5358_v43, %v3847_v42  ;;  %v3775_v51 = vld [vmem:[%s8597_s0 + $0xb0] sm:$0xf]  ;;  %v3712_v58 = vor.u32 %v5324_v50, %v3711_v49 }
   0xf   :  { %2909 = vmatpush.bf16.msra.mxu1 %v3792_v35  ;;  %v3912_v52 = vor.u32 %v5374_v45, %v3911_v44  ;;  %v5340_v53 = vld [vmem:[%s8597_s0 + $0xb4] sm:$0xf0]  ;;  %v3839_v54 = vld [vmem:[%s8597_s0 + $0x130] sm:$0xf]  ;;  %v3703_v61 = vld [vmem:[%s8597_s0 + $0x20] sm:$0xf] }
  0x10   :  { %2922 = vmatpush.bf16.msra.mxu2 %v3856_v36  ;;  %v5356_v55 = vld [vmem:[%s8597_s0 + $0x134] sm:$0xf0]  ;;  %v3903_v56 = vld [vmem:[%s8597_s0 + $0x1b0] sm:$0xf]  ;;  %v3776_v59 = vor.u32 %v5340_v53, %v3775_v51  ;;  %v5322_v62 = vld [vmem:[%s8597_s0 + $0x24] sm:$0xf0] }
  0x11   :  { %2935 = vmatpush.bf16.msra.mxu3 %v3920_v40  ;;  %v5372_v57 = vld [vmem:[%s8597_s0 + $0x1b4] sm:$0xf0]  ;;  %v3840_v60 = vor.u32 %v5356_v55, %v3839_v54  ;;  %v3767_v63 = vld [vmem:[%s8597_s0 + $0xa0] sm:$0xf]  ;;  %v5338_v2 = vld [vmem:[%s8597_s0 + $0xa4] sm:$0xf0]  ;;  %v3704_v7 = vor.u32 %v5322_v62, %v3703_v61 }
  0x12   :  { %2897 = vmatpush.bf16.msra.mxu0 %v3720_v46  ;;  %v3904_v0 = vor.u32 %v5372_v57, %v3903_v56  ;;  %v3831_v3 = vld [vmem:[%s8597_s0 + $0x120] sm:$0xf]  ;;  %v5354_v4 = vld [vmem:[%s8597_s0 + $0x124] sm:$0xf0]  ;;  %v3768_v8 = vor.u32 %v5338_v2, %v3767_v63  ;;  %v3695_v10 = vld [vmem:[%s8597_s0 + $0x10] sm:$0xf] }
  0x13   :  { %2910 = vmatpush.bf16.msra.mxu1 %v3784_v47  ;;  %v3895_v5 = vld [vmem:[%s8597_s0 + $0x1a0] sm:$0xf]  ;;  %v5370_v6 = vld [vmem:[%s8597_s0 + $0x1a4] sm:$0xf0]  ;;  %v3832_v9 = vor.u32 %v5354_v4, %v3831_v3  ;;  %v5320_v11 = vld [vmem:[%s8597_s0 + $0x14] sm:$0xf0] }
  0x14   :  { %2923 = vmatpush.bf16.msra.mxu2 %v3848_v48  ;;  %v3759_v12 = vld [vmem:[%s8597_s0 + $0x90] sm:$0xf]  ;;  %v3896_v13 = vor.u32 %v5370_v6, %v3895_v5  ;;  %v5336_v14 = vld [vmem:[%s8597_s0 + $0x94] sm:$0xf0]  ;;  %v3696_v19 = vor.u32 %v5320_v11, %v3695_v10  ;;  %v3687_v20 = vld [vmem:[%s8597_s0] sm:$0xf] }
  0x15   :  { %2936 = vmatpush.bf16.msra.mxu3 %v3912_v52  ;;  %v3823_v15 = vld [vmem:[%s8597_s0 + $0x110] sm:$0xf]  ;;  %v5352_v16 = vld [vmem:[%s8597_s0 + $0x114] sm:$0xf0]  ;;  %v5318_v21 = vld [vmem:[%s8597_s0 + $0x4] sm:$0xf0]  ;;  %v3760_v22 = vor.u32 %v5336_v14, %v3759_v12 }
  0x16   :  { %2898 = vmatpush.bf16.msra.mxu0 %v3712_v58  ;;  %v3887_v17 = vld [vmem:[%s8597_s0 + $0x190] sm:$0xf]  ;;  %v5368_v18 = vld [vmem:[%s8597_s0 + $0x194] sm:$0xf0]  ;;  %v3824_v23 = vor.u32 %v5352_v16, %v3823_v15  ;;  %v3751_v24 = vld [vmem:[%s8597_s0 + $0x80] sm:$0xf]  ;;  %v3688_v34 = vor.u32 %v5318_v21, %v3687_v20 }
  0x17   :  { %2911 = vmatpush.bf16.msra.mxu1 %v3776_v59  ;;  %v5334_v25 = vld [vmem:[%s8597_s0 + $0x84] sm:$0xf0]  ;;  %v3815_v26 = vld [vmem:[%s8597_s0 + $0x100] sm:$0xf]  ;;  %v3888_v27 = vor.u32 %v5368_v18, %v3887_v17  ;;  %v3999_v29 = vld [vmem:[%s8597_s0 + $0x270] sm:$0xf] }
  0x18   :  { %2924 = vmatpush.bf16.msra.mxu2 %v3840_v60  ;;  %v5350_v28 = vld [vmem:[%s8597_s0 + $0x104] sm:$0xf0]  ;;  %v5396_v30 = vld [vmem:[%s8597_s0 + $0x274] sm:$0xf0]  ;;  %v4063_v31 = vld [vmem:[%s8597_s0 + $0x2f0] sm:$0xf]  ;;  %v3752_v38 = vor.u32 %v5334_v25, %v3751_v24 }
  0x19   :  { %2937 = vmatpush.bf16.msra.mxu3 %v3904_v0  ;;  %v5412_v32 = vld [vmem:[%s8597_s0 + $0x2f4] sm:$0xf0]  ;;  %v4127_v33 = vld [vmem:[%s8597_s0 + $0x370] sm:$0xf]  ;;  %v3879_v36 = vld [vmem:[%s8597_s0 + $0x180] sm:$0xf]  ;;  %v3816_v39 = vor.u32 %v5350_v28, %v3815_v26  ;;  %v4000_v42 = vor.u32 %v5396_v30, %v3999_v29 }
  0x1a   :  { %2899 = vmatpush.bf16.msra.mxu0 %v3704_v7  ;;  %v5428_v35 = vld [vmem:[%s8597_s0 + $0x374] sm:$0xf0]  ;;  %v5366_v37 = vld [vmem:[%s8597_s0 + $0x184] sm:$0xf0]  ;;  %v4191_v40 = vld [vmem:[%s8597_s0 + $0x3f0] sm:$0xf]  ;;  %v4064_v43 = vor.u32 %v5412_v32, %v4063_v31 }
  0x1b   :  { %2912 = vmatpush.bf16.msra.mxu1 %v3768_v8  ;;  %v5444_v41 = vld [vmem:[%s8597_s0 + $0x3f4] sm:$0xf0]  ;;  %v3991_v44 = vld [vmem:[%s8597_s0 + $0x260] sm:$0xf]  ;;  %v4128_v45 = vor.u32 %v5428_v35, %v4127_v33  ;;  %v3880_v46 = vor.u32 %v5366_v37, %v3879_v36  ;;  %v5394_v47 = vld [vmem:[%s8597_s0 + $0x264] sm:$0xf0] }
  0x1c   :  { %2925 = vmatpush.bf16.msra.mxu2 %v3832_v9  ;;  %v4055_v48 = vld [vmem:[%s8597_s0 + $0x2e0] sm:$0xf]  ;;  %v5410_v49 = vld [vmem:[%s8597_s0 + $0x2e4] sm:$0xf0]  ;;  %v4192_v50 = vor.u32 %v5444_v41, %v4191_v40  ;;  %v3992_v55 = vor.u32 %v5394_v47, %v3991_v44  ;;  %v3983_v57 = vld [vmem:[%s8597_s0 + $0x250] sm:$0xf] }
  0x1d   :  { %2938 = vmatpush.bf16.msra.mxu3 %v3896_v13  ;;  %v4119_v51 = vld [vmem:[%s8597_s0 + $0x360] sm:$0xf]  ;;  %v5426_v52 = vld [vmem:[%s8597_s0 + $0x364] sm:$0xf0]  ;;  %v4056_v56 = vor.u32 %v5410_v49, %v4055_v48  ;;  %v5392_v58 = vld [vmem:[%s8597_s0 + $0x254] sm:$0xf0] }
  0x1e   :  { %2900 = vmatpush.bf16.msra.mxu0 %v3696_v19  ;;  %v4183_v53 = vld [vmem:[%s8597_s0 + $0x3e0] sm:$0xf]  ;;  %v5442_v54 = vld [vmem:[%s8597_s0 + $0x3e4] sm:$0xf0]  ;;  %v4120_v59 = vor.u32 %v5426_v52, %v4119_v51  ;;  %v4047_v60 = vld [vmem:[%s8597_s0 + $0x2d0] sm:$0xf]  ;;  %v3984_v8 = vor.u32 %v5392_v58, %v3983_v57 }
  0x1f   :  { %2913 = vmatpush.bf16.msra.mxu1 %v3760_v22  ;;  %v5408_v61 = vld [vmem:[%s8597_s0 + $0x2d4] sm:$0xf0]  ;;  %v5824_v62 = vld [vmem:[%s8601_s4 + $0x8] sm:$0xff]  ;;  %v4184_v63 = vor.u32 %v5442_v54, %v4183_v53  ;;  %v4111_v0 = vld [vmem:[%s8597_s0 + $0x350] sm:$0xf] }
  0x20   :  { %2926 = vmatpush.bf16.msra.mxu2 %v3824_v23  ;;  %v5424_v2 = vld [vmem:[%s8597_s0 + $0x354] sm:$0xf0]  ;;  %v4175_v3 = vld [vmem:[%s8597_s0 + $0x3d0] sm:$0xf]  ;;  %v821_v5 = vunpack.c.l.b16 %v5824_v62  ;;  %v30_v6 = vld [vmem:[%s8601_s4] sm:$0xff]   ;;  %v822_v7 = vunpack.c.h.b16 %v5824_v62  ;;  %v4048_v9 = vor.u32 %v5408_v61, %v4047_v60 }
  0x21   :  { %2939 = vmatpush.bf16.msra.mxu3 %v3888_v27  ;;  %v5440_v4 = vld [vmem:[%s8597_s0 + $0x3d4] sm:$0xf0]  ;;  %v3975_v10 = vld [vmem:[%s8597_s0 + $0x240] sm:$0xf]  ;;  %41 = vst [vmem:[#allocation11] sm:$0xff] %v30_v6   ;;  %v4112_v11 = vor.u32 %v5424_v2, %v4111_v0 }
  0x22   :  { %2901 = vmatpush.bf16.msra.mxu0 %v3688_v34  ;;  %v5390_v12 = vld [vmem:[%s8597_s0 + $0x244] sm:$0xf0]  ;;  %v4039_v13 = vld [vmem:[%s8597_s0 + $0x2c0] sm:$0xf]  ;;  %v6220_v15 = vpack.c.b16 %v821_v5, %v821_v5  ;;  %v6222_v16 = vpack.c.b16 %v822_v7, %v822_v7  ;;  %v4176_v17 = vor.u32 %v5440_v4, %v4175_v3  ;;  %v3967_v24 = vld [vmem:[%s8597_s0 + $0x230] sm:$0xf] }
  0x23   :  { %2914 = vmatpush.bf16.msra.mxu1 %v3752_v38  ;;  %v5406_v14 = vld [vmem:[%s8597_s0 + $0x2c4] sm:$0xf0]  ;;  %v4103_v18 = vld [vmem:[%s8597_s0 + $0x340] sm:$0xf]  ;;  %v3976_v22 = vor.u32 %v5390_v12, %v3975_v10  ;;  %v5388_v25 = vld [vmem:[%s8597_s0 + $0x234] sm:$0xf0] }
  0x24   :  { %2927 = vmatpush.bf16.msra.mxu2 %v3816_v39  ;;  %v5422_v19 = vld [vmem:[%s8597_s0 + $0x344] sm:$0xf0]  ;;  %v4167_v20 = vld [vmem:[%s8597_s0 + $0x3c0] sm:$0xf]  ;;  %v4040_v23 = vor.u32 %v5406_v14, %v4039_v13  ;;  %v4031_v27 = vld [vmem:[%s8597_s0 + $0x2b0] sm:$0xf]  ;;  %v3968_v36 = vor.u32 %v5388_v25, %v3967_v24 }
  0x25   :  { %2940 = vmatpush.bf16.msra.mxu3 %v3880_v46  ;;  %v5438_v21 = vld [vmem:[%s8597_s0 + $0x3c4] sm:$0xf0]  ;;  %v4104_v26 = vor.u32 %v5422_v19, %v4103_v18  ;;  %v5404_v28 = vld [vmem:[%s8597_s0 + $0x2b4] sm:$0xf0]  ;;  %v4095_v31 = vld [vmem:[%s8597_s0 + $0x330] sm:$0xf] }
  0x26   :  { %2946 = vmatpush.bf16.msrb.mxu0 %v4000_v42  ;;  %v6253_v29 = vld [vmem:[%s8601_s4 + $0x18] sm:$0xff]  ;;  %v4168_v30 = vor.u32 %v5438_v21, %v4167_v20  ;;  %v4159_v33 = vld [vmem:[%s8597_s0 + $0x3b0] sm:$0xf]  ;;  %v4032_v37 = vor.u32 %v5404_v28, %v4031_v27  ;;  %v3959_v38 = vld [vmem:[%s8597_s0 + $0x220] sm:$0xf] }
  0x27   :  { %2959 = vmatpush.bf16.msrb.mxu1 %v4064_v43  ;;  %2928 = vmatmul.bf16.vlgmr.msra.gmra.mxu2 %v6220_v15  ;;  %v5420_v32 = vld [vmem:[%s8597_s0 + $0x334] sm:$0xf0]  ;;  %v5386_v42 = vld [vmem:[%s8597_s0 + $0x224] sm:$0xf0]  ;;  %v4023_v43 = vld [vmem:[%s8597_s0 + $0x2a0] sm:$0xf]  ;;  %v825_v24 = vunpack.c.l.b16 %v6253_v29 }
  0x28   :  { %2972 = vmatpush.bf16.msrb.mxu2 %v4128_v45  ;;  %2941 = vmatmul.bf16.vlgmr.msra.gmra.mxu3 %v6222_v16  ;;  %v5436_v34 = vld [vmem:[%s8597_s0 + $0x3b4] sm:$0xf0]  ;;  %v387_v35 = vld [vmem:[#allocation11] sm:$0xff]  ;;  %v4096_v41 = vor.u32 %v5420_v32, %v4095_v31  ;;  %v5402_v44 = vld [vmem:[%s8597_s0 + $0x2a4] sm:$0xf0]  ;;  %v3960_v52 = vor.u32 %v5386_v42, %v3959_v38 }
  0x29   :  { %2985 = vmatpush.bf16.msrb.mxu3 %v4192_v50  ;;  %v819_v39 = vunpack.c.l.b16 %v387_v35  ;;  %v820_v40 = vunpack.c.h.b16 %v387_v35  ;;  %v4160_v45 = vor.u32 %v5436_v34, %v4159_v33  ;;  %v4087_v46 = vld [vmem:[%s8597_s0 + $0x320] sm:$0xf]  ;;  %v5418_v47 = vld [vmem:[%s8597_s0 + $0x324] sm:$0xf0]  ;;  %v4024_v53 = vor.u32 %v5402_v44, %v4023_v43  ;;  %v3951_v54 = vld [vmem:[%s8597_s0 + $0x210] sm:$0xf] }
  0x2a   :  { %2947 = vmatpush.bf16.msrb.mxu0 %v3992_v55  ;;  %v4151_v50 = vld [vmem:[%s8597_s0 + $0x3a0] sm:$0xf]  ;;  %v5434_v51 = vld [vmem:[%s8597_s0 + $0x3a4] sm:$0xf0]  ;;  %v6301_v55 = vld [vmem:[%s8601_s4 + $0x10] sm:$0xff]  ;;  %v6395_v42 = vpack.c.b16 %v825_v24, %v825_v24 }
  0x2b   :  { %2960 = vmatpush.bf16.msrb.mxu1 %v4056_v56  ;;  %v6285_v48 = vpack.c.b16 %v819_v39, %v819_v39  ;;  %v6287_v49 = vpack.c.b16 %v820_v40, %v820_v40  ;;  %v4088_v56 = vor.u32 %v5418_v47, %v4087_v46  ;;  %v5384_v57 = vld [vmem:[%s8597_s0 + $0x214] sm:$0xf0]  ;;  %v4015_v58 = vld [vmem:[%s8597_s0 + $0x290] sm:$0xf]  ;;  %v4152_v60 = vor.u32 %v5434_v51, %v4151_v50  ;;  %v3943_v4 = vld [vmem:[%s8597_s0 + $0x200] sm:$0xf] }
  0x2c   :  { %2973 = vmatpush.bf16.msrb.mxu2 %v4120_v59  ;;  %v5400_v59 = vld [vmem:[%s8597_s0 + $0x294] sm:$0xf0]  ;;  %v4079_v61 = vld [vmem:[%s8597_s0 + $0x310] sm:$0xf]  ;;  %v3952_v2 = vor.u32 %v5384_v57, %v3951_v54  ;;  %v5382_v5 = vld [vmem:[%s8597_s0 + $0x204] sm:$0xf0]  ;;  %v823_v39 = vunpack.c.l.b16 %v6301_v55  ;;  %v826_v40 = vunpack.c.h.b16 %v6253_v29  ;;  %v824_v43 = vunpack.c.h.b16 %v6301_v55 }
  0x2d   :  { %2986 = vmatpush.bf16.msrb.mxu3 %v4184_v63  ;;  %2902 = vmatmul.bf16.vlgmr.msra.gmra.mxu0 %v6285_v48  ;;  %v5416_v62 = vld [vmem:[%s8597_s0 + $0x314] sm:$0xf0]  ;;  %v4143_v63 = vld [vmem:[%s8597_s0 + $0x390] sm:$0xf]  ;;  %v4016_v3 = vor.u32 %v5400_v59, %v4015_v58  ;;  %v4007_v6 = vld [vmem:[%s8597_s0 + $0x280] sm:$0xf]  ;;  %v3944_v20 = vor.u32 %v5382_v5, %v3943_v4 }
  0x2e   :  { %2948 = vmatpush.bf16.msrb.mxu0 %v3984_v8  ;;  %2915 = vmatmul.bf16.vlgmr.msra.gmra.mxu1 %v6287_v49  ;;  %v5432_v0 = vld [vmem:[%s8597_s0 + $0x394] sm:$0xf0]  ;;  %v4080_v7 = vor.u32 %v5416_v62, %v4079_v61  ;;  %v5398_v8 = vld [vmem:[%s8597_s0 + $0x284] sm:$0xf0]  ;;  %v4255_v12 = vld [vmem:[%s8597_s0 + $0x470] sm:$0xf]  ;;  %v6415_v54 = vpack.c.b16 %v826_v40, %v826_v40  ;;  %v6427_v59 = vpack.c.b16 %v824_v43, %v824_v43 }
  0x2f   :  { %2961 = vmatpush.bf16.msrb.mxu1 %v4048_v9  ;;  %v4071_v9 = vld [vmem:[%s8597_s0 + $0x300] sm:$0xf]  ;;  %v5414_v10 = vld [vmem:[%s8597_s0 + $0x304] sm:$0xf0]  ;;  %v5460_v13 = vld [vmem:[%s8597_s0 + $0x474] sm:$0xf0]  ;;  %v4008_v21 = vor.u32 %v5398_v8, %v4007_v6 }
  0x30   :  { %2974 = vmatpush.bf16.msrb.mxu2 %v4112_v11  ;;  %v4144_v11 = vor.u32 %v5432_v0, %v4143_v63  ;;  %v4319_v14 = vld [vmem:[%s8597_s0 + $0x4f0] sm:$0xf]  ;;  %v5492_v19 = vld [vmem:[%s8597_s0 + $0x574] sm:$0xf0]  ;;  %v4072_v25 = vor.u32 %v5414_v10, %v4071_v9  ;;  %v4247_v32 = vld [vmem:[%s8597_s0 + $0x460] sm:$0xf] }
  0x31   :  { %2987 = vmatpush.bf16.msrb.mxu3 %v4176_v17  ;;  %v5476_v17 = vld [vmem:[%s8597_s0 + $0x4f4] sm:$0xf0]  ;;  %v4383_v18 = vld [vmem:[%s8597_s0 + $0x570] sm:$0xf]  ;;  %v5458_v33 = vld [vmem:[%s8597_s0 + $0x464] sm:$0xf0] }
  0x32   :  { %2949 = vmatpush.bf16.msrb.mxu0 %v3976_v22  ;;  %v4135_v22 = vld [vmem:[%s8597_s0 + $0x380] sm:$0xf]  ;;  %v4447_v27 = vld [vmem:[%s8597_s0 + $0x5f0] sm:$0xf]  ;;  %v5508_v28 = vld [vmem:[%s8597_s0 + $0x5f4] sm:$0xf0]  ;;  %v4384_v31 = vor.u32 %v5492_v19, %v4383_v18  ;;  %v4248_v44 = vor.u32 %v5458_v33, %v4247_v32 }
  0x33   :  { %2962 = vmatpush.bf16.msrb.mxu1 %v4040_v23  ;;  %v5430_v23 = vld [vmem:[%s8597_s0 + $0x384] sm:$0xf0]  ;;  %v4311_v34 = vld [vmem:[%s8597_s0 + $0x4e0] sm:$0xf]  ;;  %v4239_v50 = vld [vmem:[%s8597_s0 + $0x450] sm:$0xf] }
  0x34   :  { %2975 = vmatpush.bf16.msrb.mxu2 %v4104_v26  ;;  %v4256_v26 = vor.u32 %v5460_v13, %v4255_v12  ;;  %v4136_v35 = vor.u32 %v5430_v23, %v4135_v22  ;;  %v5490_v38 = vld [vmem:[%s8597_s0 + $0x564] sm:$0xf0]  ;;  %v5456_v51 = vld [vmem:[%s8597_s0 + $0x454] sm:$0xf0]  ;;  %v4431_v61 = vld [vmem:[%s8597_s0 + $0x5d0] sm:$0xf] }
  0x35   :  { %2988 = vmatpush.bf16.msrb.mxu3 %v4168_v30  ;;  %v4320_v30 = vor.u32 %v5476_v17, %v4319_v14  ;;  %v5506_v46 = vld [vmem:[%s8597_s0 + $0x5e4] sm:$0xf0]  ;;  %v5472_v55 = vld [vmem:[%s8597_s0 + $0x4d4] sm:$0xf0]  ;;  %v4231_v63 = vld [vmem:[%s8597_s0 + $0x440] sm:$0xf] }
  0x36   :  { %2950 = vmatpush.bf16.msrb.mxu0 %v3968_v36  ;;  %v5474_v36 = vld [vmem:[%s8597_s0 + $0x4e4] sm:$0xf0]  ;;  %v5488_v57 = vld [vmem:[%s8597_s0 + $0x554] sm:$0xf0]  ;;  %v4295_v4 = vld [vmem:[%s8597_s0 + $0x4c0] sm:$0xf] }
  0x37   :  { %2963 = vmatpush.bf16.msrb.mxu1 %v4032_v37  ;;  %v4375_v37 = vld [vmem:[%s8597_s0 + $0x560] sm:$0xf]  ;;  %v4312_v29 = vor.u32 %v5474_v36, %v4311_v34  ;;  %v5504_v62 = vld [vmem:[%s8597_s0 + $0x5d4] sm:$0xf0]  ;;  %v5470_v5 = vld [vmem:[%s8597_s0 + $0x4c4] sm:$0xf0] }
  0x38   :  { %2976 = vmatpush.bf16.msrb.mxu2 %v4096_v41  ;;  %v4448_v41 = vor.u32 %v5508_v28, %v4447_v27  ;;  %v4376_v47 = vor.u32 %v5490_v38, %v4375_v37  ;;  %v4359_v6 = vld [vmem:[%s8597_s0 + $0x540] sm:$0xf]  ;;  %v4432_v9 = vor.u32 %v5504_v62, %v4431_v61  ;;  %v5502_v13 = vld [vmem:[%s8597_s0 + $0x5c4] sm:$0xf0]  ;;  %v4223_v14 = vld [vmem:[%s8597_s0 + $0x430] sm:$0xf]  ;;  %v4296_v17 = vor.u32 %v5470_v5, %v4295_v4 }
  0x39   :  { %2989 = vmatpush.bf16.msrb.mxu3 %v4160_v45  ;;  %v4439_v45 = vld [vmem:[%s8597_s0 + $0x5e0] sm:$0xf]  ;;  %v5452_v19 = vld [vmem:[%s8597_s0 + $0x434] sm:$0xf0]  ;;  %v4351_v22 = vld [vmem:[%s8597_s0 + $0x530] sm:$0xf] }
  0x3a   :  { %2951 = vmatpush.bf16.msrb.mxu0 %v3960_v52  ;;  %v4303_v52 = vld [vmem:[%s8597_s0 + $0x4d0] sm:$0xf]  ;;  %v4440_v58 = vor.u32 %v5506_v46, %v4439_v45  ;;  %v6458_v8 = vld [vmem:[%s8601_s4 + $0x20] sm:$0xff]  ;;  %v5484_v23 = vld [vmem:[%s8597_s0 + $0x534] sm:$0xf0] }
  0x3b   :  { %2964 = vmatpush.bf16.msrb.mxu1 %v4024_v53  ;;  %v6413_v53 = vpack.c.b16 %v823_v39, %v823_v39  ;;  %v4304_v0 = vor.u32 %v5472_v55, %v4303_v52  ;;  %v4423_v10 = vld [vmem:[%s8597_s0 + $0x5c0] sm:$0xf]  ;;  %v5500_v27 = vld [vmem:[%s8597_s0 + $0x5b4] sm:$0xf0]  ;;  %v5450_v32 = vld [vmem:[%s8597_s0 + $0x424] sm:$0xf0] }
  0x3c   :  { %2977 = vmatpush.bf16.msrb.mxu2 %v4088_v56  ;;  %v4367_v56 = vld [vmem:[%s8597_s0 + $0x550] sm:$0xf]  ;;  %v4424_v24 = vor.u32 %v5502_v13, %v4423_v10  ;;  %v4279_v33 = vld [vmem:[%s8597_s0 + $0x4a0] sm:$0xf]  ;;  %v5466_v34 = vld [vmem:[%s8597_s0 + $0x4a4] sm:$0xf0] }
  0x3d   :  { %2990 = vmatpush.bf16.msrb.mxu3 %v4152_v60  ;;  %v4240_v60 = vor.u32 %v5456_v51, %v4239_v50  ;;  %v5482_v36 = vld [vmem:[%s8597_s0 + $0x524] sm:$0xf0]  ;;  %v4407_v39 = vld [vmem:[%s8597_s0 + $0x5a0] sm:$0xf]  ;;  %v5448_v45 = vld [vmem:[%s8597_s0 + $0x414] sm:$0xf0] }
  0x3e   :  { %2952 = vmatpush.bf16.msrb.mxu0 %v3952_v2  ;;  %v4368_v2 = vor.u32 %v5488_v57, %v4367_v56  ;;  %v5498_v40 = vld [vmem:[%s8597_s0 + $0x5a4] sm:$0xf0]  ;;  %v4271_v46 = vld [vmem:[%s8597_s0 + $0x490] sm:$0xf]  ;;  %v5480_v50 = vld [vmem:[%s8597_s0 + $0x514] sm:$0xf0] }
  0x3f   :  { %2965 = vmatpush.bf16.msrb.mxu1 %v4016_v3  ;;  %v5454_v3 = vld [vmem:[%s8597_s0 + $0x444] sm:$0xf0]  ;;  %v4408_v51 = vor.u32 %v5498_v40, %v4407_v39  ;;  %v4399_v52 = vld [vmem:[%s8597_s0 + $0x590] sm:$0xf]  ;;  %v5496_v56 = vld [vmem:[%s8597_s0 + $0x594] sm:$0xf0] }
  0x40   :  { %2978 = vmatpush.bf16.msrb.mxu2 %v4080_v7  ;;  %v5486_v7 = vld [vmem:[%s8597_s0 + $0x544] sm:$0xf0]  ;;  %v4232_v12 = vor.u32 %v5454_v3, %v4231_v63  ;;  %v4199_v57 = vld [vmem:[%s8597_s0 + $0x400] sm:$0xf]  ;;  %v4511_v3 = vld [vmem:[%s8597_s0 + $0x670] sm:$0xf]  ;;  %v4400_v5 = vor.u32 %v5496_v56, %v4399_v52 }
  0x41   :  { %2991 = vmatpush.bf16.msrb.mxu3 %v4144_v11  ;;  %v6467_v11 = vld [vmem:[%s8601_s4 + $0x28] sm:$0xff]  ;;  %v4360_v18 = vor.u32 %v5486_v7, %v4359_v6  ;;  %v4263_v62 = vld [vmem:[%s8597_s0 + $0x480] sm:$0xf]  ;;  %v5524_v4 = vld [vmem:[%s8597_s0 + $0x674] sm:$0xf0] }
  0x42   :  { %2953 = vmatpush.bf16.msrb.mxu0 %v3944_v20  ;;  %v4287_v20 = vld [vmem:[%s8597_s0 + $0x4b0] sm:$0xf]  ;;  %v5462_v63 = vld [vmem:[%s8597_s0 + $0x484] sm:$0xf0]  ;;  %v5540_v7 = vld [vmem:[%s8597_s0 + $0x6f4] sm:$0xf0] }
  0x43   :  { %2966 = vmatpush.bf16.msrb.mxu1 %v4008_v21  ;;  %v5468_v21 = vld [vmem:[%s8597_s0 + $0x4b4] sm:$0xf0]  ;;  %v4575_v6 = vld [vmem:[%s8597_s0 + $0x6f0] sm:$0xf]  ;;  %v4391_v13 = vld [vmem:[%s8597_s0 + $0x580] sm:$0xf] }
  0x44   :  { %2979 = vmatpush.bf16.msrb.mxu2 %v4072_v25  ;;  %v4224_v25 = vor.u32 %v5452_v19, %v4223_v14  ;;  %v4288_v28 = vor.u32 %v5468_v21, %v4287_v20  ;;  %v5494_v14 = vld [vmem:[%s8597_s0 + $0x584] sm:$0xf0]  ;;  %v4264_v19 = vor.u32 %v5462_v63, %v4263_v62  ;;  %v828_v21 = vunpack.c.h.b16 %v6458_v8  ;;  %v4695_v39 = vld [vmem:[%s8597_s0 + $0x7e0] sm:$0xf]  ;;  %v6631_v40 = vld [vmem:[%s8601_s4 + $0x38] sm:$0xff] }
  0x45   :  { %2992 = vmatpush.bf16.msrb.mxu3 %v4136_v35  ;;  %2954 = vmatmul.bf16.vlgmr.msrb.gmra.mxu0 %v6413_v53  ;;  %v4343_v35 = vld [vmem:[%s8597_s0 + $0x520] sm:$0xf]  ;;  %v4623_v52 = vld [vmem:[%s8597_s0 + $0x750] sm:$0xf] }
  0x46   :  { %2998 = vmatpush.bf16.msra.mxu0 %v4256_v26  ;;  %2967 = vmatmul.bf16.vlgmr.msrb.gmra.mxu1 %v6427_v59  ;;  %v4415_v26 = vld [vmem:[%s8597_s0 + $0x5b0] sm:$0xf]  ;;  %v4344_v43 = vor.u32 %v5482_v36, %v4343_v35  ;;  %v5554_v35 = vld [vmem:[%s8597_s0 + $0x764] sm:$0xf0] }
  0x47   :  { %3011 = vmatpush.bf16.msra.mxu1 %v4320_v30  ;;  %2980 = vmatmul.bf16.vlgmr.msrb.gmra.mxu2 %v6395_v42  ;;  %v4352_v30 = vor.u32 %v5484_v23, %v4351_v22  ;;  %v4416_v37 = vor.u32 %v5500_v27, %v4415_v26  ;;  %v4512_v22 = vor.u32 %v5524_v4, %v4511_v3  ;;  %v830_v26 = vunpack.c.h.b16 %v6467_v11  ;;  %v4503_v27 = vld [vmem:[%s8597_s0 + $0x660] sm:$0xf]  ;;  %v6621_v36 = vld [vmem:[%s8601_s4 + $0x30] sm:$0xff] }
  0x48   :  { %3024 = vmatpush.bf16.msra.mxu2 %v4384_v31  ;;  %2993 = vmatmul.bf16.vlgmr.msrb.gmra.mxu3 %v6415_v54  ;;  %v4215_v31 = vld [vmem:[%s8597_s0 + $0x420] sm:$0xf]  ;;  %v4576_v23 = vor.u32 %v5540_v7, %v4575_v6 }
  0x49   :  { %3037 = vmatpush.bf16.msra.mxu3 %v4448_v41  ;;  %v4216_v38 = vor.u32 %v5450_v32, %v4215_v31  ;;  %v4280_v41 = vor.u32 %v5466_v34, %v4279_v33  ;;  %v4567_v31 = vld [vmem:[%s8597_s0 + $0x6e0] sm:$0xf]  ;;  %v5538_v32 = vld [vmem:[%s8597_s0 + $0x6e4] sm:$0xf0] }
  0x4a   :  { %2999 = vmatpush.bf16.msra.mxu0 %v4248_v44  ;;  %v4207_v44 = vld [vmem:[%s8597_s0 + $0x410] sm:$0xf]  ;;  %v4631_v34 = vld [vmem:[%s8597_s0 + $0x760] sm:$0xf] }
  0x4b   :  { %3012 = vmatpush.bf16.msra.mxu1 %v4312_v29  ;;  %v5464_v29 = vld [vmem:[%s8597_s0 + $0x494] sm:$0xf0]  ;;  %v4208_v55 = vor.u32 %v5448_v45, %v4207_v44  ;;  %v5570_v44 = vld [vmem:[%s8597_s0 + $0x7e4] sm:$0xf0]  ;;  %v4495_v45 = vld [vmem:[%s8597_s0 + $0x650] sm:$0xf] }
  0x4c   :  { %3025 = vmatpush.bf16.msra.mxu2 %v4376_v47  ;;  %v4335_v47 = vld [vmem:[%s8597_s0 + $0x510] sm:$0xf]  ;;  %v4696_v56 = vor.u32 %v5570_v44, %v4695_v39 }
  0x4d   :  { %3038 = vmatpush.bf16.msra.mxu3 %v4440_v58  ;;  %v5446_v58 = vld [vmem:[%s8597_s0 + $0x404] sm:$0xf0]  ;;  %v4336_v61 = vor.u32 %v5480_v50, %v4335_v47  ;;  %v5520_v47 = vld [vmem:[%s8597_s0 + $0x654] sm:$0xf0]  ;;  %v4559_v50 = vld [vmem:[%s8597_s0 + $0x6d0] sm:$0xf] }
  0x4e   :  { %3000 = vmatpush.bf16.msra.mxu0 %v4240_v60  ;;  %v4272_v60 = vor.u32 %v5464_v29, %v4271_v46  ;;  %v4200_v10 = vor.u32 %v5446_v58, %v4199_v57  ;;  %v4568_v46 = vor.u32 %v5538_v32, %v4567_v31  ;;  %v4632_v29 = vor.u32 %v5554_v35, %v4631_v34 }
  0x4f   :  { %3013 = vmatpush.bf16.msra.mxu1 %v4304_v0  ;;  %v4327_v0 = vld [vmem:[%s8597_s0 + $0x500] sm:$0xf] }
  0x50   :  { %3026 = vmatpush.bf16.msra.mxu2 %v4368_v2  ;;  %v5478_v2 = vld [vmem:[%s8597_s0 + $0x504] sm:$0xf0] }
  0x51   :  { %3039 = vmatpush.bf16.msra.mxu3 %v4432_v9  ;;  %v4639_v9 = vld [vmem:[%s8597_s0 + $0x770] sm:$0xf]  ;;  %v4328_v20 = vor.u32 %v5478_v2, %v4327_v0 }
  0x52   :  { %3001 = vmatpush.bf16.msra.mxu0 %v4232_v12  ;;  %v5556_v12 = vld [vmem:[%s8597_s0 + $0x774] sm:$0xf0] }
  0x53   :  { %3014 = vmatpush.bf16.msra.mxu1 %v4296_v17  ;;  %v827_v17 = vunpack.c.l.b16 %v6458_v8  ;;  %v5522_v8 = vld [vmem:[%s8597_s0 + $0x664] sm:$0xf0] }
  0x54   :  { %3027 = vmatpush.bf16.msra.mxu2 %v4360_v18  ;;  %v829_v18 = vunpack.c.l.b16 %v6467_v11 }
  0x55   :  { %3040 = vmatpush.bf16.msra.mxu3 %v4424_v24  ;;  %v4703_v24 = vld [vmem:[%s8597_s0 + $0x7f0] sm:$0xf]  ;;  %v6608_v11 = vpack.c.b16 %v827_v17, %v827_v17 }
  0x56   :  { %3002 = vmatpush.bf16.msra.mxu0 %v4224_v25  ;;  %v5572_v25 = vld [vmem:[%s8597_s0 + $0x7f4] sm:$0xf0]  ;;  %v6610_v33 = vpack.c.b16 %v829_v18, %v829_v18 }
  0x57   :  { %3015 = vmatpush.bf16.msra.mxu1 %v4288_v28  ;;  %v4640_v28 = vor.u32 %v5556_v12, %v4639_v9 }
  0x58   :  { %3028 = vmatpush.bf16.msra.mxu2 %v4352_v30  ;;  %v4392_v30 = vor.u32 %v5494_v14, %v4391_v13 }
  0x59   :  { %3041 = vmatpush.bf16.msra.mxu3 %v4416_v37  ;;  %v4704_v37 = vor.u32 %v5572_v25, %v4703_v24 }
  0x5a   :  { %3003 = vmatpush.bf16.msra.mxu0 %v4216_v38  ;;  %v6623_v38 = vpack.c.b16 %v828_v21, %v828_v21 }
  0x5b   :  { %3016 = vmatpush.bf16.msra.mxu1 %v4280_v41  ;;  %v6633_v41 = vpack.c.b16 %v830_v26, %v830_v26 }
  0x5c   :  { %3029 = vmatpush.bf16.msra.mxu2 %v4344_v43  ;;  %v4504_v43 = vor.u32 %v5522_v8, %v4503_v27 }
  0x5d   :  { %3042 = vmatpush.bf16.msra.mxu3 %v4408_v51  ;;  %v5536_v51 = vld [vmem:[%s8597_s0 + $0x6d4] sm:$0xf0] }
  0x5e   :  { %3004 = vmatpush.bf16.msra.mxu0 %v4208_v55  ;;  %v5552_v55 = vld [vmem:[%s8597_s0 + $0x754] sm:$0xf0] }
  0x5f   :  { %3017 = vmatpush.bf16.msra.mxu1 %v4272_v60 }
  0x60   :  { %3030 = vmatpush.bf16.msra.mxu2 %v4336_v61 }
  0x61   :  { %3043 = vmatpush.bf16.msra.mxu3 %v4400_v5 }
  0x62   :  { %3005 = vmatpush.bf16.msra.mxu0 %v4200_v10 }
  0x63   :  { %3018 = vmatpush.bf16.msra.mxu1 %v4264_v19 }
  0x64   :  { %3031 = vmatpush.bf16.msra.mxu2 %v4328_v20 }
  0x65   :  { %3044 = vmatpush.bf16.msra.mxu3 %v4392_v30  ;;  %3006 = vmatmul.bf16.vlgmr.msra.gmra.mxu0 %v6608_v11 }
  0x66   :  { %3050 = vmatpush.bf16.msrb.mxu0 %v4512_v22  ;;  %3019 = vmatmul.bf16.vlgmr.msra.gmra.mxu1 %v6623_v38 }
  0x67   :  { %3063 = vmatpush.bf16.msrb.mxu1 %v4576_v23  ;;  %3032 = vmatmul.bf16.vlgmr.msra.gmra.mxu2 %v6610_v33 }
  0x68   :  { %3076 = vmatpush.bf16.msrb.mxu2 %v4640_v28 }
  0x69   :  { %3089 = vmatpush.bf16.msrb.mxu3 %v4704_v37 }
  0x6a   :  { %19 = vsyncpa [#allocation10], 0  ;;  %3045 = vmatmul.bf16.vlgmr.msra.gmra.mxu3 %v6633_v41  ;;  %3051 = vmatpush.bf16.msrb.mxu0 %v4504_v43  ;;  %v4496_v57 = vor.u32 %v5520_v47, %v4495_v45  ;;  %v4687_v58 = vld [vmem:[%s8597_s0 + $0x7d0] sm:$0xf]  ;;  %v5568_v60 = vld [vmem:[%s8597_s0 + $0x7d4] sm:$0xf0]  ;;  %v4560_v61 = vor.u32 %v5536_v51, %v4559_v50  ;;  %v4624_v62 = vor.u32 %v5552_v55, %v4623_v52 }
  0x6b   :  { %3064 = vmatpush.bf16.msrb.mxu1 %v4568_v46  ;;  %v4487_v63 = vld [vmem:[%s8597_s0 + $0x640] sm:$0xf]  ;;  %v5518_v0 = vld [vmem:[%s8597_s0 + $0x644] sm:$0xf0]  ;;  %v4688_v6 = vor.u32 %v5568_v60, %v4687_v58  ;;  %v4479_v14 = vld [vmem:[%s8597_s0 + $0x630] sm:$0xf] }
  0x6c   :  { %3077 = vmatpush.bf16.msrb.mxu2 %v4632_v29  ;;  %v4551_v2 = vld [vmem:[%s8597_s0 + $0x6c0] sm:$0xf]  ;;  %v5534_v3 = vld [vmem:[%s8597_s0 + $0x6c4] sm:$0xf0]  ;;  %v4488_v7 = vor.u32 %v5518_v0, %v4487_v63  ;;  %v5516_v17 = vld [vmem:[%s8597_s0 + $0x634] sm:$0xf0] }
  0x6d   :  { %v4615_v4 = vld [vmem:[%s8597_s0 + $0x740] sm:$0xf]  ;;  %v5550_v5 = vld [vmem:[%s8597_s0 + $0x744] sm:$0xf0]  ;;  %3090 = vmatpush.bf16.msrb.mxu3 %v4696_v56  ;;  %v4552_v12 = vor.u32 %v5534_v3, %v4551_v2  ;;  %v4543_v18 = vld [vmem:[%s8597_s0 + $0x6b0] sm:$0xf]  ;;  %v4480_v23 = vor.u32 %v5516_v17, %v4479_v14 }
  0x6e   :  { %3052 = vmatpush.bf16.msrb.mxu0 %v4496_v57  ;;  %v4679_v9 = vld [vmem:[%s8597_s0 + $0x7c0] sm:$0xf]  ;;  %v5566_v10 = vld [vmem:[%s8597_s0 + $0x7c4] sm:$0xf0]  ;;  %v4616_v13 = vor.u32 %v5550_v5, %v4615_v4  ;;  %v5532_v19 = vld [vmem:[%s8597_s0 + $0x6b4] sm:$0xf0] }
  0x6f   :  { %3065 = vmatpush.bf16.msrb.mxu1 %v4560_v61  ;;  %v4607_v20 = vld [vmem:[%s8597_s0 + $0x730] sm:$0xf]  ;;  %v5548_v21 = vld [vmem:[%s8597_s0 + $0x734] sm:$0xf0]  ;;  %v4680_v22 = vor.u32 %v5566_v10, %v4679_v9  ;;  %v4544_v26 = vor.u32 %v5532_v19, %v4543_v18  ;;  %v4471_v28 = vld [vmem:[%s8597_s0 + $0x620] sm:$0xf]  ;;  %v831_v19 = vunpack.c.l.b16 %v6621_v36 }
  0x70   :  { %3078 = vmatpush.bf16.msrb.mxu2 %v4624_v62  ;;  %v4671_v24 = vld [vmem:[%s8597_s0 + $0x7b0] sm:$0xf]  ;;  %v5564_v25 = vld [vmem:[%s8597_s0 + $0x7b4] sm:$0xf0]  ;;  %v4608_v27 = vor.u32 %v5548_v21, %v4607_v20  ;;  %v5514_v30 = vld [vmem:[%s8597_s0 + $0x624] sm:$0xf0]  ;;  %v833_v20 = vunpack.c.l.b16 %v6631_v40 }
  0x71   :  { %3091 = vmatpush.bf16.msrb.mxu3 %v4688_v6  ;;  %v4535_v8 = vld [vmem:[%s8597_s0 + $0x6a0] sm:$0xf]  ;;  %v5530_v31 = vld [vmem:[%s8597_s0 + $0x6a4] sm:$0xf0]  ;;  %v4672_v35 = vor.u32 %v5564_v25, %v4671_v24  ;;  %v4472_v37 = vor.u32 %v5514_v30, %v4471_v28  ;;  %v4463_v46 = vld [vmem:[%s8597_s0 + $0x610] sm:$0xf]  ;;  %v834_v28 = vunpack.c.h.b16 %v6631_v40  ;;  %v6826_v40 = vpack.c.b16 %v831_v19, %v831_v19 }
  0x72   :  { %3053 = vmatpush.bf16.msrb.mxu0 %v4488_v7  ;;  %v4599_v32 = vld [vmem:[%s8597_s0 + $0x720] sm:$0xf]  ;;  %v5546_v34 = vld [vmem:[%s8597_s0 + $0x724] sm:$0xf0]  ;;  %v4536_v44 = vor.u32 %v5530_v31, %v4535_v8  ;;  %v5512_v29 = vld [vmem:[%s8597_s0 + $0x614] sm:$0xf0] }
  0x73   :  { %3066 = vmatpush.bf16.msrb.mxu1 %v4552_v12  ;;  %v4663_v39 = vld [vmem:[%s8597_s0 + $0x7a0] sm:$0xf]  ;;  %v5562_v43 = vld [vmem:[%s8597_s0 + $0x7a4] sm:$0xf0]  ;;  %v4600_v45 = vor.u32 %v5546_v34, %v4599_v32  ;;  %v4527_v47 = vld [vmem:[%s8597_s0 + $0x690] sm:$0xf]  ;;  %v4464_v57 = vor.u32 %v5512_v29, %v4463_v46 }
  0x74   :  { %3079 = vmatpush.bf16.msrb.mxu2 %v4616_v13  ;;  %v5528_v50 = vld [vmem:[%s8597_s0 + $0x694] sm:$0xf0]  ;;  %v4591_v51 = vld [vmem:[%s8597_s0 + $0x710] sm:$0xf]  ;;  %v4664_v55 = vor.u32 %v5562_v43, %v4663_v39  ;;  %v4455_v60 = vld [vmem:[%s8597_s0 + $0x600] sm:$0xf] }
  0x75   :  { %3092 = vmatpush.bf16.msrb.mxu3 %v4680_v22  ;;  %v5544_v52 = vld [vmem:[%s8597_s0 + $0x714] sm:$0xf0]  ;;  %v4655_v56 = vld [vmem:[%s8597_s0 + $0x790] sm:$0xf]  ;;  %v5510_v61 = vld [vmem:[%s8597_s0 + $0x604] sm:$0xf0]  ;;  %v4528_v62 = vor.u32 %v5528_v50, %v4527_v47  ;;  %v6851_v47 = vpack.c.b16 %v834_v28, %v834_v28 }
  0x76   :  { %3054 = vmatpush.bf16.msrb.mxu0 %v4480_v23  ;;  %v5560_v58 = vld [vmem:[%s8597_s0 + $0x794] sm:$0xf0]  ;;  %v4592_v63 = vor.u32 %v5544_v52, %v4591_v51  ;;  %v4519_v0 = vld [vmem:[%s8597_s0 + $0x680] sm:$0xf]  ;;  %v5526_v2 = vld [vmem:[%s8597_s0 + $0x684] sm:$0xf0]  ;;  %v4456_v13 = vor.u32 %v5510_v61, %v4455_v60  ;;  %v832_v23 = vunpack.c.h.b16 %v6621_v36 }
  0x77   :  { %3067 = vmatpush.bf16.msrb.mxu1 %v4544_v26  ;;  %v4583_v3 = vld [vmem:[%s8597_s0 + $0x700] sm:$0xf]  ;;  %v5542_v4 = vld [vmem:[%s8597_s0 + $0x704] sm:$0xf0]  ;;  %v4767_v5 = vld [vmem:[%s8597_s0 + $0x870] sm:$0xf]  ;;  %v4656_v7 = vor.u32 %v5560_v58, %v4655_v56  ;;  %v4520_v21 = vor.u32 %v5526_v2, %v4519_v0 }
  0x78   :  { %3080 = vmatpush.bf16.msrb.mxu2 %v4608_v27  ;;  %v5588_v6 = vld [vmem:[%s8597_s0 + $0x874] sm:$0xf0]  ;;  %v4831_v9 = vld [vmem:[%s8597_s0 + $0x8f0] sm:$0xf]  ;;  %v4647_v17 = vld [vmem:[%s8597_s0 + $0x780] sm:$0xf]  ;;  %v4584_v22 = vor.u32 %v5542_v4, %v4583_v3 }
  0x79   :  { %3093 = vmatpush.bf16.msrb.mxu3 %v4672_v35  ;;  %v5604_v10 = vld [vmem:[%s8597_s0 + $0x8f4] sm:$0xf0]  ;;  %v4895_v12 = vld [vmem:[%s8597_s0 + $0x970] sm:$0xf]  ;;  %v5558_v18 = vld [vmem:[%s8597_s0 + $0x784] sm:$0xf0]  ;;  %v4768_v24 = vor.u32 %v5588_v6, %v4767_v5  ;;  %v6828_v35 = vpack.c.b16 %v833_v20, %v833_v20 }
  0x7a   :  { %3055 = vmatpush.bf16.msrb.mxu0 %v4472_v37  ;;  %v5620_v14 = vld [vmem:[%s8597_s0 + $0x974] sm:$0xf0]  ;;  %v4832_v25 = vor.u32 %v5604_v10, %v4831_v9  ;;  %v4959_v26 = vld [vmem:[%s8597_s0 + $0x9f0] sm:$0xf]  ;;  %v4759_v30 = vld [vmem:[%s8597_s0 + $0x860] sm:$0xf]  ;;  %v4648_v31 = vor.u32 %v5558_v18, %v4647_v17 }
  0x7b   :  { %3068 = vmatpush.bf16.msrb.mxu1 %v4536_v44  ;;  %v5636_v27 = vld [vmem:[%s8597_s0 + $0x9f4] sm:$0xf0]  ;;  %v4896_v8 = vor.u32 %v5620_v14, %v4895_v12  ;;  %v5586_v36 = vld [vmem:[%s8597_s0 + $0x864] sm:$0xf0]  ;;  %v4823_v32 = vld [vmem:[%s8597_s0 + $0x8e0] sm:$0xf] }
  0x7c   :  { %3081 = vmatpush.bf16.msrb.mxu2 %v4600_v45  ;;  %v5602_v34 = vld [vmem:[%s8597_s0 + $0x8e4] sm:$0xf0]  ;;  %v4887_v37 = vld [vmem:[%s8597_s0 + $0x960] sm:$0xf]  ;;  %v4960_v44 = vor.u32 %v5636_v27, %v4959_v26  ;;  %v6841_v45 = vpack.c.b16 %v832_v23, %v832_v23  ;;  %v4760_v50 = vor.u32 %v5586_v36, %v4759_v30  ;;  %v4751_v52 = vld [vmem:[%s8597_s0 + $0x850] sm:$0xf] }
  0x7d   :  { %3094 = vmatpush.bf16.msrb.mxu3 %v4664_v55  ;;  %v5618_v39 = vld [vmem:[%s8597_s0 + $0x964] sm:$0xf0]  ;;  %v6839_v43 = vld [vmem:[%s8601_s4 + $0x40] sm:$0xff]  ;;  %v4824_v55 = vor.u32 %v5602_v34, %v4823_v32  ;;  %v4815_v58 = vld [vmem:[%s8597_s0 + $0x8d0] sm:$0xf]  ;;  %s3636_s24 = sshll.u32 %s8603_s6, 4  ;;  %s3637_s24 = int_to_ptr.hbm [resolvable:$true] %s3636_s24 }
  0x7e   :  { %3056 = vmatpush.bf16.msrb.mxu0 %v4464_v57  ;;  %v4951_v46 = vld [vmem:[%s8597_s0 + $0x9e0] sm:$0xf]  ;;  %v6849_v29 = vld [vmem:[%s8601_s4 + $0x48] sm:$0xff]  ;;  %v4888_v56 = vor.u32 %v5618_v39, %v4887_v37  ;;  %v5584_v57 = vld [vmem:[%s8597_s0 + $0x854] sm:$0xf0]  ;;  %s5892_s27 = smov [#allocation9]  }
  0x7f   :  { %3069 = vmatpush.bf16.msrb.mxu1 %v4528_v62  ;;  %v5634_v51 = vld [vmem:[%s8597_s0 + $0x9e4] sm:$0xf0]  ;;  %v5600_v60 = vld [vmem:[%s8597_s0 + $0x8d4] sm:$0xf0]  ;;  %v4879_v61 = vld [vmem:[%s8597_s0 + $0x950] sm:$0xf]  ;;  %v4752_v0 = vor.u32 %v5584_v57, %v4751_v52 }
  0x80   :  { %3082 = vmatpush.bf16.msrb.mxu2 %v4592_v63  ;;  %v5616_v62 = vld [vmem:[%s8597_s0 + $0x954] sm:$0xf0]  ;;  %v4952_v63 = vor.u32 %v5634_v51, %v4951_v46  ;;  %v4943_v2 = vld [vmem:[%s8597_s0 + $0x9d0] sm:$0xf]  ;;  %v4816_v4 = vor.u32 %v5600_v60, %v4815_v58  ;;  %v4743_v6 = vld [vmem:[%s8597_s0 + $0x840] sm:$0xf] }
  0x81   :  { %3095 = vmatpush.bf16.msrb.mxu3 %v4656_v7  ;;  %v5632_v3 = vld [vmem:[%s8597_s0 + $0x9d4] sm:$0xf0]  ;;  %v4880_v5 = vor.u32 %v5616_v62, %v4879_v61  ;;  %v5582_v7 = vld [vmem:[%s8597_s0 + $0x844] sm:$0xf0]  ;;  %v4807_v9 = vld [vmem:[%s8597_s0 + $0x8c0] sm:$0xf] }
  0x82   :  { %3057 = vmatpush.bf16.msrb.mxu0 %v4456_v13  ;;  %v5598_v10 = vld [vmem:[%s8597_s0 + $0x8c4] sm:$0xf0]  ;;  %v4871_v12 = vld [vmem:[%s8597_s0 + $0x940] sm:$0xf]  ;;  %v4944_v14 = vor.u32 %v5632_v3, %v4943_v2  ;;  %v4744_v17 = vor.u32 %v5582_v7, %v4743_v6  ;;  %v5580_v23 = vld [vmem:[%s8597_s0 + $0x834] sm:$0xf0] }
  0x83   :  { %3070 = vmatpush.bf16.msrb.mxu1 %v4520_v21  ;;  %v5614_v13 = vld [vmem:[%s8597_s0 + $0x944] sm:$0xf0]  ;;  %v4935_v18 = vld [vmem:[%s8597_s0 + $0x9c0] sm:$0xf]  ;;  %v4808_v20 = vor.u32 %v5598_v10, %v4807_v9  ;;  %v4863_v26 = vld [vmem:[%s8597_s0 + $0x930] sm:$0xf] }
  0x84   :  { %3083 = vmatpush.bf16.msrb.mxu2 %v4584_v22  ;;  %v5630_v19 = vld [vmem:[%s8597_s0 + $0x9c4] sm:$0xf0]  ;;  %v4872_v21 = vor.u32 %v5614_v13, %v4871_v12  ;;  %v4735_v22 = vld [vmem:[%s8597_s0 + $0x830] sm:$0xf]  ;;  %v5612_v27 = vld [vmem:[%s8597_s0 + $0x934] sm:$0xf0] }
  0x85   :  { %3096 = vmatpush.bf16.msrb.mxu3 %v4648_v31  ;;  %3058 = vmatmul.bf16.vlgmr.msrb.gmra.mxu0 %v6826_v40  ;;  %v4936_v28 = vor.u32 %v5630_v19, %v4935_v18  ;;  %v4736_v30 = vor.u32 %v5580_v23, %v4735_v22  ;;  %v5628_v31 = vld [vmem:[%s8597_s0 + $0x9b4] sm:$0xf0]  ;;  %v4864_v32 = vor.u32 %v5612_v27, %v4863_v26  ;;  %v4727_v34 = vld [vmem:[%s8597_s0 + $0x820] sm:$0xf]  ;;  %v5578_v37 = vld [vmem:[%s8597_s0 + $0x824] sm:$0xf0] }
  0x86   :  { %3102 = vmatpush.bf16.msra.mxu0 %v4768_v24  ;;  %3071 = vmatmul.bf16.vlgmr.msrb.gmra.mxu1 %v6841_v45  ;;  %v4799_v24 = vld [vmem:[%s8597_s0 + $0x8b0] sm:$0xf]  ;;  %v4791_v39 = vld [vmem:[%s8597_s0 + $0x8a0] sm:$0xf]  ;;  %v4728_v52 = vor.u32 %v5578_v37, %v4727_v34  ;;  %v5576_v61 = vld [vmem:[%s8597_s0 + $0x814] sm:$0xf0] }
  0x87   :  { %3115 = vmatpush.bf16.msra.mxu1 %v4832_v25  ;;  %3084 = vmatmul.bf16.vlgmr.msrb.gmra.mxu2 %v6828_v35  ;;  %v5596_v25 = vld [vmem:[%s8597_s0 + $0x8b4] sm:$0xf0]  ;;  %v4855_v46 = vld [vmem:[%s8597_s0 + $0x920] sm:$0xf]  ;;  %v4719_v60 = vld [vmem:[%s8597_s0 + $0x810] sm:$0xf] }
  0x88   :  { %3128 = vmatpush.bf16.msra.mxu2 %v4896_v8  ;;  %3097 = vmatmul.bf16.vlgmr.msrb.gmra.mxu3 %v6851_v47  ;;  %v4927_v8 = vld [vmem:[%s8597_s0 + $0x9b0] sm:$0xf]  ;;  %v4800_v36 = vor.u32 %v5596_v25, %v4799_v24  ;;  %v5608_v2 = vld [vmem:[%s8597_s0 + $0x914] sm:$0xf0]  ;;  %v4711_v7 = vld [vmem:[%s8597_s0 + $0x800] sm:$0xf] }
  0x89   :  { %3141 = vmatpush.bf16.msra.mxu3 %v4960_v44  ;;  %v5594_v44 = vld [vmem:[%s8597_s0 + $0x8a4] sm:$0xf0]  ;;  %v4928_v51 = vor.u32 %v5628_v31, %v4927_v8  ;;  %v4783_v62 = vld [vmem:[%s8597_s0 + $0x890] sm:$0xf]  ;;  %v5624_v6 = vld [vmem:[%s8597_s0 + $0x994] sm:$0xf0]  ;;  %v837_v8 = vunpack.c.l.b16 %v6849_v29 }
  0x8a   :  { %3103 = vmatpush.bf16.msra.mxu0 %v4760_v50  ;;  %v5610_v50 = vld [vmem:[%s8597_s0 + $0x924] sm:$0xf0]  ;;  %v4792_v57 = vor.u32 %v5594_v44, %v4791_v39  ;;  %v4775_v13 = vld [vmem:[%s8597_s0 + $0x880] sm:$0xf]  ;;  %v5023_v19 = vld [vmem:[%s8597_s0 + $0xa70] sm:$0xf] }
  0x8b   :  { %3116 = vmatpush.bf16.msra.mxu1 %v4824_v55  ;;  %v4919_v55 = vld [vmem:[%s8597_s0 + $0x9a0] sm:$0xf]  ;;  %v4856_v58 = vor.u32 %v5610_v50, %v4855_v46  ;;  %v5574_v9 = vld [vmem:[%s8597_s0 + $0x804] sm:$0xf0]  ;;  %v5087_v22 = vld [vmem:[%s8597_s0 + $0xaf0] sm:$0xf]  ;;  %v838_v46 = vunpack.c.h.b16 %v6849_v29 }
  0x8c   :  { %3129 = vmatpush.bf16.msra.mxu2 %v4888_v56  ;;  %v5626_v56 = vld [vmem:[%s8597_s0 + $0x9a4] sm:$0xf0]  ;;  %v5668_v23 = vld [vmem:[%s8597_s0 + $0xaf4] sm:$0xf0]  ;;  %v5151_v24 = vld [vmem:[%s8597_s0 + $0xb70] sm:$0xf]  ;;  %v4712_v25 = vor.u32 %v5574_v9, %v4711_v7 }
  0x8d   :  { %3142 = vmatpush.bf16.msra.mxu3 %v4952_v63  ;;  %v5592_v63 = vld [vmem:[%s8597_s0 + $0x894] sm:$0xf0]  ;;  %v4920_v3 = vor.u32 %v5626_v56, %v4919_v55  ;;  %v5606_v18 = vld [vmem:[%s8597_s0 + $0x904] sm:$0xf0]  ;;  %v4903_v27 = vld [vmem:[%s8597_s0 + $0x980] sm:$0xf]  ;;  %v5088_v37 = vor.u32 %v5668_v23, %v5087_v22 }
  0x8e   :  { %3104 = vmatpush.bf16.msra.mxu0 %v4752_v0  ;;  %v4847_v0 = vld [vmem:[%s8597_s0 + $0x910] sm:$0xf]  ;;  %v4784_v10 = vor.u32 %v5592_v63, %v4783_v62  ;;  %v5684_v26 = vld [vmem:[%s8597_s0 + $0xb74] sm:$0xf0]  ;;  %v5015_v50 = vld [vmem:[%s8597_s0 + $0xa60] sm:$0xf] }
  0x8f   :  { %3117 = vmatpush.bf16.msra.mxu1 %v4816_v4  ;;  %v4911_v4 = vld [vmem:[%s8597_s0 + $0x990] sm:$0xf]  ;;  %v4848_v12 = vor.u32 %v5608_v2, %v4847_v0  ;;  %v5700_v44 = vld [vmem:[%s8597_s0 + $0xbf4] sm:$0xf0]  ;;  %v5079_v55 = vld [vmem:[%s8597_s0 + $0xae0] sm:$0xf] }
  0x90   :  { %3130 = vmatpush.bf16.msra.mxu2 %v4880_v5  ;;  %v4720_v5 = vor.u32 %v5576_v61, %v4719_v60  ;;  %v5215_v39 = vld [vmem:[%s8597_s0 + $0xbf0] sm:$0xf]  ;;  %v5666_v56 = vld [vmem:[%s8597_s0 + $0xae4] sm:$0xf0]  ;;  %v5207_v0 = vld [vmem:[%s8597_s0 + $0xbe0] sm:$0xf] }
  0x91   :  { %3143 = vmatpush.bf16.msra.mxu3 %v4944_v14  ;;  %v5590_v14 = vld [vmem:[%s8597_s0 + $0x884] sm:$0xf0]  ;;  %v7057_v61 = vld [vmem:[%s8601_s4 + $0x50] sm:$0xff]  ;;  %v5216_v62 = vor.u32 %v5700_v44, %v5215_v39  ;;  %v7067_v2 = vld [vmem:[%s8601_s4 + $0x58] sm:$0xff]  ;;  %v5080_v7 = vor.u32 %v5666_v56, %v5079_v55  ;;  %s3645_s28 = sshll.u32 %s5892_s27, 4  ;;  %s3647_s8 = sshll.u32 %s8604_s7, 4  ;;  %s3646_s28 = int_to_ptr.vmem [resolvable:$true] %s3645_s28  ;;  %s3648_s8 = int_to_ptr.hbm [resolvable:$true] %s3647_s8 }
  0x92   :  { %3105 = vmatpush.bf16.msra.mxu0 %v4744_v17  ;;  %v4839_v17 = vld [vmem:[%s8597_s0 + $0x900] sm:$0xf]  ;;  %v4776_v31 = vor.u32 %v5590_v14, %v4775_v13  ;;  %v5682_v60 = vld [vmem:[%s8597_s0 + $0xb64] sm:$0xf0]  ;;  %v5664_v13 = vld [vmem:[%s8597_s0 + $0xad4] sm:$0xf0] }
  0x93   :  { %3118 = vmatpush.bf16.msra.mxu1 %v4808_v20  ;;  %v5652_v20 = vld [vmem:[%s8597_s0 + $0xa74] sm:$0xf0]  ;;  %v5135_v14 = vld [vmem:[%s8597_s0 + $0xb50] sm:$0xf] }
  0x94   :  { %3131 = vmatpush.bf16.msra.mxu2 %v4872_v21  ;;  %v4912_v21 = vor.u32 %v5624_v6, %v4911_v4  ;;  %v5024_v34 = vor.u32 %v5652_v20, %v5023_v19  ;;  %v5007_v6 = vld [vmem:[%s8597_s0 + $0xa50] sm:$0xf]  ;;  %v5644_v44 = vld [vmem:[%s8597_s0 + $0xa34] sm:$0xf0] }
  0x95   :  { %3144 = vmatpush.bf16.msra.mxu3 %v4936_v28  ;;  %v5622_v28 = vld [vmem:[%s8597_s0 + $0x984] sm:$0xf0]  ;;  %v5199_v20 = vld [vmem:[%s8597_s0 + $0xbd0] sm:$0xf] }
  0x96   :  { %3106 = vmatpush.bf16.msra.mxu0 %v4736_v30  ;;  %v835_v30 = vunpack.c.l.b16 %v6839_v43  ;;  %v4991_v39 = vld [vmem:[%s8597_s0 + $0xa30] sm:$0xf] }
  0x97   :  { %3119 = vmatpush.bf16.msra.mxu1 %v4800_v36  ;;  %v4840_v36 = vor.u32 %v5606_v18, %v4839_v17  ;;  %v5680_v17 = vld [vmem:[%s8597_s0 + $0xb54] sm:$0xf0] }
  0x98   :  { %3132 = vmatpush.bf16.msra.mxu2 %v4864_v32  ;;  %v836_v32 = vunpack.c.h.b16 %v6839_v43  ;;  %v5650_v43 = vld [vmem:[%s8597_s0 + $0xa64] sm:$0xf0]  ;;  %v7044_v29 = vpack.c.b16 %v835_v30, %v835_v30  ;;  %v5136_v23 = vor.u32 %v5680_v17, %v5135_v14  ;;  %v5175_v17 = vld [vmem:[%s8597_s0 + $0xba0] sm:$0xf] }
  0x99   :  { %3145 = vmatpush.bf16.msra.mxu3 %v4928_v51  ;;  %v5152_v51 = vor.u32 %v5684_v26, %v5151_v24  ;;  %v5016_v4 = vor.u32 %v5650_v43, %v5015_v50  ;;  %v4999_v24 = vld [vmem:[%s8597_s0 + $0xa40] sm:$0xf]  ;;  %v5678_v30 = vld [vmem:[%s8597_s0 + $0xb44] sm:$0xf0]  ;;  %v377_v50 = vlaneseq  ;;  %v5676_v43 = vld [vmem:[%s8597_s0 + $0xb34] sm:$0xf0] }
  0x9a   :  { %3107 = vmatpush.bf16.msra.mxu0 %v4728_v52  ;;  %v4904_v52 = vor.u32 %v5622_v28, %v4903_v27  ;;  %v7059_v63 = vpack.c.b16 %v836_v32, %v836_v32  ;;  %v5063_v26 = vld [vmem:[%s8597_s0 + $0xac0] sm:$0xf]  ;;  %v5662_v27 = vld [vmem:[%s8597_s0 + $0xac4] sm:$0xf0] }
  0x9b   :  { %3120 = vmatpush.bf16.msra.mxu1 %v4792_v57  ;;  %v7046_v57 = vpack.c.b16 %v837_v8, %v837_v8  ;;  %v5127_v28 = vld [vmem:[%s8597_s0 + $0xb40] sm:$0xf]  ;;  %v5694_v32 = vld [vmem:[%s8597_s0 + $0xbc4] sm:$0xf0]  ;;  %v378_v56 = vand.u32 127, %v377_v50 }
  0x9c   :  { %3133 = vmatpush.bf16.msra.mxu2 %v4856_v58  ;;  %v5143_v58 = vld [vmem:[%s8597_s0 + $0xb60] sm:$0xf] }
  0x9d   :  { %3146 = vmatpush.bf16.msra.mxu3 %v4920_v3  ;;  %v7069_v3 = vpack.c.b16 %v838_v46, %v838_v46  ;;  %v5144_v9 = vor.u32 %v5682_v60, %v5143_v58  ;;  %v5055_v46 = vld [vmem:[%s8597_s0 + $0xab0] sm:$0xf]  ;;  %v4992_v58 = vor.u32 %v5644_v44, %v4991_v39  ;;  %v5031_v50 = vld [vmem:[%s8597_s0 + $0xa80] sm:$0xf] }
  0x9e   :  { %3108 = vmatpush.bf16.msra.mxu0 %v4720_v5  ;;  %v5698_v5 = vld [vmem:[%s8597_s0 + $0xbe4] sm:$0xf0]  ;;  %v5183_v60 = vld [vmem:[%s8597_s0 + $0xbb0] sm:$0xf] }
  0x9f   :  { %3121 = vmatpush.bf16.msra.mxu1 %v4784_v10  ;;  %v5648_v10 = vld [vmem:[%s8597_s0 + $0xa54] sm:$0xf0]  ;;  %v5208_v18 = vor.u32 %v5698_v5, %v5207_v0  ;;  %v4983_v0 = vld [vmem:[%s8597_s0 + $0xa20] sm:$0xf] }
  0xa0   :  { %3134 = vmatpush.bf16.msra.mxu2 %v4848_v12  ;;  %v5071_v12 = vld [vmem:[%s8597_s0 + $0xad0] sm:$0xf]  ;;  %v5008_v19 = vor.u32 %v5648_v10, %v5007_v6  ;;  %v5642_v6 = vld [vmem:[%s8597_s0 + $0xa24] sm:$0xf0]  ;;  %v5111_v10 = vld [vmem:[%s8597_s0 + $0xb20] sm:$0xf] }
  0xa1   :  { %3147 = vmatpush.bf16.msra.mxu3 %v4912_v21  ;;  %v5696_v21 = vld [vmem:[%s8597_s0 + $0xbd4] sm:$0xf0]  ;;  %v5072_v22 = vor.u32 %v5664_v13, %v5071_v12  ;;  %v5674_v12 = vld [vmem:[%s8597_s0 + $0xb24] sm:$0xf0]  ;;  %v3684_v13 = vld [vmem:[%s8601_s4 + $0x60] sm:$0xf] }
  0xa2   :  { %3109 = vmatpush.bf16.msra.mxu0 %v4712_v25  ;;  %v5646_v25 = vld [vmem:[%s8597_s0 + $0xa44] sm:$0xf0]  ;;  %v5200_v8 = vor.u32 %v5696_v21, %v5199_v20  ;;  %v4975_v21 = vld [vmem:[%s8597_s0 + $0xa10] sm:$0xf] }
  0xa3   :  { %3122 = vmatpush.bf16.msra.mxu1 %v4776_v31  ;;  %v5000_v31 = vor.u32 %v5646_v25, %v4999_v24  ;;  %v5690_v20 = vld [vmem:[%s8597_s0 + $0xba4] sm:$0xf0]  ;;  %v5112_v24 = vor.u32 %v5674_v12, %v5111_v10  ;;  %v5039_v25 = vld [vmem:[%s8597_s0 + $0xa90] sm:$0xf] }
  0xa4   :  { %3135 = vmatpush.bf16.msra.mxu2 %v4840_v36  ;;  %v5191_v36 = vld [vmem:[%s8597_s0 + $0xbc0] sm:$0xf] }
  0xa5   :  { %3148 = vmatpush.bf16.msra.mxu3 %v4904_v52  ;;  %3110 = vmatmul.bf16.vlgmr.msra.gmra.mxu0 %v7044_v29  ;;  %v5119_v52 = vld [vmem:[%s8597_s0 + $0xb30] sm:$0xf]  ;;  %v5192_v55 = vor.u32 %v5694_v32, %v5191_v36  ;;  %v5688_v32 = vld [vmem:[%s8597_s0 + $0xb94] sm:$0xf0] }
  0xa6   :  { %3154 = vmatpush.bf16.msrb.mxu0 %v5024_v34  ;;  %3123 = vmatmul.bf16.vlgmr.msra.gmra.mxu1 %v7059_v63  ;;  %v5064_v34 = vor.u32 %v5662_v27, %v5063_v26  ;;  %v5120_v5 = vor.u32 %v5676_v43, %v5119_v52  ;;  %v5656_v26 = vld [vmem:[%s8597_s0 + $0xa94] sm:$0xf0]  ;;  %v800_v27 = vld [vmem:[%s8598_s1] sm:$0x3]  ;;  %v5167_v36 = vld [vmem:[%s8597_s0 + $0xb90] sm:$0xf] }
  0xa7   :  { %3167 = vmatpush.bf16.msrb.mxu1 %v5088_v37  ;;  %3136 = vmatmul.bf16.vlgmr.msra.gmra.mxu2 %v7046_v57  ;;  %v5128_v37 = vor.u32 %v5678_v30, %v5127_v28  ;;  %v375_v28 = vunpack.c.l.bf16 %v3684_v13  ;;  %v5103_v30 = vld [vmem:[%s8597_s0 + $0xb10] sm:$0xf]  ;;  %v5040_v52 = vor.u32 %v5656_v26, %v5039_v25  ;;  %v5159_v13 = vld [vmem:[%s8597_s0 + $0xb80] sm:$0xf]  ;;  %v5363_v26 = vld [vmem:[%s8597_s0 + $0x174] sm:$0xf] }
  0xa8   :  { %3180 = vmatpush.bf16.msrb.mxu2 %v5152_v51  ;;  %3149 = vmatmul.bf16.vlgmr.msra.gmra.mxu3 %v7069_v3  ;;  %v5660_v51 = vld [vmem:[%s8597_s0 + $0xab4] sm:$0xf0] }
  0xa9   :  { %3193 = vmatpush.bf16.msrb.mxu3 %v5216_v62  ;;  %v5692_v62 = vld [vmem:[%s8597_s0 + $0xbb4] sm:$0xf0] }
  0xaa   :  { %3155 = vmatpush.bf16.msrb.mxu0 %v5016_v4  ;;  %v5056_v4 = vor.u32 %v5660_v51, %v5055_v46  ;;  %v5184_v14 = vor.u32 %v5692_v62, %v5183_v60  ;;  %v5638_v46 = vld [vmem:[%s8597_s0 + $0xa04] sm:$0xf0]  ;;  %v802_v51 = vperm.slane %v800_v27, 0  ;;  %v5279_v62 = vld [vmem:[%s8597_s0 + $0xc70] sm:$0xf]  ;;  %v2903_v10 = vpop.f32.mrf.mxu0 }
  0xab   :  { %3168 = vmatpush.bf16.msrb.mxu1 %v5080_v7  ;;  %v5047_v7 = vld [vmem:[%s8597_s0 + $0xaa0] sm:$0xf]  ;;  %v7207_v39 = vpop.f32.mrf.mxu3  ;;  %v3873_v27 = vld [vmem:[%s8597_s0 + $0x178] sm:$0xf0] }
  0xac   :  { %3181 = vmatpush.bf16.msrb.mxu2 %v5144_v9  ;;  %v5658_v9 = vld [vmem:[%s8597_s0 + $0xaa4] sm:$0xf0]  ;;  %v2904_v12 = vadd.f32 %v2903_v10, %v802_v51  ;;  %v5345_v51 = vld [vmem:[%s8597_s0 + $0xe4] sm:$0xf]  ;;  %v5343_v10 = vld [vmem:[%s8597_s0 + $0xd4] sm:$0xf] }
  0xad   :  { %3194 = vmatpush.bf16.msrb.mxu3 %v5208_v18  ;;  %v379_v18 = vadd.s32 3072, %v378_v56  ;;  %v5095_v56 = vld [vmem:[%s8597_s0 + $0xb00] sm:$0xf] }
  0xae   :  { %3156 = vmatpush.bf16.msrb.mxu0 %v5008_v19  ;;  %v4984_v19 = vor.u32 %v5642_v6, %v4983_v0  ;;  %v5716_v0 = vld [vmem:[%s8597_s0 + $0xc74] sm:$0xf0] }
  0xaf   :  { %3169 = vmatpush.bf16.msrb.mxu1 %v5072_v22  ;;  %v5640_v22 = vld [vmem:[%s8597_s0 + $0xa14] sm:$0xf0]  ;;  %vm380_vm0 = vcmp.lt.s32.totalorder %v379_v18, 3136  ;;  %v841_v18 = vunpack.c.l.b16 %v7067_v2 }
  0xb0   :  { %3182 = vmatpush.bf16.msrb.mxu2 %v5136_v23  ;;  %v5048_v23 = vor.u32 %v5658_v9, %v5047_v7  ;;  %v4976_v44 = vor.u32 %v5640_v22, %v4975_v21  ;;  %v381_v60 = vsel %vm380_vm0, %v375_v28, %v5936_v1  ;;  %v3745_v7 = vld [vmem:[%s8597_s0 + $0x78] sm:$0xf0]  ;;  %v5347_v1 = vld [vmem:[%s8597_s0 + $0xf4] sm:$0xf] }
  0xb1   :  { %3195 = vmatpush.bf16.msrb.mxu3 %v5200_v8  ;;  %v5672_v8 = vld [vmem:[%s8597_s0 + $0xb14] sm:$0xf0]  ;;  %v3809_v9 = vld [vmem:[%s8597_s0 + $0xf8] sm:$0xf0] }
  0xb2   :  { %3157 = vmatpush.bf16.msrb.mxu0 %v5000_v31  ;;  %v5176_v31 = vor.u32 %v5690_v20, %v5175_v17  ;;  %v5104_v43 = vor.u32 %v5672_v8, %v5103_v30  ;;  %v839_v17 = vunpack.c.l.b16 %v7057_v61  ;;  %v383_v20 = vpack.c.bf16 0.0, %v381_v60  ;;  %v5271_v8 = vld [vmem:[%s8597_s0 + $0xc60] sm:$0xf] }
  0xb3   :  { %3170 = vmatpush.bf16.msrb.mxu1 %v5064_v34  ;;  %v4967_v34 = vld [vmem:[%s8597_s0 + $0xa00] sm:$0xf]  ;;  %v842_v30 = vunpack.c.h.b16 %v7067_v2 }
  0xb4   :  { %3183 = vmatpush.bf16.msrb.mxu2 %v5128_v37  ;;  %v2929_v37 = vpop.f32.mrf.mxu2  ;;  %v4968_v6 = vor.u32 %v5638_v46, %v4967_v34  ;;  %v3737_v34 = vld [vmem:[%s8597_s0 + $0x68] sm:$0xf0]  ;;  %v7272_v46 = vpack.c.b16 %v839_v17, %v839_v17  ;;  %386 = vst [vmem:[#allocation11 + $0x60] sm:$0xf] %v383_v20 }
  0xb5   :  { %3196 = vmatpush.bf16.msrb.mxu3 %v5192_v55  ;;  %v5654_v55 = vld [vmem:[%s8597_s0 + $0xa84] sm:$0xf0] }
  0xb6   :  { %3158 = vmatpush.bf16.msrb.mxu0 %v4992_v58  ;;  %v5670_v58 = vld [vmem:[%s8597_s0 + $0xb04] sm:$0xf0]  ;;  %v5032_v21 = vor.u32 %v5654_v55, %v5031_v50  ;;  %v7274_v50 = vpack.c.b16 %v841_v18, %v841_v18  ;;  %v3876_v55 = vor.u32 %v5363_v26, %v3873_v27  ;;  %v5359_v18 = vld [vmem:[%s8597_s0 + $0x154] sm:$0xf]  ;;  %v5341_v26 = vld [vmem:[%s8597_s0 + $0xc4] sm:$0xf] }
  0xb7   :  { %3171 = vmatpush.bf16.msrb.mxu1 %v5056_v4  ;;  %v5331_v4 = vld [vmem:[%s8597_s0 + $0x74] sm:$0xf]  ;;  %v5096_v22 = vor.u32 %v5670_v58, %v5095_v56  ;;  %v7284_v58 = vpack.c.b16 %v842_v30, %v842_v30  ;;  %v3785_v27 = vld [vmem:[%s8597_s0 + $0xc8] sm:$0xf0] }
  0xb8   :  { %3184 = vmatpush.bf16.msrb.mxu2 %v5120_v5  ;;  %v5168_v5 = vor.u32 %v5688_v32, %v5167_v36  ;;  %v3748_v25 = vor.u32 %v5331_v4, %v3745_v7  ;;  %v5714_v36 = vld [vmem:[%s8597_s0 + $0xc64] sm:$0xf0]  ;;  %v5329_v32 = vld [vmem:[%s8597_s0 + $0x64] sm:$0xf]  ;;  %v5712_v7 = vld [vmem:[%s8597_s0 + $0xc54] sm:$0xf0] }
  0xb9   :  { %3197 = vmatpush.bf16.msrb.mxu3 %v5184_v14  ;;  %v5686_v14 = vld [vmem:[%s8597_s0 + $0xb84] sm:$0xf0]  ;;  %v5272_v60 = vor.u32 %v5714_v36, %v5271_v8  ;;  %v3740_v4 = vor.u32 %v5329_v32, %v3737_v34  ;;  %v5357_v8 = vld [vmem:[%s8597_s0 + $0x144] sm:$0xf]  ;;  %v3788_v36 = vor.u32 %v5341_v26, %v3785_v27  ;;  %v5247_v32 = vld [vmem:[%s8597_s0 + $0xc30] sm:$0xf] }
  0xba   :  { %3159 = vmatpush.bf16.msrb.mxu0 %v4984_v19  ;;  %v2916_v19 = vpop.f32.mrf.mxu1  ;;  %v5708_v34 = vld [vmem:[%s8597_s0 + $0xc34] sm:$0xf0]  ;;  %v5319_v27 = vld [vmem:[%s8597_s0 + $0x14] sm:$0xf] }
  0xbb   :  { %3172 = vmatpush.bf16.msrb.mxu1 %v5048_v23  ;;  %v840_v23 = vunpack.c.h.b16 %v7057_v61  ;;  %v2917_v28 = vadd.f32 %v2916_v19, %v2904_v12  ;;  %v5160_v61 = vor.u32 %v5686_v14, %v5159_v13  ;;  %v3793_v12 = vld [vmem:[%s8597_s0 + $0xd8] sm:$0xf0]  ;;  %v5704_v26 = vld [vmem:[%s8597_s0 + $0xc14] sm:$0xf0] }
  0xbc   :  { %3185 = vmatpush.bf16.msrb.mxu2 %v5112_v24  ;;  %v5280_v24 = vor.u32 %v5716_v0, %v5279_v62  ;;  %v2931_v2 = vpop.f32.mrf.mxu2  ;;  %v5361_v62 = vld [vmem:[%s8597_s0 + $0x164] sm:$0xf]  ;;  %v3865_v0 = vld [vmem:[%s8597_s0 + $0x168] sm:$0xf0]  ;;  %v3857_v19 = vld [vmem:[%s8597_s0 + $0x158] sm:$0xf0] }
  0xbd   :  { %3198 = vmatpush.bf16.msrb.mxu3 %v5176_v31  ;;  %v3812_v31 = vor.u32 %v5347_v1, %v3809_v9  ;;  %v7282_v56 = vpack.c.b16 %v840_v23, %v840_v23  ;;  %v5327_v1 = vld [vmem:[%s8597_s0 + $0x54] sm:$0xf]  ;;  %v2905_v9 = vpop.f32.mrf.mxu0  ;;  %v3868_v14 = vor.u32 %v5361_v62, %v3865_v0  ;;  %v5710_v23 = vld [vmem:[%s8597_s0 + $0xc44] sm:$0xf0] }
  0xbe   :  { %3160 = vmatpush.bf16.msrb.mxu0 %v4976_v44  ;;  %v2944_v44 = vpop.f32.mrf.mxu3  ;;  %v5323_v2 = vld [vmem:[%s8597_s0 + $0x34] sm:$0xf]  ;;  %v5321_v9 = vld [vmem:[%s8597_s0 + $0x24] sm:$0xf] }
  0xbf   :  { %3173 = vmatpush.bf16.msrb.mxu1 %v5040_v52  ;;  %v3801_v52 = vld [vmem:[%s8597_s0 + $0xe8] sm:$0xf0]  ;;  %v3713_v44 = vld [vmem:[%s8597_s0 + $0x38] sm:$0xf0]  ;;  %v5355_v0 = vld [vmem:[%s8597_s0 + $0x134] sm:$0xf] }
  0xc0   :  { %3186 = vmatpush.bf16.msrb.mxu2 %v5104_v43  ;;  %v2930_v43 = vadd.f32 %v2929_v37, %v2917_v28  ;;  %v3860_v28 = vor.u32 %v5359_v18, %v3857_v19 }
  0xc1   :  { %3199 = vmatpush.bf16.msrb.mxu3 %v5168_v5  ;;  %v3804_v5 = vor.u32 %v5345_v51, %v3801_v52  ;;  %v5339_v51 = vld [vmem:[%s8597_s0 + $0xb4] sm:$0xf]  ;;  %v3777_v52 = vld [vmem:[%s8597_s0 + $0xb8] sm:$0xf0] }
  0xc2   :  { %3161 = vmatpush.bf16.msrb.mxu0 %v4968_v6  ;;  %v2943_v37 = vadd.f32 %v7207_v39, %v2930_v43  ;;  %v5263_v6 = vld [vmem:[%s8597_s0 + $0xc50] sm:$0xf]  ;;  %v3729_v39 = vld [vmem:[%s8597_s0 + $0x58] sm:$0xf0]  ;;  %v2918_v13 = vpop.f32.mrf.mxu1 }
  0xc3   :  { %3174 = vmatpush.bf16.msrb.mxu1 %v5032_v21  ;;  %v5264_v17 = vor.u32 %v5712_v7, %v5263_v6  ;;  %v3732_v20 = vor.u32 %v5327_v1, %v3729_v39  ;;  %v3796_v21 = vor.u32 %v5343_v10, %v3793_v12  ;;  %v3716_v6 = vor.u32 %v5323_v2, %v3713_v44  ;;  %v5239_v1 = vld [vmem:[%s8597_s0 + $0xc20] sm:$0xf]  ;;  %v3705_v10 = vld [vmem:[%s8597_s0 + $0x28] sm:$0xf0]  ;;  %v5337_v12 = vld [vmem:[%s8597_s0 + $0xa4] sm:$0xf] }
  0xc4   :  { %3187 = vmatpush.bf16.msrb.mxu2 %v5096_v22  ;;  %v5255_v22 = vld [vmem:[%s8597_s0 + $0xc40] sm:$0xf]  ;;  %v3780_v7 = vor.u32 %v5339_v51, %v3777_v52  ;;  %v3769_v13 = vld [vmem:[%s8597_s0 + $0xa8] sm:$0xf0]  ;;  %v5702_v51 = vld [vmem:[%s8597_s0 + $0xc04] sm:$0xf0] }
  0xc5   :  { %3200 = vmatpush.bf16.msrb.mxu3 %v5160_v61  ;;  %3162 = vmatmul.bf16.vlgmr.msrb.gmra.mxu0 %v7272_v46  ;;  %v5256_v30 = vor.u32 %v5710_v23, %v5255_v22  ;;  %v3708_v22 = vor.u32 %v5321_v9, %v3705_v10  ;;  %v3772_v23 = vor.u32 %v5337_v12, %v3769_v13  ;;  %v5223_v44 = vld [vmem:[%s8597_s0 + $0xc00] sm:$0xf]  ;;  %v5317_v52 = vld [vmem:[%s8597_s0 + $0x4] sm:$0xf]  ;;  %v5395_v9 = vld [vmem:[%s8597_s0 + $0x274] sm:$0xf] }
  0xc6   :  { %3206 = vmatpush.bf16.msra.mxu0 %v5280_v24  ;;  %3175 = vmatmul.bf16.vlgmr.msrb.gmra.mxu1 %v7282_v56  ;;  %v5325_v24 = vld [vmem:[%s8597_s0 + $0x44] sm:$0xf]  ;;  %v5411_v10 = vld [vmem:[%s8597_s0 + $0x2f4] sm:$0xf]  ;;  %v5224_v12 = vor.u32 %v5702_v51, %v5223_v44  ;;  %v4065_v13 = vld [vmem:[%s8597_s0 + $0x2f8] sm:$0xf0] }
  0xc7   :  { %3219 = vmatpush.bf16.msra.mxu1 %v3748_v25  ;;  %3188 = vmatmul.bf16.vlgmr.msrb.gmra.mxu2 %v7274_v50  ;;  %v3721_v25 = vld [vmem:[%s8597_s0 + $0x48] sm:$0xf0]  ;;  %v5425_v44 = vld [vmem:[%s8597_s0 + $0x364] sm:$0xf] }
  0xc8   :  { %3232 = vmatpush.bf16.msra.mxu2 %v3812_v31  ;;  %3201 = vmatmul.bf16.vlgmr.msrb.gmra.mxu3 %v7284_v58  ;;  %v3849_v31 = vld [vmem:[%s8597_s0 + $0x148] sm:$0xf0]  ;;  %v3724_v61 = vor.u32 %v5325_v24, %v3721_v25  ;;  %v5231_v25 = vld [vmem:[%s8597_s0 + $0xc10] sm:$0xf] }
  0xc9   :  { %3245 = vmatpush.bf16.msra.mxu3 %v3876_v55  ;;  %v3852_v43 = vor.u32 %v5357_v8, %v3849_v31  ;;  %v2955_v55 = vpop.f32.mrf.mxu0  ;;  %v5335_v8 = vld [vmem:[%s8597_s0 + $0x94] sm:$0xf]  ;;  %v3761_v31 = vld [vmem:[%s8597_s0 + $0x98] sm:$0xf0]  ;;  %v5232_v2 = vor.u32 %v5704_v26, %v5231_v25  ;;  %v5377_v26 = vld [vmem:[%s8597_s0 + $0x1e4] sm:$0xf] }
  0xca   :  { %3207 = vmatpush.bf16.msra.mxu0 %v5272_v60  ;;  %v5248_v60 = vor.u32 %v5708_v34, %v5247_v32  ;;  %v2956_v62 = vadd.f32 %v2955_v55, %v2943_v37  ;;  %v5706_v37 = vld [vmem:[%s8597_s0 + $0xc24] sm:$0xf0]  ;;  %v3825_v32 = vld [vmem:[%s8597_s0 + $0x118] sm:$0xf0]  ;;  %v4121_v51 = vld [vmem:[%s8597_s0 + $0x368] sm:$0xf0] }
  0xcb   :  { %3220 = vmatpush.bf16.msra.mxu1 %v3740_v4  ;;  %v3841_v4 = vld [vmem:[%s8597_s0 + $0x138] sm:$0xf0]  ;;  %v5240_v18 = vor.u32 %v5706_v37, %v5239_v1  ;;  %v2994_v24 = vpop.f32.mrf.mxu3 }
  0xcc   :  { %3233 = vmatpush.bf16.msra.mxu2 %v3804_v5  ;;  %v2968_v5 = vpop.f32.mrf.mxu1 }
  0xcd   :  { %3246 = vmatpush.bf16.msra.mxu3 %v3868_v14  ;;  %v2969_v39 = vadd.f32 %v2968_v5, %v2956_v62  ;;  %v2981_v14 = vpop.f32.mrf.mxu2  ;;  %v3689_v62 = vld [vmem:[%s8597_s0 + $0x8] sm:$0xf0] }
  0xce   :  { %3208 = vmatpush.bf16.msra.mxu0 %v5264_v17  ;;  %v3844_v17 = vor.u32 %v5355_v0, %v3841_v4  ;;  %v5333_v0 = vld [vmem:[%s8597_s0 + $0x84] sm:$0xf]  ;;  %v399_v4 = vld [vmem:[#allocation11 + $0x60] sm:$0xf]  ;;  %v3753_v5 = vld [vmem:[%s8597_s0 + $0x88] sm:$0xf0] }
  0xcf   :  { %3221 = vmatpush.bf16.msra.mxu1 %v3732_v20  ;;  %v2982_v19 = vadd.f32 %v2981_v14, %v2969_v39  ;;  %v5353_v20 = vld [vmem:[%s8597_s0 + $0x124] sm:$0xf]  ;;  %v4001_v39 = vld [vmem:[%s8597_s0 + $0x278] sm:$0xf0] }
  0xd0   :  { %3234 = vmatpush.bf16.msra.mxu2 %v3796_v21  ;;  %v3833_v21 = vld [vmem:[%s8597_s0 + $0x128] sm:$0xf0]  ;;  %v5349_v14 = vld [vmem:[%s8597_s0 + $0x104] sm:$0xf]  ;;  %v4004_v25 = vor.u32 %v5395_v9, %v4001_v39 }
  0xd1   :  { %3247 = vmatpush.bf16.msra.mxu3 %v3860_v28  ;;  %v7402_v28 = vadd.f32 %v2994_v24, %v2982_v19  ;;  %v2957_v34 = vpop.f32.mrf.mxu0  ;;  %v3692_v19 = vor.u32 %v5317_v52, %v3689_v62  ;;  %v3921_v62 = vld [vmem:[%s8597_s0 + $0x1d8] sm:$0xf0] }
  0xd2   :  { %3209 = vmatpush.bf16.msra.mxu0 %v5256_v30  ;;  %v3697_v30 = vld [vmem:[%s8597_s0 + $0x18] sm:$0xf0]  ;;  %v5409_v34 = vld [vmem:[%s8597_s0 + $0x2e4] sm:$0xf] }
  0xd3   :  { %3222 = vmatpush.bf16.msra.mxu1 %v3724_v61  ;;  %v3836_v61 = vor.u32 %v5353_v20, %v3833_v21  ;;  %v3700_v55 = vor.u32 %v5319_v27, %v3697_v30  ;;  %v3756_v20 = vor.u32 %v5333_v0, %v3753_v5  ;;  %v5427_v21 = vld [vmem:[%s8597_s0 + $0x374] sm:$0xf]  ;;  %v4068_v27 = vor.u32 %v5411_v10, %v4065_v13  ;;  %v5373_v10 = vld [vmem:[%s8597_s0 + $0x1c4] sm:$0xf]  ;;  %v3913_v13 = vld [vmem:[%s8597_s0 + $0x1c8] sm:$0xf0] }
  0xd4   :  { %3235 = vmatpush.bf16.msra.mxu2 %v3788_v36  ;;  %v5351_v36 = vld [vmem:[%s8597_s0 + $0x114] sm:$0xf]  ;;  %v4124_v5 = vor.u32 %v5425_v44, %v4121_v51 }
  0xd5   :  { %3248 = vmatpush.bf16.msra.mxu3 %v3852_v43  ;;  %v2970_v43 = vpop.f32.mrf.mxu1  ;;  %v2983_v1 = vpop.f32.mrf.mxu2  ;;  %v3828_v37 = vor.u32 %v5351_v36, %v3825_v32  ;;  %v5391_v0 = vld [vmem:[%s8597_s0 + $0x254] sm:$0xf] }
  0xd6   :  { %3210 = vmatpush.bf16.msra.mxu0 %v5248_v60  ;;  %v3764_v60 = vor.u32 %v5335_v8, %v3761_v31  ;;  %v3929_v8 = vld [vmem:[%s8597_s0 + $0x1e8] sm:$0xf0]  ;;  %v5393_v31 = vld [vmem:[%s8597_s0 + $0x264] sm:$0xf]  ;;  %v5423_v1 = vld [vmem:[%s8597_s0 + $0x354] sm:$0xf] }
  0xd7   :  { %3223 = vmatpush.bf16.msra.mxu1 %v3716_v6  ;;  %v5379_v6 = vld [vmem:[%s8597_s0 + $0x1f4] sm:$0xf]  ;;  %v3932_v52 = vor.u32 %v5377_v26, %v3929_v8 }
  0xd8   :  { %3236 = vmatpush.bf16.msra.mxu2 %v3780_v7  ;;  %v3937_v7 = vld [vmem:[%s8597_s0 + $0x1f8] sm:$0xf0] }
  0xd9   :  { %3249 = vmatpush.bf16.msra.mxu3 %v3844_v17  ;;  %v3817_v17 = vld [vmem:[%s8597_s0 + $0x108] sm:$0xf0]  ;;  %v3940_v24 = vor.u32 %v5379_v6, %v3937_v7  ;;  %v5407_v6 = vld [vmem:[%s8597_s0 + $0x2d4] sm:$0xf]  ;;  %v4049_v7 = vld [vmem:[%s8597_s0 + $0x2d8] sm:$0xf0] }
  0xda   :  { %3211 = vmatpush.bf16.msra.mxu0 %v5240_v18  ;;  %v843_v18 = vunpack.c.l.b16 %v399_v4  ;;  %v3820_v30 = vor.u32 %v5349_v14, %v3817_v17  ;;  %v3985_v4 = vld [vmem:[%s8597_s0 + $0x258] sm:$0xf0]  ;;  %v5405_v17 = vld [vmem:[%s8597_s0 + $0x2c4] sm:$0xf] }
  0xdb   :  { %3224 = vmatpush.bf16.msra.mxu1 %v3708_v22  ;;  %v4129_v22 = vld [vmem:[%s8597_s0 + $0x378] sm:$0xf0]  ;;  %v3988_v39 = vor.u32 %v5391_v0, %v3985_v4  ;;  %v3961_v0 = vld [vmem:[%s8597_s0 + $0x228] sm:$0xf0] }
  0xdc   :  { %3237 = vmatpush.bf16.msra.mxu2 %v3772_v23  ;;  %v2996_v23 = vpop.f32.mrf.mxu3  ;;  %v7479_v36 = vpack.c.b16 %v843_v18, %v843_v18  ;;  %v4132_v32 = vor.u32 %v5427_v21, %v4129_v22  ;;  %v4041_v18 = vld [vmem:[%s8597_s0 + $0x2c8] sm:$0xf0]  ;;  %v3916_v22 = vor.u32 %v5373_v10, %v3913_v13 }
  0xdd   :  { %3250 = vmatpush.bf16.msra.mxu3 %v3836_v61  ;;  %v3993_v61 = vld [vmem:[%s8597_s0 + $0x268] sm:$0xf0]  ;;  %v4044_v26 = vor.u32 %v5405_v17, %v4041_v18  ;;  %v3889_v17 = vld [vmem:[%s8597_s0 + $0x198] sm:$0xf0]  ;;  %v5383_v18 = vld [vmem:[%s8597_s0 + $0x214] sm:$0xf] }
  0xde   :  { %3212 = vmatpush.bf16.msra.mxu0 %v5232_v2  ;;  %v4057_v2 = vld [vmem:[%s8597_s0 + $0x2e8] sm:$0xf0]  ;;  %v3996_v43 = vor.u32 %v5393_v31, %v3993_v61  ;;  %v5403_v61 = vld [vmem:[%s8597_s0 + $0x2b4] sm:$0xf] }
  0xdf   :  { %3225 = vmatpush.bf16.msra.mxu1 %v3700_v55  ;;  %v5375_v55 = vld [vmem:[%s8597_s0 + $0x1d4] sm:$0xf]  ;;  %v4105_v21 = vld [vmem:[%s8597_s0 + $0x348] sm:$0xf0] }
  0xe0   :  { %3238 = vmatpush.bf16.msra.mxu2 %v3764_v60  ;;  %v4060_v60 = vor.u32 %v5409_v34, %v4057_v2  ;;  %v3924_v9 = vor.u32 %v5375_v55, %v3921_v62  ;;  %v5419_v34 = vld [vmem:[%s8597_s0 + $0x334] sm:$0xf]  ;;  %v4097_v2 = vld [vmem:[%s8597_s0 + $0x338] sm:$0xf0]  ;;  %v5385_v62 = vld [vmem:[%s8597_s0 + $0x224] sm:$0xf] }
  0xe1   :  { %3251 = vmatpush.bf16.msra.mxu3 %v3828_v37  ;;  %v4113_v37 = vld [vmem:[%s8597_s0 + $0x358] sm:$0xf0]  ;;  %v3964_v13 = vor.u32 %v5385_v62, %v3961_v0 }
  0xe2   :  { %3213 = vmatpush.bf16.msra.mxu0 %v5224_v12  ;;  %v4052_v12 = vor.u32 %v5407_v6, %v4049_v7  ;;  %v4116_v14 = vor.u32 %v5423_v1, %v4113_v37  ;;  %v5401_v6 = vld [vmem:[%s8597_s0 + $0x2a4] sm:$0xf]  ;;  %v4025_v7 = vld [vmem:[%s8597_s0 + $0x2a8] sm:$0xf0] }
  0xe3   :  { %3226 = vmatpush.bf16.msra.mxu1 %v3692_v19  ;;  %v3007_v19 = vpop.f32.mrf.mxu0  ;;  %v5417_v37 = vld [vmem:[%s8597_s0 + $0x324] sm:$0xf] }
  0xe4   :  { %3239 = vmatpush.bf16.msra.mxu2 %v3756_v20  ;;  %v5421_v20 = vld [vmem:[%s8597_s0 + $0x344] sm:$0xf] }
  0xe5   :  { %3252 = vmatpush.bf16.msra.mxu3 %v3820_v30  ;;  %3214 = vmatmul.bf16.vlgmr.msra.gmra.mxu0 %v7479_v36  ;;  %v5387_v30 = vld [vmem:[%s8597_s0 + $0x234] sm:$0xf]  ;;  %v4108_v31 = vor.u32 %v5421_v20, %v4105_v21 }
  0xe6   :  { %3258 = vmatpush.bf16.msrb.mxu0 %v3940_v24  ;;  %3227 = vmatmul.bf16.vlgmr.msra.gmra.mxu1 %v6285_v48  ;;  %v3977_v48 = vld [vmem:[%s8597_s0 + $0x248] sm:$0xf0]  ;;  %v3020_v24 = vpop.f32.mrf.mxu1  ;;  %v5399_v21 = vld [vmem:[%s8597_s0 + $0x294] sm:$0xf] }
  0xe7   :  { %3271 = vmatpush.bf16.msrb.mxu1 %v4004_v25  ;;  %3240 = vmatmul.bf16.vlgmr.msra.gmra.mxu2 %v6287_v49  ;;  %v5389_v49 = vld [vmem:[%s8597_s0 + $0x244] sm:$0xf]  ;;  %v5371_v25 = vld [vmem:[%s8597_s0 + $0x1b4] sm:$0xf] }
  0xe8   :  { %3284 = vmatpush.bf16.msrb.mxu2 %v4068_v27  ;;  %3253 = vmatmul.bf16.vlgmr.msra.gmra.mxu3 %v6220_v15  ;;  %v3008_v15 = vadd.f32 %v3007_v19, %v7402_v28  ;;  %v3980_v23 = vor.u32 %v5389_v49, %v3977_v48  ;;  %v3905_v27 = vld [vmem:[%s8597_s0 + $0x1b8] sm:$0xf0]  ;;  %v5367_v49 = vld [vmem:[%s8597_s0 + $0x194] sm:$0xf] }
  0xe9   :  { %3297 = vmatpush.bf16.msrb.mxu3 %v4132_v32  ;;  %v3969_v28 = vld [vmem:[%s8597_s0 + $0x238] sm:$0xf0]  ;;  %v3908_v44 = vor.u32 %v5371_v25, %v3905_v27  ;;  %v3881_v27 = vld [vmem:[%s8597_s0 + $0x188] sm:$0xf0] }
  0xea   :  { %3259 = vmatpush.bf16.msrb.mxu0 %v3932_v52  ;;  %v3021_v8 = vadd.f32 %v3020_v24, %v3008_v15  ;;  %v4033_v32 = vld [vmem:[%s8597_s0 + $0x2b8] sm:$0xf0]  ;;  %v3972_v51 = vor.u32 %v5387_v30, %v3969_v28  ;;  %v5369_v52 = vld [vmem:[%s8597_s0 + $0x1a4] sm:$0xf]  ;;  %v3033_v55 = vpop.f32.mrf.mxu2  ;;  %v3892_v24 = vor.u32 %v5367_v49, %v3889_v17 }
  0xeb   :  { %3272 = vmatpush.bf16.msrb.mxu1 %v3996_v43  ;;  %v4036_v43 = vor.u32 %v5403_v61, %v4033_v32  ;;  %v3953_v19 = vld [vmem:[%s8597_s0 + $0x218] sm:$0xf0]  ;;  %v5381_v30 = vld [vmem:[%s8597_s0 + $0x204] sm:$0xf]  ;;  %v4009_v61 = vld [vmem:[%s8597_s0 + $0x288] sm:$0xf0] }
  0xec   :  { %3285 = vmatpush.bf16.msrb.mxu2 %v4060_v60  ;;  %v3897_v60 = vld [vmem:[%s8597_s0 + $0x1a8] sm:$0xf0]  ;;  %v3034_v4 = vadd.f32 %v3033_v55, %v3021_v8  ;;  %v4017_v15 = vld [vmem:[%s8597_s0 + $0x298] sm:$0xf0]  ;;  %v3956_v25 = vor.u32 %v5383_v18, %v3953_v19  ;;  %v5457_v49 = vld [vmem:[%s8597_s0 + $0x464] sm:$0xf] }
  0xed   :  { %3298 = vmatpush.bf16.msrb.mxu3 %v4124_v5  ;;  %v4100_v5 = vor.u32 %v5419_v34, %v4097_v2  ;;  %v3046_v1 = vpop.f32.mrf.mxu3  ;;  %v4020_v28 = vor.u32 %v5399_v21, %v4017_v15  ;;  %v3945_v8 = vld [vmem:[%s8597_s0 + $0x208] sm:$0xf0]  ;;  %v5443_v2 = vld [vmem:[%s8597_s0 + $0x3f4] sm:$0xf]  ;;  %v4321_v55 = vld [vmem:[%s8597_s0 + $0x4f8] sm:$0xf0] }
  0xee   :  { %3260 = vmatpush.bf16.msrb.mxu0 %v3924_v9  ;;  %v4089_v9 = vld [vmem:[%s8597_s0 + $0x328] sm:$0xf0]  ;;  %v7594_v10 = vadd.f32 %v3046_v1, %v3034_v4  ;;  %v3022_v48 = vpop.f32.mrf.mxu1  ;;  %v3948_v0 = vor.u32 %v5381_v30, %v3945_v8  ;;  %v5413_v4 = vld [vmem:[%s8597_s0 + $0x304] sm:$0xf]  ;;  %v5491_v1 = vld [vmem:[%s8597_s0 + $0x574] sm:$0xf] }
  0xef   :  { %3273 = vmatpush.bf16.msrb.mxu1 %v3988_v39  ;;  %v3009_v39 = vpop.f32.mrf.mxu0  ;;  %v4092_v20 = vor.u32 %v5417_v37, %v4089_v9  ;;  %v4385_v37 = vld [vmem:[%s8597_s0 + $0x578] sm:$0xf0]  ;;  %v5473_v17 = vld [vmem:[%s8597_s0 + $0x4e4] sm:$0xf]  ;;  %v4313_v18 = vld [vmem:[%s8597_s0 + $0x4e8] sm:$0xf0] }
  0xf0   :  { %3286 = vmatpush.bf16.msrb.mxu2 %v4052_v12  ;;  %v3900_v12 = vor.u32 %v5369_v52, %v3897_v60  ;;  %v4257_v52 = vld [vmem:[%s8597_s0 + $0x478] sm:$0xf0]  ;;  %v4388_v19 = vor.u32 %v5491_v1, %v4385_v37  ;;  %v5489_v21 = vld [vmem:[%s8597_s0 + $0x564] sm:$0xf]  ;;  %v4377_v15 = vld [vmem:[%s8597_s0 + $0x568] sm:$0xf0] }
  0xf1   :  { %3299 = vmatpush.bf16.msrb.mxu3 %v4116_v14  ;;  %v4028_v14 = vor.u32 %v5401_v6, %v4025_v7  ;;  %v5471_v30 = vld [vmem:[%s8597_s0 + $0x4d4] sm:$0xf]  ;;  %v4380_v8 = vor.u32 %v5489_v21, %v4377_v15  ;;  %v4161_v1 = vld [vmem:[%s8597_s0 + $0x3b8] sm:$0xf0]  ;;  %v5449_v21 = vld [vmem:[%s8597_s0 + $0x424] sm:$0xf] }
  0xf2   :  { %3261 = vmatpush.bf16.msrb.mxu0 %v3916_v22  ;;  %v5415_v22 = vld [vmem:[%s8597_s0 + $0x314] sm:$0xf]  ;;  %v3035_v32 = vpop.f32.mrf.mxu2 }
  0xf3   :  { %3274 = vmatpush.bf16.msrb.mxu1 %v3980_v23  ;;  %v4081_v23 = vld [vmem:[%s8597_s0 + $0x318] sm:$0xf0]  ;;  %v5451_v37 = vld [vmem:[%s8597_s0 + $0x434] sm:$0xf] }
  0xf4   :  { %3287 = vmatpush.bf16.msrb.mxu2 %v4044_v26  ;;  %v5365_v26 = vld [vmem:[%s8597_s0 + $0x184] sm:$0xf]  ;;  %v4084_v34 = vor.u32 %v5415_v22, %v4081_v23  ;;  %v4316_v23 = vor.u32 %v5473_v17, %v4313_v18 }
  0xf5   :  { %3300 = vmatpush.bf16.msrb.mxu3 %v4108_v31  ;;  %v5397_v31 = vld [vmem:[%s8597_s0 + $0x284] sm:$0xf]  ;;  %v3048_v60 = vpop.f32.mrf.mxu3  ;;  %v3884_v62 = vor.u32 %v5365_v26, %v3881_v27  ;;  %v5455_v26 = vld [vmem:[%s8597_s0 + $0x454] sm:$0xf]  ;;  %v4241_v27 = vld [vmem:[%s8597_s0 + $0x458] sm:$0xf0] }
  0xf6   :  { %3262 = vmatpush.bf16.msrb.mxu0 %v3908_v44  ;;  %v4193_v44 = vld [vmem:[%s8597_s0 + $0x3f8] sm:$0xf0]  ;;  %v4012_v6 = vor.u32 %v5397_v31, %v4009_v61  ;;  %v4244_v32 = vor.u32 %v5455_v26, %v4241_v27 }
  0xf7   :  { %3275 = vmatpush.bf16.msrb.mxu1 %v3972_v51  ;;  %v5459_v51 = vld [vmem:[%s8597_s0 + $0x474] sm:$0xf]  ;;  %v4196_v7 = vor.u32 %v5443_v2, %v4193_v44  ;;  %v4369_v61 = vld [vmem:[%s8597_s0 + $0x558] sm:$0xf0]  ;;  %v5453_v2 = vld [vmem:[%s8597_s0 + $0x444] sm:$0xf] }
  0xf8   :  { %3288 = vmatpush.bf16.msrb.mxu2 %v4036_v43  ;;  %v5475_v43 = vld [vmem:[%s8597_s0 + $0x4f4] sm:$0xf]  ;;  %v4260_v9 = vor.u32 %v5459_v51, %v4257_v52  ;;  %v4233_v44 = vld [vmem:[%s8597_s0 + $0x448] sm:$0xf0]  ;;  %v5469_v51 = vld [vmem:[%s8597_s0 + $0x4c4] sm:$0xf] }
  0xf9   :  { %3301 = vmatpush.bf16.msrb.mxu3 %v4100_v5  ;;  %v4073_v5 = vld [vmem:[%s8597_s0 + $0x308] sm:$0xf0]  ;;  %v4324_v39 = vor.u32 %v5475_v43, %v4321_v55 }
  0xfa   :  { %3263 = vmatpush.bf16.msrb.mxu0 %v3900_v12  ;;  %v5441_v12 = vld [vmem:[%s8597_s0 + $0x3e4] sm:$0xf]  ;;  %v4076_v48 = vor.u32 %v5413_v4, %v4073_v5  ;;  %v4297_v52 = vld [vmem:[%s8597_s0 + $0x4c8] sm:$0xf0]  ;;  %v4236_v4 = vor.u32 %v5453_v2, %v4233_v44  ;;  %v4209_v44 = vld [vmem:[%s8597_s0 + $0x418] sm:$0xf0] }
  0xfb   :  { %3276 = vmatpush.bf16.msrb.mxu1 %v3964_v13  ;;  %v4185_v13 = vld [vmem:[%s8597_s0 + $0x3e8] sm:$0xf0]  ;;  %v4300_v5 = vor.u32 %v5469_v51, %v4297_v52  ;;  %v5463_v51 = vld [vmem:[%s8597_s0 + $0x494] sm:$0xf]  ;;  %v4273_v52 = vld [vmem:[%s8597_s0 + $0x498] sm:$0xf0] }
  0xfc   :  { %3289 = vmatpush.bf16.msrb.mxu2 %v4028_v14  ;;  %v4249_v14 = vld [vmem:[%s8597_s0 + $0x468] sm:$0xf0] }
  0xfd   :  { %3302 = vmatpush.bf16.msrb.mxu3 %v4092_v20  ;;  %v4188_v20 = vor.u32 %v5441_v12, %v4185_v13  ;;  %v4252_v22 = vor.u32 %v5457_v49, %v4249_v14  ;;  %v4353_v14 = vld [vmem:[%s8597_s0 + $0x538] sm:$0xf0] }
  0xfe   :  { %3264 = vmatpush.bf16.msrb.mxu0 %v3892_v24  ;;  %v5439_v24 = vld [vmem:[%s8597_s0 + $0x3d4] sm:$0xf] }
  0xff   :  { %3277 = vmatpush.bf16.msrb.mxu1 %v3956_v25  ;;  %v4177_v25 = vld [vmem:[%s8597_s0 + $0x3d8] sm:$0xf0] }
 0x100   :  { %3290 = vmatpush.bf16.msrb.mxu2 %v4020_v28  ;;  %v4305_v28 = vld [vmem:[%s8597_s0 + $0x4d8] sm:$0xf0]  ;;  %v4180_v31 = vor.u32 %v5439_v24, %v4177_v25  ;;  %v4281_v24 = vld [vmem:[%s8597_s0 + $0x4a8] sm:$0xf0] }
 0x101   :  { %3303 = vmatpush.bf16.msrb.mxu3 %v4084_v34  ;;  %v4308_v34 = vor.u32 %v5471_v30, %v4305_v28  ;;  %v5481_v28 = vld [vmem:[%s8597_s0 + $0x524] sm:$0xf] }
 0x102   :  { %3265 = vmatpush.bf16.msrb.mxu0 %v3884_v62  ;;  %v3059_v55 = vpop.f32.mrf.mxu0  ;;  %v4361_v62 = vld [vmem:[%s8597_s0 + $0x548] sm:$0xf0] }
 0x103   :  { %3278 = vmatpush.bf16.msrb.mxu1 %v3948_v0  ;;  %v3060_v0 = vadd.f32 %v3059_v55, %v7594_v10  ;;  %v5467_v10 = vld [vmem:[%s8597_s0 + $0x4b4] sm:$0xf] }
 0x104   :  { %3291 = vmatpush.bf16.msrb.mxu2 %v4012_v6  ;;  %v3072_v6 = vpop.f32.mrf.mxu1  ;;  %v5479_v55 = vld [vmem:[%s8597_s0 + $0x514] sm:$0xf] }
 0x105   :  { %3304 = vmatpush.bf16.msrb.mxu3 %v4076_v48  ;;  %3266 = vmatmul.bf16.vlgmr.msrb.gmra.mxu0 %v6222_v16  ;;  %v5487_v16 = vld [vmem:[%s8597_s0 + $0x554] sm:$0xf]  ;;  %v3073_v12 = vadd.f32 %v3072_v6, %v3060_v0  ;;  %v4137_v0 = vld [vmem:[%s8597_s0 + $0x388] sm:$0xf0]  ;;  %v5445_v6 = vld [vmem:[%s8597_s0 + $0x404] sm:$0xf] }
 0x106   :  { %3310 = vmatpush.bf16.msra.mxu0 %v4196_v7  ;;  %3279 = vmatmul.bf16.vlgmr.msrb.gmra.mxu1 %v6413_v53  ;;  %v4169_v53 = vld [vmem:[%s8597_s0 + $0x3c8] sm:$0xf0]  ;;  %v4372_v43 = vor.u32 %v5487_v16, %v4369_v61  ;;  %v5435_v7 = vld [vmem:[%s8597_s0 + $0x3b4] sm:$0xf] }
 0x107   :  { %3323 = vmatpush.bf16.msra.mxu1 %v4260_v9  ;;  %3292 = vmatmul.bf16.vlgmr.msrb.gmra.mxu2 %v6427_v59  ;;  %v5437_v59 = vld [vmem:[%s8597_s0 + $0x3c4] sm:$0xf]  ;;  %v4225_v9 = vld [vmem:[%s8597_s0 + $0x438] sm:$0xf0]  ;;  %v4164_v49 = vor.u32 %v5435_v7, %v4161_v1  ;;  %v5483_v48 = vld [vmem:[%s8597_s0 + $0x534] sm:$0xf] }
 0x108   :  { %3336 = vmatpush.bf16.msra.mxu2 %v4324_v39  ;;  %3305 = vmatmul.bf16.vlgmr.msrb.gmra.mxu3 %v6395_v42  ;;  %v4172_v60 = vor.u32 %v5437_v59, %v4169_v53  ;;  %v5485_v42 = vld [vmem:[%s8597_s0 + $0x544] sm:$0xf]  ;;  %v4289_v39 = vld [vmem:[%s8597_s0 + $0x4b8] sm:$0xf0]  ;;  %v4228_v17 = vor.u32 %v5451_v37, %v4225_v9  ;;  %v4356_v26 = vor.u32 %v5483_v48, %v4353_v14  ;;  %v5447_v53 = vld [vmem:[%s8597_s0 + $0x414] sm:$0xf] }
 0x109   :  { %3349 = vmatpush.bf16.msra.mxu3 %v4388_v19  ;;  %v4364_v13 = vor.u32 %v5485_v42, %v4361_v62  ;;  %v4292_v18 = vor.u32 %v5467_v10, %v4289_v39  ;;  %v5433_v19 = vld [vmem:[%s8597_s0 + $0x3a4] sm:$0xf]  ;;  %v4145_v59 = vld [vmem:[%s8597_s0 + $0x398] sm:$0xf0]  ;;  %v4201_v7 = vld [vmem:[%s8597_s0 + $0x408] sm:$0xf0] }
 0x10a   :  { %3311 = vmatpush.bf16.msra.mxu0 %v4188_v20  ;;  %v4153_v20 = vld [vmem:[%s8597_s0 + $0x3a8] sm:$0xf0]  ;;  %v3085_v15 = vpop.f32.mrf.mxu2  ;;  %v4337_v42 = vld [vmem:[%s8597_s0 + $0x518] sm:$0xf0]  ;;  %v5429_v62 = vld [vmem:[%s8597_s0 + $0x384] sm:$0xf] }
 0x10b   :  { %3324 = vmatpush.bf16.msra.mxu1 %v4252_v22  ;;  %v4217_v22 = vld [vmem:[%s8597_s0 + $0x428] sm:$0xf0]  ;;  %v3086_v25 = vadd.f32 %v3085_v15, %v3073_v12  ;;  %v3098_v27 = vpop.f32.mrf.mxu3  ;;  %v4156_v30 = vor.u32 %v5433_v19, %v4153_v20  ;;  %v5461_v1 = vld [vmem:[%s8597_s0 + $0x484] sm:$0xf]  ;;  %v5507_v9 = vld [vmem:[%s8597_s0 + $0x5f4] sm:$0xf]  ;;  %v4340_v12 = vor.u32 %v5479_v55, %v4337_v42  ;;  %v4140_v14 = vor.u32 %v5429_v62, %v4137_v0 }
 0x10c   :  { %3337 = vmatpush.bf16.msra.mxu2 %v4316_v23  ;;  %v5465_v23 = vld [vmem:[%s8597_s0 + $0x4a4] sm:$0xf]  ;;  %v4220_v61 = vor.u32 %v5449_v21, %v4217_v22  ;;  %v3074_v2 = vpop.f32.mrf.mxu1  ;;  %v4265_v37 = vld [vmem:[%s8597_s0 + $0x488] sm:$0xf0]  ;;  %v4449_v10 = vld [vmem:[%s8597_s0 + $0x5f8] sm:$0xf0]  ;;  %v4204_v21 = vor.u32 %v5445_v6, %v4201_v7 }
 0x10d   :  { %3350 = vmatpush.bf16.msra.mxu3 %v4380_v8  ;;  %v4345_v8 = vld [vmem:[%s8597_s0 + $0x528] sm:$0xf0]  ;;  %v7793_v16 = vadd.f32 %v3098_v27, %v3086_v25  ;;  %v5539_v48 = vld [vmem:[%s8597_s0 + $0x6f4] sm:$0xf]  ;;  %v4268_v15 = vor.u32 %v5461_v1, %v4265_v37  ;;  %v4452_v22 = vor.u32 %v5507_v9, %v4449_v10  ;;  %v4641_v25 = vld [vmem:[%s8597_s0 + $0x778] sm:$0xf0] }
 0x10e   :  { %3312 = vmatpush.bf16.msra.mxu0 %v4180_v31  ;;  %v3061_v31 = vpop.f32.mrf.mxu0  ;;  %v4329_v19 = vld [vmem:[%s8597_s0 + $0x508] sm:$0xf0]  ;;  %v5519_v55 = vld [vmem:[%s8597_s0 + $0x654] sm:$0xf]  ;;  %v4561_v62 = vld [vmem:[%s8597_s0 + $0x6d8] sm:$0xf0] }
 0x10f   :  { %3325 = vmatpush.bf16.msra.mxu1 %v4244_v32  ;;  %v4284_v32 = vor.u32 %v5465_v23, %v4281_v24  ;;  %v5555_v24 = vld [vmem:[%s8597_s0 + $0x774] sm:$0xf]  ;;  %v4505_v31 = vld [vmem:[%s8597_s0 + $0x668] sm:$0xf0]  ;;  %v5517_v7 = vld [vmem:[%s8597_s0 + $0x644] sm:$0xf] }
 0x110   :  { %3338 = vmatpush.bf16.msra.mxu2 %v4308_v34  ;;  %v5431_v34 = vld [vmem:[%s8597_s0 + $0x394] sm:$0xf]  ;;  %v4633_v2 = vld [vmem:[%s8597_s0 + $0x768] sm:$0xf0]  ;;  %v5533_v37 = vld [vmem:[%s8597_s0 + $0x6c4] sm:$0xf] }
 0x111   :  { %3351 = vmatpush.bf16.msra.mxu3 %v4372_v43  ;;  %v4348_v43 = vor.u32 %v5481_v28, %v4345_v8  ;;  %v4441_v28 = vld [vmem:[%s8597_s0 + $0x5e8] sm:$0xf0]  ;;  %v5521_v8 = vld [vmem:[%s8597_s0 + $0x664] sm:$0xf]  ;;  %v5535_v42 = vld [vmem:[%s8597_s0 + $0x6d4] sm:$0xf] }
 0x112   :  { %3313 = vmatpush.bf16.msra.mxu0 %v4172_v60  ;;  %v4148_v60 = vor.u32 %v5431_v34, %v4145_v59  ;;  %v3087_v39 = vpop.f32.mrf.mxu2  ;;  %v4644_v34 = vor.u32 %v5555_v24, %v4641_v25  ;;  %v4564_v6 = vor.u32 %v5535_v42, %v4561_v62  ;;  %v4489_v1 = vld [vmem:[%s8597_s0 + $0x648] sm:$0xf0]  ;;  %v5547_v25 = vld [vmem:[%s8597_s0 + $0x734] sm:$0xf]  ;;  %v4401_v62 = vld [vmem:[%s8597_s0 + $0x598] sm:$0xf0] }
 0x113   :  { %3326 = vmatpush.bf16.msra.mxu1 %v4236_v4  ;;  %v4212_v4 = vor.u32 %v5447_v53, %v4209_v44  ;;  %v3100_v20 = vpop.f32.mrf.mxu3  ;;  %v5553_v53 = vld [vmem:[%s8597_s0 + $0x764] sm:$0xf]  ;;  %v4508_v44 = vor.u32 %v5521_v8, %v4505_v31  ;;  %v4553_v9 = vld [vmem:[%s8597_s0 + $0x6c8] sm:$0xf0]  ;;  %v5495_v42 = vld [vmem:[%s8597_s0 + $0x594] sm:$0xf] }
 0x114   :  { %3339 = vmatpush.bf16.msra.mxu2 %v4300_v5  ;;  %v4276_v5 = vor.u32 %v5463_v51, %v4273_v52  ;;  %v5503_v52 = vld [vmem:[%s8597_s0 + $0x5d4] sm:$0xf]  ;;  %v4636_v0 = vor.u32 %v5553_v53, %v4633_v2  ;;  %v4409_v8 = vld [vmem:[%s8597_s0 + $0x5a8] sm:$0xf0]  ;;  %v5513_v31 = vld [vmem:[%s8597_s0 + $0x624] sm:$0xf] }
 0x115   :  { %3352 = vmatpush.bf16.msra.mxu3 %v4364_v13  ;;  %v5523_v13 = vld [vmem:[%s8597_s0 + $0x674] sm:$0xf] }
 0x116   :  { %3314 = vmatpush.bf16.msra.mxu0 %v4164_v49  ;;  %v4513_v49 = vld [vmem:[%s8597_s0 + $0x678] sm:$0xf0]  ;;  %v5515_v20 = vld [vmem:[%s8597_s0 + $0x634] sm:$0xf] }
 0x117   :  { %3327 = vmatpush.bf16.msra.mxu1 %v4228_v17  ;;  %v4577_v17 = vld [vmem:[%s8597_s0 + $0x6f8] sm:$0xf0]  ;;  %v4516_v23 = vor.u32 %v5523_v13, %v4513_v49  ;;  %v5549_v13 = vld [vmem:[%s8597_s0 + $0x744] sm:$0xf]  ;;  %v4617_v49 = vld [vmem:[%s8597_s0 + $0x748] sm:$0xf0] }
 0x118   :  { %3340 = vmatpush.bf16.msra.mxu2 %v4292_v18  ;;  %v5477_v18 = vld [vmem:[%s8597_s0 + $0x504] sm:$0xf] }
 0x119   :  { %3353 = vmatpush.bf16.msra.mxu3 %v4356_v26  ;;  %v4580_v26 = vor.u32 %v5539_v48, %v4577_v17  ;;  %v4332_v27 = vor.u32 %v5477_v18, %v4329_v19  ;;  %v4492_v48 = vor.u32 %v5517_v7, %v4489_v1  ;;  %v5499_v18 = vld [vmem:[%s8597_s0 + $0x5b4] sm:$0xf]  ;;  %v4417_v19 = vld [vmem:[%s8597_s0 + $0x5b8] sm:$0xf0]  ;;  %v5493_v1 = vld [vmem:[%s8597_s0 + $0x584] sm:$0xf] }
 0x11a   :  { %3315 = vmatpush.bf16.msra.mxu0 %v4156_v30  ;;  %v5505_v30 = vld [vmem:[%s8597_s0 + $0x5e4] sm:$0xf]  ;;  %v4420_v24 = vor.u32 %v5499_v18, %v4417_v19  ;;  %v4593_v7 = vld [vmem:[%s8597_s0 + $0x718] sm:$0xf0] }
 0x11b   :  { %3328 = vmatpush.bf16.msra.mxu1 %v4220_v61  ;;  %v5537_v61 = vld [vmem:[%s8597_s0 + $0x6e4] sm:$0xf]  ;;  %v4444_v59 = vor.u32 %v5505_v30, %v4441_v28  ;;  %v4705_v18 = vld [vmem:[%s8597_s0 + $0x7f8] sm:$0xf0] }
 0x11c   :  { %3341 = vmatpush.bf16.msra.mxu2 %v4284_v32  ;;  %v4569_v32 = vld [vmem:[%s8597_s0 + $0x6e8] sm:$0xf0]  ;;  %v5497_v28 = vld [vmem:[%s8597_s0 + $0x5a4] sm:$0xf] }
 0x11d   :  { %3354 = vmatpush.bf16.msra.mxu3 %v4348_v43  ;;  %v4572_v51 = vor.u32 %v5537_v61, %v4569_v32  ;;  %v4433_v43 = vld [vmem:[%s8597_s0 + $0x5d8] sm:$0xf0]  ;;  %v4473_v32 = vld [vmem:[%s8597_s0 + $0x628] sm:$0xf0] }
 0x11e   :  { %3316 = vmatpush.bf16.msra.mxu0 %v4148_v60  ;;  %v4497_v60 = vld [vmem:[%s8597_s0 + $0x658] sm:$0xf0] }
 0x11f   :  { %3329 = vmatpush.bf16.msra.mxu1 %v4212_v4  ;;  %v4625_v4 = vld [vmem:[%s8597_s0 + $0x758] sm:$0xf0] }
 0x120   :  { %3342 = vmatpush.bf16.msra.mxu2 %v4276_v5  ;;  %v4500_v5 = vor.u32 %v5519_v55, %v4497_v60  ;;  %v4476_v55 = vor.u32 %v5513_v31, %v4473_v32  ;;  %v5619_v32 = vld [vmem:[%s8597_s0 + $0x974] sm:$0xf] }
 0x121   :  { %3355 = vmatpush.bf16.msra.mxu3 %v4340_v12 }
 0x122   :  { %3317 = vmatpush.bf16.msra.mxu0 %v4140_v14  ;;  %v7937_v39 = vpop.f32.mrf.mxu0  ;;  %v4556_v14 = vor.u32 %v5533_v37, %v4553_v9  ;;  %v4393_v37 = vld [vmem:[%s8597_s0 + $0x588] sm:$0xf0] }
 0x123   :  { %3330 = vmatpush.bf16.msra.mxu1 %v4204_v21  ;;  %v7945_v17 = vpop.f32.mrf.mxu1  ;;  %v4481_v21 = vld [vmem:[%s8597_s0 + $0x638] sm:$0xf0] }
 0x124   :  { %3343 = vmatpush.bf16.msra.mxu2 %v4268_v15  ;;  %v5531_v15 = vld [vmem:[%s8597_s0 + $0x6b4] sm:$0xf] }
 0x125   :  { %3356 = vmatpush.bf16.msra.mxu3 %v4332_v27  ;;  %3318 = vmatmul.bf16.vlgmr.msra.gmra.mxu0 %v6415_v54  ;;  %v4436_v54 = vor.u32 %v5503_v52, %v4433_v43  ;;  %v4484_v27 = vor.u32 %v5515_v20, %v4481_v21  ;;  %v4601_v52 = vld [vmem:[%s8597_s0 + $0x728] sm:$0xf0]  ;;  %v5587_v21 = vld [vmem:[%s8597_s0 + $0x874] sm:$0xf] }
 0x126   :  { %3362 = vmatpush.bf16.msrb.mxu0 %v4452_v22  ;;  %3331 = vmatmul.bf16.vlgmr.msra.gmra.mxu1 %v6608_v11  ;;  %v5501_v11 = vld [vmem:[%s8597_s0 + $0x5c4] sm:$0xf]  ;;  %v4545_v22 = vld [vmem:[%s8597_s0 + $0x6b8] sm:$0xf0] }
 0x127   :  { %3375 = vmatpush.bf16.msrb.mxu1 %v4516_v23  ;;  %3344 = vmatmul.bf16.vlgmr.msra.gmra.mxu2 %v6623_v38  ;;  %v5551_v38 = vld [vmem:[%s8597_s0 + $0x754] sm:$0xf]  ;;  %v4620_v23 = vor.u32 %v5549_v13, %v4617_v49  ;;  %v4548_v30 = vor.u32 %v5531_v15, %v4545_v22  ;;  %v4457_v13 = vld [vmem:[%s8597_s0 + $0x608] sm:$0xf0]  ;;  %v5525_v49 = vld [vmem:[%s8597_s0 + $0x684] sm:$0xf] }
 0x128   :  { %3388 = vmatpush.bf16.msrb.mxu2 %v4580_v26  ;;  %3357 = vmatmul.bf16.vlgmr.msra.gmra.mxu3 %v6610_v33  ;;  %v4425_v33 = vld [vmem:[%s8597_s0 + $0x5c8] sm:$0xf0]  ;;  %v4628_v10 = vor.u32 %v5551_v38, %v4625_v4  ;;  %v4609_v26 = vld [vmem:[%s8597_s0 + $0x738] sm:$0xf0]  ;;  %v5527_v4 = vld [vmem:[%s8597_s0 + $0x694] sm:$0xf] }
 0x129   :  { %3401 = vmatpush.bf16.msrb.mxu3 %v4644_v34  ;;  %v4428_v12 = vor.u32 %v5501_v11, %v4425_v33  ;;  %v5529_v34 = vld [vmem:[%s8597_s0 + $0x6a4] sm:$0xf]  ;;  %v4612_v53 = vor.u32 %v5547_v25, %v4609_v26  ;;  %v4465_v38 = vld [vmem:[%s8597_s0 + $0x618] sm:$0xf0]  ;;  %v5543_v11 = vld [vmem:[%s8597_s0 + $0x714] sm:$0xf]  ;;  %v4404_v33 = vor.u32 %v5495_v42, %v4401_v62 }
 0x12a   :  { %3363 = vmatpush.bf16.msrb.mxu0 %v4444_v59  ;;  %v7980_v61 = vpop.f32.mrf.mxu2  ;;  %v4537_v59 = vld [vmem:[%s8597_s0 + $0x6a8] sm:$0xf0]  ;;  %v3113_v43 = vpop.f32.mrf.mxu0  ;;  %v4596_v20 = vor.u32 %v5543_v11, %v4593_v7  ;;  %v4769_v15 = vld [vmem:[%s8597_s0 + $0x878] sm:$0xf0]  ;;  %v5603_v22 = vld [vmem:[%s8597_s0 + $0x8f4] sm:$0xf] }
 0x12b   :  { %3376 = vmatpush.bf16.msrb.mxu1 %v4508_v44  ;;  %v7991_v2 = vpop.f32.mrf.mxu3  ;;  %v4412_v44 = vor.u32 %v5497_v28, %v4409_v8  ;;  %v4540_v60 = vor.u32 %v5529_v34, %v4537_v59  ;;  %v5541_v25 = vld [vmem:[%s8597_s0 + $0x704] sm:$0xf]  ;;  %v4585_v26 = vld [vmem:[%s8597_s0 + $0x708] sm:$0xf0]  ;;  %v4772_v31 = vor.u32 %v5587_v21, %v4769_v15  ;;  %v4897_v34 = vld [vmem:[%s8597_s0 + $0x978] sm:$0xf0] }
 0x12c   :  { %3389 = vmatpush.bf16.msrb.mxu2 %v4572_v51  ;;  %v5545_v51 = vld [vmem:[%s8597_s0 + $0x724] sm:$0xf]  ;;  %v4761_v43 = vld [vmem:[%s8597_s0 + $0x868] sm:$0xf0]  ;;  %v4900_v42 = vor.u32 %v5619_v32, %v4897_v34  ;;  %v5583_v11 = vld [vmem:[%s8597_s0 + $0x854] sm:$0xf] }
 0x12d   :  { %3402 = vmatpush.bf16.msrb.mxu3 %v4636_v0  ;;  %v5511_v0 = vld [vmem:[%s8597_s0 + $0x614] sm:$0xf]  ;;  %v5613_v21 = vld [vmem:[%s8597_s0 + $0x944] sm:$0xf]  ;;  %v4873_v15 = vld [vmem:[%s8597_s0 + $0x948] sm:$0xf0] }
 0x12e   :  { %3364 = vmatpush.bf16.msrb.mxu0 %v4436_v54  ;;  %v3126_v54 = vpop.f32.mrf.mxu1  ;;  %v4468_v9 = vor.u32 %v5511_v0, %v4465_v38  ;;  %v5617_v0 = vld [vmem:[%s8597_s0 + $0x964] sm:$0xf]  ;;  %v5599_v7 = vld [vmem:[%s8597_s0 + $0x8d4] sm:$0xf] }
 0x12f   :  { %3377 = vmatpush.bf16.msrb.mxu1 %v4500_v5  ;;  %v4529_v5 = vld [vmem:[%s8597_s0 + $0x698] sm:$0xf0]  ;;  %v4889_v54 = vld [vmem:[%s8597_s0 + $0x968] sm:$0xf0]  ;;  %v5611_v34 = vld [vmem:[%s8597_s0 + $0x934] sm:$0xf] }
 0x130   :  { %3390 = vmatpush.bf16.msrb.mxu2 %v4564_v6  ;;  %v4604_v6 = vor.u32 %v5545_v51, %v4601_v52  ;;  %v4697_v51 = vld [vmem:[%s8597_s0 + $0x7e8] sm:$0xf0]  ;;  %v5585_v52 = vld [vmem:[%s8597_s0 + $0x864] sm:$0xf] }
 0x131   :  { %3403 = vmatpush.bf16.msrb.mxu3 %v4628_v10  ;;  %v4532_v10 = vor.u32 %v5527_v4, %v4529_v5  ;;  %v4764_v38 = vor.u32 %v5585_v52, %v4761_v43  ;;  %v5567_v5 = vld [vmem:[%s8597_s0 + $0x7d4] sm:$0xf]  ;;  %v4665_v52 = vld [vmem:[%s8597_s0 + $0x7a8] sm:$0xf0]  ;;  %v5577_v43 = vld [vmem:[%s8597_s0 + $0x824] sm:$0xf] }
 0x132   :  { %3365 = vmatpush.bf16.msrb.mxu0 %v4428_v12  ;;  %v5509_v12 = vld [vmem:[%s8597_s0 + $0x604] sm:$0xf]  ;;  %v3139_v19 = vpop.f32.mrf.mxu2 }
 0x133   :  { %3378 = vmatpush.bf16.msrb.mxu1 %v4492_v48  ;;  %v4521_v48 = vld [vmem:[%s8597_s0 + $0x688] sm:$0xf0] }
 0x134   :  { %3391 = vmatpush.bf16.msrb.mxu2 %v4556_v14  ;;  %v5571_v14 = vld [vmem:[%s8597_s0 + $0x7f4] sm:$0xf]  ;;  %v4524_v28 = vor.u32 %v5525_v49, %v4521_v48  ;;  %v4745_v49 = vld [vmem:[%s8597_s0 + $0x848] sm:$0xf0]  ;;  %v5597_v48 = vld [vmem:[%s8597_s0 + $0x8c4] sm:$0xf] }
 0x135   :  { %3404 = vmatpush.bf16.msrb.mxu3 %v4620_v23  ;;  %v4396_v23 = vor.u32 %v5493_v1, %v4393_v37  ;;  %v4708_v8 = vor.u32 %v5571_v14, %v4705_v18  ;;  %v4817_v1 = vld [vmem:[%s8597_s0 + $0x8d8] sm:$0xf0]  ;;  %v4892_v37 = vor.u32 %v5617_v0, %v4889_v54  ;;  %v4809_v14 = vld [vmem:[%s8597_s0 + $0x8c8] sm:$0xf0]  ;;  %v3112_v0 = vadd.f32 %v7937_v39, %v7793_v16  ;;  %v5559_v16 = vld [vmem:[%s8597_s0 + $0x794] sm:$0xf] }
 0x136   :  { %3366 = vmatpush.bf16.msrb.mxu0 %v4420_v24  ;;  %v4833_v24 = vld [vmem:[%s8597_s0 + $0x8f8] sm:$0xf0] }
 0x137   :  { %3379 = vmatpush.bf16.msrb.mxu1 %v4484_v27  ;;  %v3152_v27 = vpop.f32.mrf.mxu3  ;;  %v4836_v59 = vor.u32 %v5603_v22, %v4833_v24  ;;  %v4657_v39 = vld [vmem:[%s8597_s0 + $0x798] sm:$0xf0] }
 0x138   :  { %3392 = vmatpush.bf16.msrb.mxu2 %v4548_v30  ;;  %v4460_v30 = vor.u32 %v5509_v12, %v4457_v13  ;;  %v4820_v12 = vor.u32 %v5599_v7, %v4817_v1  ;;  %v5581_v13 = vld [vmem:[%s8597_s0 + $0x844] sm:$0xf]  ;;  %v5579_v27 = vld [vmem:[%s8597_s0 + $0x834] sm:$0xf] }
 0x139   :  { %3405 = vmatpush.bf16.msrb.mxu3 %v4612_v53  ;;  %v4588_v53 = vor.u32 %v5541_v25, %v4585_v26  ;;  %v4748_v22 = vor.u32 %v5581_v13, %v4745_v49  ;;  %v5563_v25 = vld [vmem:[%s8597_s0 + $0x7b4] sm:$0xf]  ;;  %v4673_v26 = vld [vmem:[%s8597_s0 + $0x7b8] sm:$0xf0]  ;;  %v5557_v49 = vld [vmem:[%s8597_s0 + $0x784] sm:$0xf] }
 0x13a   :  { %3367 = vmatpush.bf16.msrb.mxu0 %v4412_v44  ;;  %v5569_v44 = vld [vmem:[%s8597_s0 + $0x7e4] sm:$0xf]  ;;  %v4676_v32 = vor.u32 %v5563_v25, %v4673_v26  ;;  %v5575_v1 = vld [vmem:[%s8597_s0 + $0x814] sm:$0xf]  ;;  %v4849_v13 = vld [vmem:[%s8597_s0 + $0x918] sm:$0xf0] }
 0x13b   :  { %3380 = vmatpush.bf16.msrb.mxu1 %v4476_v55  ;;  %v5601_v55 = vld [vmem:[%s8597_s0 + $0x8e4] sm:$0xf]  ;;  %v4700_v62 = vor.u32 %v5569_v44, %v4697_v51 }
 0x13c   :  { %3393 = vmatpush.bf16.msrb.mxu2 %v4540_v60  ;;  %v4825_v60 = vld [vmem:[%s8597_s0 + $0x8e8] sm:$0xf0]  ;;  %v5561_v51 = vld [vmem:[%s8597_s0 + $0x7a4] sm:$0xf] }
 0x13d   :  { %3406 = vmatpush.bf16.msrb.mxu3 %v4604_v6  ;;  %v4828_v4 = vor.u32 %v5601_v55, %v4825_v60  ;;  %v4689_v6 = vld [vmem:[%s8597_s0 + $0x7d8] sm:$0xf0]  ;;  %v4729_v60 = vld [vmem:[%s8597_s0 + $0x828] sm:$0xf0] }
 0x13e   :  { %3368 = vmatpush.bf16.msrb.mxu0 %v4404_v33  ;;  %v4753_v33 = vld [vmem:[%s8597_s0 + $0x858] sm:$0xf0] }
 0x13f   :  { %3381 = vmatpush.bf16.msrb.mxu1 %v4468_v9  ;;  %v4881_v9 = vld [vmem:[%s8597_s0 + $0x958] sm:$0xf0] }
 0x140   :  { %3394 = vmatpush.bf16.msrb.mxu2 %v4532_v10  ;;  %v4756_v10 = vor.u32 %v5583_v11, %v4753_v33  ;;  %v4732_v33 = vor.u32 %v5577_v43, %v4729_v60  ;;  %v5683_v60 = vld [vmem:[%s8597_s0 + $0xb74] sm:$0xf] }
 0x141   :  { %3407 = vmatpush.bf16.msrb.mxu3 %v4596_v20 }
 0x142   :  { %3369 = vmatpush.bf16.msrb.mxu0 %v4396_v23  ;;  %v8141_v19 = vpop.f32.mrf.mxu0  ;;  %v4812_v23 = vor.u32 %v5597_v48, %v4809_v14 }
 0x143   :  { %3382 = vmatpush.bf16.msrb.mxu1 %v4460_v30  ;;  %v8149_v24 = vpop.f32.mrf.mxu1  ;;  %v4737_v30 = vld [vmem:[%s8597_s0 + $0x838] sm:$0xf0] }
 0x144   :  { %3395 = vmatpush.bf16.msrb.mxu2 %v4524_v28  ;;  %v5595_v28 = vld [vmem:[%s8597_s0 + $0x8b4] sm:$0xf] }
 0x145   :  { %3408 = vmatpush.bf16.msrb.mxu3 %v4588_v53  ;;  %3370 = vmatmul.bf16.vlgmr.msrb.gmra.mxu0 %v6633_v41  ;;  %v4692_v41 = vor.u32 %v5567_v5, %v4689_v6  ;;  %v4740_v53 = vor.u32 %v5579_v27, %v4737_v30  ;;  %v5609_v5 = vld [vmem:[%s8597_s0 + $0x924] sm:$0xf]  ;;  %v4857_v6 = vld [vmem:[%s8597_s0 + $0x928] sm:$0xf0]  ;;  %v5651_v27 = vld [vmem:[%s8597_s0 + $0xa74] sm:$0xf] }
 0x146   :  { %3414 = vmatpush.bf16.msra.mxu0 %v4708_v8  ;;  %3383 = vmatmul.bf16.vlgmr.msrb.gmra.mxu1 %v6826_v40  ;;  %v5565_v40 = vld [vmem:[%s8597_s0 + $0x7c4] sm:$0xf]  ;;  %v4801_v8 = vld [vmem:[%s8597_s0 + $0x8b8] sm:$0xf0] }
 0x147   :  { %3427 = vmatpush.bf16.msra.mxu1 %v4772_v31  ;;  %3396 = vmatmul.bf16.vlgmr.msrb.gmra.mxu2 %v6841_v45  ;;  %v5615_v45 = vld [vmem:[%s8597_s0 + $0x954] sm:$0xf]  ;;  %v4876_v31 = vor.u32 %v5613_v21, %v4873_v15  ;;  %v4804_v44 = vor.u32 %v5595_v28, %v4801_v8  ;;  %v4713_v21 = vld [vmem:[%s8597_s0 + $0x808] sm:$0xf0]  ;;  %v5589_v15 = vld [vmem:[%s8597_s0 + $0x884] sm:$0xf] }
 0x148   :  { %3440 = vmatpush.bf16.msra.mxu2 %v4836_v59  ;;  %3409 = vmatmul.bf16.vlgmr.msrb.gmra.mxu3 %v6828_v35  ;;  %v4681_v35 = vld [vmem:[%s8597_s0 + $0x7c8] sm:$0xf0]  ;;  %v4884_v18 = vor.u32 %v5615_v45, %v4881_v9  ;;  %v4865_v59 = vld [vmem:[%s8597_s0 + $0x938] sm:$0xf0]  ;;  %v5591_v45 = vld [vmem:[%s8597_s0 + $0x894] sm:$0xf] }
 0x149   :  { %3453 = vmatpush.bf16.msra.mxu3 %v4900_v42  ;;  %v4684_v20 = vor.u32 %v5565_v40, %v4681_v35  ;;  %v5593_v42 = vld [vmem:[%s8597_s0 + $0x8a4] sm:$0xf]  ;;  %v4868_v54 = vor.u32 %v5611_v34, %v4865_v59  ;;  %v4785_v9 = vld [vmem:[%s8597_s0 + $0x898] sm:$0xf0]  ;;  %v5607_v40 = vld [vmem:[%s8597_s0 + $0x914] sm:$0xf]  ;;  %v4660_v35 = vor.u32 %v5559_v16, %v4657_v39 }
 0x14a   :  { %3415 = vmatpush.bf16.msra.mxu0 %v4700_v62  ;;  %v8184_v55 = vpop.f32.mrf.mxu2  ;;  %v4793_v62 = vld [vmem:[%s8597_s0 + $0x8a8] sm:$0xf0]  ;;  %v3165_v11 = vpop.f32.mrf.mxu0  ;;  %v4852_v26 = vor.u32 %v5607_v40, %v4849_v13  ;;  %v5025_v30 = vld [vmem:[%s8597_s0 + $0xa78] sm:$0xf0]  ;;  %v5667_v28 = vld [vmem:[%s8597_s0 + $0xaf4] sm:$0xf] }
 0x14b   :  { %3428 = vmatpush.bf16.msra.mxu1 %v4764_v38  ;;  %v8197_v38 = vpop.f32.mrf.mxu3  ;;  %v4796_v7 = vor.u32 %v5593_v42, %v4793_v62  ;;  %v4841_v34 = vld [vmem:[%s8597_s0 + $0x908] sm:$0xf0]  ;;  %v5028_v43 = vor.u32 %v5651_v27, %v5025_v30  ;;  %v5153_v42 = vld [vmem:[%s8597_s0 + $0xb78] sm:$0xf0]  ;;  %v5681_v16 = vld [vmem:[%s8597_s0 + $0xb64] sm:$0xf] }
 0x14c   :  { %3441 = vmatpush.bf16.msra.mxu2 %v4828_v4  ;;  %v4668_v4 = vor.u32 %v5561_v51, %v4665_v52  ;;  %v5081_v11 = vld [vmem:[%s8597_s0 + $0xae8] sm:$0xf0]  ;;  %v5073_v40 = vld [vmem:[%s8597_s0 + $0xad8] sm:$0xf0]  ;;  %v5679_v13 = vld [vmem:[%s8597_s0 + $0xb54] sm:$0xf] }
 0x14d   :  { %3454 = vmatpush.bf16.msra.mxu3 %v4892_v37  ;;  %v3178_v37 = vpop.f32.mrf.mxu1  ;;  %v5145_v39 = vld [vmem:[%s8597_s0 + $0xb68] sm:$0xf0] }
 0x14e   :  { %3416 = vmatpush.bf16.msra.mxu0 %v4692_v41  ;;  %v4721_v41 = vld [vmem:[%s8597_s0 + $0x818] sm:$0xf0] }
 0x14f   :  { %3429 = vmatpush.bf16.msra.mxu1 %v4756_v10  ;;  %v3125_v10 = vadd.f32 %v7945_v17, %v3112_v0  ;;  %v4649_v17 = vld [vmem:[%s8597_s0 + $0x788] sm:$0xf0]  ;;  %v4724_v14 = vor.u32 %v5575_v1, %v4721_v41 }
 0x150   :  { %3442 = vmatpush.bf16.msra.mxu2 %v4820_v12  ;;  %v4860_v12 = vor.u32 %v5609_v5, %v4857_v6  ;;  %v4652_v8 = vor.u32 %v5557_v49, %v4649_v17  ;;  %v5649_v5 = vld [vmem:[%s8597_s0 + $0xa64] sm:$0xf]  ;;  %v5137_v49 = vld [vmem:[%s8597_s0 + $0xb58] sm:$0xf0] }
 0x151   :  { %3455 = vmatpush.bf16.msra.mxu3 %v4884_v18  ;;  %v3138_v48 = vadd.f32 %v7980_v61, %v3125_v10  ;;  %v4788_v18 = vor.u32 %v5591_v45, %v4785_v9  ;;  %v4777_v61 = vld [vmem:[%s8597_s0 + $0x888] sm:$0xf0]  ;;  %v5665_v6 = vld [vmem:[%s8597_s0 + $0xae4] sm:$0xf]  ;;  %v5631_v45 = vld [vmem:[%s8597_s0 + $0x9d4] sm:$0xf] }
 0x152   :  { %3417 = vmatpush.bf16.msra.mxu0 %v4684_v20  ;;  %v5573_v20 = vld [vmem:[%s8597_s0 + $0x804] sm:$0xf]  ;;  %v3191_v25 = vpop.f32.mrf.mxu2  ;;  %v4780_v51 = vor.u32 %v5589_v15, %v4777_v61  ;;  %v5084_v41 = vor.u32 %v5665_v6, %v5081_v11  ;;  %v4945_v9 = vld [vmem:[%s8597_s0 + $0x9d8] sm:$0xf0]  ;;  %v5647_v10 = vld [vmem:[%s8597_s0 + $0xa54] sm:$0xf]  ;;  %v5140_v15 = vor.u32 %v5679_v13, %v5137_v49 }
 0x153   :  { %3430 = vmatpush.bf16.msra.mxu1 %v4748_v22  ;;  %v5635_v22 = vld [vmem:[%s8597_s0 + $0x9f4] sm:$0xf]  ;;  %v3204_v59 = vpop.f32.mrf.mxu3  ;;  %v5129_v25 = vld [vmem:[%s8597_s0 + $0xb48] sm:$0xf0] }
 0x154   :  { %3443 = vmatpush.bf16.msra.mxu2 %v4812_v23  ;;  %v4961_v23 = vld [vmem:[%s8597_s0 + $0x9f8] sm:$0xf0]  ;;  %v5049_v6 = vld [vmem:[%s8597_s0 + $0xaa8] sm:$0xf0] }
 0x155   :  { %3456 = vmatpush.bf16.msra.mxu3 %v4876_v31  ;;  %v5089_v31 = vld [vmem:[%s8597_s0 + $0xaf8] sm:$0xf0]  ;;  %v4964_v52 = vor.u32 %v5635_v22, %v4961_v23  ;;  %v5677_v23 = vld [vmem:[%s8597_s0 + $0xb44] sm:$0xf] }
 0x156   :  { %3418 = vmatpush.bf16.msra.mxu0 %v4676_v32  ;;  %v5605_v32 = vld [vmem:[%s8597_s0 + $0x904] sm:$0xf]  ;;  %v5092_v0 = vor.u32 %v5667_v28, %v5089_v31  ;;  %v4929_v31 = vld [vmem:[%s8597_s0 + $0x9b8] sm:$0xf0] }
 0x157   :  { %3431 = vmatpush.bf16.msra.mxu1 %v4740_v53  ;;  %v3151_v53 = vadd.f32 %v7991_v2, %v3138_v48  ;;  %v5633_v2 = vld [vmem:[%s8597_s0 + $0x9e4] sm:$0xf]  ;;  %v4993_v59 = vld [vmem:[%s8597_s0 + $0xa38] sm:$0xf0] }
 0x158   :  { %3444 = vmatpush.bf16.msra.mxu2 %v4804_v44  ;;  %v4716_v44 = vor.u32 %v5573_v20, %v4713_v21  ;;  %v5645_v48 = vld [vmem:[%s8597_s0 + $0xa44] sm:$0xf]  ;;  %v5065_v20 = vld [vmem:[%s8597_s0 + $0xac8] sm:$0xf0] }
 0x159   :  { %3457 = vmatpush.bf16.msra.mxu3 %v4868_v54  ;;  %v3164_v62 = vadd.f32 %v8141_v19, %v3151_v53  ;;  %v4844_v54 = vor.u32 %v5605_v32, %v4841_v34  ;;  %v5017_v19 = vld [vmem:[%s8597_s0 + $0xa68] sm:$0xf0]  ;;  %v5643_v32 = vld [vmem:[%s8597_s0 + $0xa34] sm:$0xf] }
 0x15a   :  { %3419 = vmatpush.bf16.msra.mxu0 %v4668_v4  ;;  %v4953_v4 = vld [vmem:[%s8597_s0 + $0x9e8] sm:$0xf0]  ;;  %v5020_v37 = vor.u32 %v5649_v5, %v5017_v19  ;;  %v5659_v53 = vld [vmem:[%s8597_s0 + $0xab4] sm:$0xf]  ;;  %v5657_v19 = vld [vmem:[%s8597_s0 + $0xaa4] sm:$0xf] }
 0x15b   :  { %3432 = vmatpush.bf16.msra.mxu1 %v4732_v33  ;;  %v5156_v33 = vor.u32 %v5683_v60, %v5153_v42  ;;  %v3177_v1 = vadd.f32 %v8149_v24, %v3164_v62  ;;  %v5009_v24 = vld [vmem:[%s8597_s0 + $0xa58] sm:$0xf0]  ;;  %v4996_v62 = vor.u32 %v5643_v32, %v4993_v59  ;;  %v4985_v5 = vld [vmem:[%s8597_s0 + $0xa28] sm:$0xf0] }
 0x15c   :  { %3445 = vmatpush.bf16.msra.mxu2 %v4796_v7  ;;  %v4956_v7 = vor.u32 %v5633_v2, %v4953_v4  ;;  %v5012_v17 = vor.u32 %v5647_v10, %v5009_v24  ;;  %v5121_v60 = vld [vmem:[%s8597_s0 + $0xb38] sm:$0xf0]  ;;  %v4921_v2 = vld [vmem:[%s8597_s0 + $0x9a8] sm:$0xf0]  ;;  %v5641_v4 = vld [vmem:[%s8597_s0 + $0xa24] sm:$0xf] }
 0x15d   :  { %3458 = vmatpush.bf16.msra.mxu3 %v4860_v12  ;;  %v5663_v12 = vld [vmem:[%s8597_s0 + $0xad4] sm:$0xf]  ;;  %v4913_v10 = vld [vmem:[%s8597_s0 + $0x998] sm:$0xf0] }
 0x15e   :  { %3420 = vmatpush.bf16.msra.mxu0 %v4660_v35  ;;  %v3190_v35 = vadd.f32 %v8184_v55, %v3177_v1  ;;  %v5076_v55 = vor.u32 %v5663_v12, %v5073_v40  ;;  %v5639_v24 = vld [vmem:[%s8597_s0 + $0xa14] sm:$0xf] }
 0x15f   :  { %3433 = vmatpush.bf16.msra.mxu1 %v4724_v14  ;;  %v5001_v14 = vld [vmem:[%s8597_s0 + $0xa48] sm:$0xf0] }
 0x160   :  { %3446 = vmatpush.bf16.msra.mxu2 %v4788_v18  ;;  %v5661_v18 = vld [vmem:[%s8597_s0 + $0xac4] sm:$0xf]  ;;  %v3203_v21 = vadd.f32 %v8197_v38, %v3190_v35  ;;  %v5004_v30 = vor.u32 %v5645_v48, %v5001_v14  ;;  %v4977_v35 = vld [vmem:[%s8597_s0 + $0xa18] sm:$0xf0] }
 0x161   :  { %3459 = vmatpush.bf16.msra.mxu3 %v4852_v26  ;;  %v5838_v26 = vld [vmem:[%s8598_s1] sm:$0x3]  ;;  %v5068_v28 = vor.u32 %v5661_v18, %v5065_v20  ;;  %v4980_v48 = vor.u32 %v5639_v24, %v4977_v35  ;;  %v4905_v18 = vld [vmem:[%s8597_s0 + $0x988] sm:$0xf0]  ;;  %v5637_v20 = vld [vmem:[%s8597_s0 + $0xa04] sm:$0xf] }
 0x162   :  { %3421 = vmatpush.bf16.msra.mxu0 %v4652_v8  ;;  %v3215_v61 = vpop.f32.mrf.mxu0  ;;  %v803_v27 = vperm.slane %v5838_v26, 1  ;;  %v5627_v8 = vld [vmem:[%s8597_s0 + $0x9b4] sm:$0xf]  ;;  %v5689_v24 = vld [vmem:[%s8597_s0 + $0xba4] sm:$0xf] }
 0x163   :  { %3434 = vmatpush.bf16.msra.mxu1 %v4716_v44  ;;  %v3216_v38 = vadd.f32 %v3215_v61, %v3203_v21  ;;  %v3228_v34 = vpop.f32.mrf.mxu1  ;;  %v5057_v44 = vld [vmem:[%s8597_s0 + $0xab8] sm:$0xf0]  ;;  %v4969_v21 = vld [vmem:[%s8597_s0 + $0xa08] sm:$0xf0]  ;;  %v5715_v26 = vld [vmem:[%s8597_s0 + $0xc74] sm:$0xf] }
 0x164   :  { %3447 = vmatpush.bf16.msra.mxu2 %v4780_v51  ;;  %v5132_v51 = vor.u32 %v5677_v23, %v5129_v25  ;;  %v3229_v42 = vadd.f32 %v3228_v34, %v803_v27  ;;  %v5033_v61 = vld [vmem:[%s8597_s0 + $0xa88] sm:$0xf0]  ;;  %v5217_v25 = vld [vmem:[%s8597_s0 + $0xbf8] sm:$0xf0] }
 0x165   :  { %3460 = vmatpush.bf16.msra.mxu3 %v4844_v54  ;;  %3422 = vmatmul.bf16.vlgmr.msra.gmra.mxu0 %v6851_v47  ;;  %v5148_v47 = vor.u32 %v5681_v16, %v5145_v39  ;;  %3544 = vst [vmem:[#allocation7] sm:$0xff] %v3216_v38  ;;  %v5625_v54 = vld [vmem:[%s8597_s0 + $0x9a4] sm:$0xf]  ;;  %v5113_v39 = vld [vmem:[%s8597_s0 + $0xb28] sm:$0xf0] }
 0x166   :  { %3466 = vmatpush.bf16.msrb.mxu0 %v4964_v52  ;;  %3435 = vmatmul.bf16.vlgmr.msra.gmra.mxu1 %v7044_v29  ;;  %v5629_v29 = vld [vmem:[%s8597_s0 + $0x9c4] sm:$0xf]  ;;  %v4932_v52 = vor.u32 %v5627_v8, %v4929_v31  ;;  %v5281_v27 = vld [vmem:[%s8597_s0 + $0xc78] sm:$0xf0]  ;;  %v5097_v8 = vld [vmem:[%s8597_s0 + $0xb08] sm:$0xf0]  ;;  %v4972_v31 = vor.u32 %v5637_v20, %v4969_v21 }
 0x167   :  { %3479 = vmatpush.bf16.msrb.mxu1 %v5028_v43  ;;  %3448 = vmatmul.bf16.vlgmr.msra.gmra.mxu2 %v7059_v63  ;;  %v4948_v63 = vor.u32 %v5631_v45, %v4945_v9  ;;  %v5675_v43 = vld [vmem:[%s8597_s0 + $0xb34] sm:$0xf]  ;;  %v5673_v16 = vld [vmem:[%s8597_s0 + $0xb24] sm:$0xf]  ;;  %v5052_v45 = vor.u32 %v5657_v19, %v5049_v6  ;;  %v5241_v35 = vld [vmem:[%s8597_s0 + $0xc28] sm:$0xf0] }
 0x168   :  { %3492 = vmatpush.bf16.msrb.mxu2 %v5092_v0  ;;  %3461 = vmatmul.bf16.vlgmr.msra.gmra.mxu3 %v7046_v57  ;;  %v4937_v57 = vld [vmem:[%s8597_s0 + $0x9c8] sm:$0xf0]  ;;  %v5060_v0 = vor.u32 %v5659_v53, %v5057_v44  ;;  %v5124_v11 = vor.u32 %v5675_v43, %v5121_v60  ;;  %v5623_v9 = vld [vmem:[%s8597_s0 + $0x994] sm:$0xf]  ;;  %v5116_v49 = vor.u32 %v5673_v16, %v5113_v39  ;;  %v5713_v43 = vld [vmem:[%s8597_s0 + $0xc64] sm:$0xf] }
 0x169   :  { %3505 = vmatpush.bf16.msrb.mxu3 %v5156_v33  ;;  %v4940_v22 = vor.u32 %v5629_v29, %v4937_v57  ;;  %v5105_v29 = vld [vmem:[%s8597_s0 + $0xb18] sm:$0xf0]  ;;  %v5621_v57 = vld [vmem:[%s8597_s0 + $0x984] sm:$0xf]  ;;  %v5284_v53 = vor.u32 %v5715_v26, %v5281_v27  ;;  %v5273_v60 = vld [vmem:[%s8597_s0 + $0xc68] sm:$0xf0] }
 0x16a   :  { %3467 = vmatpush.bf16.msrb.mxu0 %v4956_v7  ;;  %v3241_v33 = vpop.f32.mrf.mxu2  ;;  %v4924_v7 = vor.u32 %v5625_v54, %v4921_v2  ;;  %v5201_v54 = vld [vmem:[%s8597_s0 + $0xbd8] sm:$0xf0]  ;;  %v5711_v2 = vld [vmem:[%s8597_s0 + $0xc54] sm:$0xf]  ;;  %v5709_v19 = vld [vmem:[%s8597_s0 + $0xc44] sm:$0xf] }
 0x16b   :  { %3480 = vmatpush.bf16.msrb.mxu1 %v5020_v37  ;;  %v3242_v1 = vadd.f32 %v3241_v33, %v3229_v42  ;;  %v3217_v37 = vpop.f32.mrf.mxu0  ;;  %v3254_v12 = vpop.f32.mrf.mxu3  ;;  %v5691_v16 = vld [vmem:[%s8597_s0 + $0xbb4] sm:$0xf]  ;;  %v5185_v39 = vld [vmem:[%s8597_s0 + $0xbb8] sm:$0xf0] }
 0x16c   :  { %3493 = vmatpush.bf16.msrb.mxu2 %v5084_v41  ;;  %v4988_v41 = vor.u32 %v5641_v4, %v4985_v5  ;;  %v3230_v40 = vpop.f32.mrf.mxu1  ;;  %v5707_v37 = vld [vmem:[%s8597_s0 + $0xc34] sm:$0xf]  ;;  %v5233_v20 = vld [vmem:[%s8597_s0 + $0xc18] sm:$0xf0] }
 0x16d   :  { %3506 = vmatpush.bf16.msrb.mxu3 %v5148_v47  ;;  %v5655_v47 = vld [vmem:[%s8597_s0 + $0xa94] sm:$0xf]  ;;  %v8429_v13 = vadd.f32 %v3254_v12, %v3242_v1  ;;  %v5177_v12 = vld [vmem:[%s8597_s0 + $0xba8] sm:$0xf0]  ;;  %v5705_v40 = vld [vmem:[%s8597_s0 + $0xc24] sm:$0xf] }
 0x16e   :  { %3468 = vmatpush.bf16.msrb.mxu0 %v4948_v63  ;;  %v5041_v63 = vld [vmem:[%s8597_s0 + $0xa98] sm:$0xf0] }
 0x16f   :  { %3481 = vmatpush.bf16.msrb.mxu1 %v5012_v17  ;;  %v4916_v17 = vor.u32 %v5623_v9, %v4913_v10  ;;  %v5044_v14 = vor.u32 %v5655_v47, %v5041_v63  ;;  %v5188_v9 = vor.u32 %v5691_v16, %v5185_v39  ;;  %v5722_v16 = vld [vmem:[%s8599_s2 + $0x28] sm:$0xff] }
 0x170   :  { %3494 = vmatpush.bf16.msrb.mxu2 %v5076_v55  ;;  %v5671_v55 = vld [vmem:[%s8597_s0 + $0xb14] sm:$0xf] }
 0x171   :  { %3507 = vmatpush.bf16.msrb.mxu3 %v5140_v15  ;;  %v5653_v15 = vld [vmem:[%s8597_s0 + $0xa84] sm:$0xf]  ;;  %v5108_v23 = vor.u32 %v5671_v55, %v5105_v29  ;;  %v5687_v29 = vld [vmem:[%s8597_s0 + $0xb94] sm:$0xf] }
 0x172   :  { %3469 = vmatpush.bf16.msrb.mxu0 %v4940_v22  ;;  %v5699_v22 = vld [vmem:[%s8597_s0 + $0xbf4] sm:$0xf]  ;;  %v3243_v38 = vpop.f32.mrf.mxu2  ;;  %v5036_v32 = vor.u32 %v5653_v15, %v5033_v61  ;;  %v5685_v61 = vld [vmem:[%s8597_s0 + $0xb84] sm:$0xf] }
 0x173   :  { %3482 = vmatpush.bf16.msrb.mxu1 %v5004_v30  ;;  %v4908_v30 = vor.u32 %v5621_v57, %v4905_v18  ;;  %v3256_v34 = vpop.f32.mrf.mxu3  ;;  %v5220_v59 = vor.u32 %v5699_v22, %v5217_v25  ;;  %v5169_v57 = vld [vmem:[%s8597_s0 + $0xb98] sm:$0xf0]  ;;  %v5703_v18 = vld [vmem:[%s8597_s0 + $0xc14] sm:$0xf]  ;;  %v5161_v22 = vld [vmem:[%s8597_s0 + $0xb88] sm:$0xf0] }
 0x174   :  { %3495 = vmatpush.bf16.msrb.mxu2 %v5068_v28  ;;  %v5669_v28 = vld [vmem:[%s8597_s0 + $0xb04] sm:$0xf]  ;;  %v5172_v21 = vor.u32 %v5687_v29, %v5169_v57  ;;  %v5236_v15 = vor.u32 %v5703_v18, %v5233_v20  ;;  %v5225_v25 = vld [vmem:[%s8597_s0 + $0xc08] sm:$0xf0]  ;;  %v5164_v27 = vor.u32 %v5685_v61, %v5161_v22 }
 0x175   :  { %3508 = vmatpush.bf16.msrb.mxu3 %v5132_v51  ;;  %v5100_v44 = vor.u32 %v5669_v28, %v5097_v8  ;;  %v5697_v51 = vld [vmem:[%s8597_s0 + $0xbe4] sm:$0xf] }
 0x176   :  { %3470 = vmatpush.bf16.msrb.mxu0 %v4932_v52  ;;  %v5209_v52 = vld [vmem:[%s8597_s0 + $0xbe8] sm:$0xf0] }
 0x177   :  { %3483 = vmatpush.bf16.msrb.mxu1 %v4996_v62  ;;  %v5212_v42 = vor.u32 %v5697_v51, %v5209_v52  ;;  %v5276_v62 = vor.u32 %v5713_v43, %v5273_v60 }
 0x178   :  { %3496 = vmatpush.bf16.msrb.mxu2 %v5060_v0  ;;  %v5695_v0 = vld [vmem:[%s8597_s0 + $0xbd4] sm:$0xf] }
 0x179   :  { %3509 = vmatpush.bf16.msrb.mxu3 %v5124_v11  ;;  %v5204_v4 = vor.u32 %v5695_v0, %v5201_v54 }
 0x17a   :  { %3471 = vmatpush.bf16.msrb.mxu0 %v4924_v7 }
 0x17b   :  { %3484 = vmatpush.bf16.msrb.mxu1 %v4988_v41  ;;  %v5249_v41 = vld [vmem:[%s8597_s0 + $0xc38] sm:$0xf0] }
 0x17c   :  { %3497 = vmatpush.bf16.msrb.mxu2 %v5052_v45  ;;  %v5252_v10 = vor.u32 %v5707_v37, %v5249_v41  ;;  %v5720_v41 = vld [vmem:[%s8599_s2 + $0x18] sm:$0xff] }
 0x17d   :  { %3510 = vmatpush.bf16.msrb.mxu3 %v5116_v49  ;;  %v5180_v49 = vor.u32 %v5689_v24, %v5177_v12 }
 0x17e   :  { %3472 = vmatpush.bf16.msrb.mxu0 %v4916_v17  ;;  %v5244_v17 = vor.u32 %v5705_v40, %v5241_v35  ;;  %v5717_v40 = vld [vmem:[%s8599_s2] sm:$0xff] }
 0x17f   :  { %3485 = vmatpush.bf16.msrb.mxu1 %v4980_v48 }
 0x180   :  { %3498 = vmatpush.bf16.msrb.mxu2 %v5044_v14 }
 0x181   :  { %3511 = vmatpush.bf16.msrb.mxu3 %v5108_v23  ;;  %v5701_v23 = vld [vmem:[%s8597_s0 + $0xc04] sm:$0xf] }
 0x182   :  { %3473 = vmatpush.bf16.msrb.mxu0 %v4908_v30  ;;  %v3267_v6 = vpop.f32.mrf.mxu0  ;;  %v5228_v38 = vor.u32 %v5701_v23, %v5225_v25 }
 0x183   :  { %3486 = vmatpush.bf16.msrb.mxu1 %v4972_v31  ;;  %v3268_v33 = vadd.f32 %v3267_v6, %v8429_v13  ;;  %v3280_v1 = vpop.f32.mrf.mxu1  ;;  %v5723_v6 = vld [vmem:[%s8599_s2 + $0x30] sm:$0xff] }
 0x184   :  { %3499 = vmatpush.bf16.msrb.mxu2 %v5036_v32 }
 0x185   :  { %3512 = vmatpush.bf16.msrb.mxu3 %v5100_v44  ;;  %3474 = vmatmul.bf16.vlgmr.msrb.gmra.mxu0 %v7069_v3  ;;  %v5265_v3 = vld [vmem:[%s8597_s0 + $0xc58] sm:$0xf0]  ;;  %v3281_v45 = vadd.f32 %v3280_v1, %v3268_v33  ;;  %v5721_v1 = vld [vmem:[%s8599_s2 + $0x20] sm:$0xff] }
 0x186   :  { %3518 = vmatpush.bf16.msra.mxu0 %v5220_v59  ;;  %3487 = vmatmul.bf16.vlgmr.msrb.gmra.mxu1 %v7272_v46  ;;  %v5268_v5 = vor.u32 %v5711_v2, %v5265_v3  ;;  %v5193_v46 = vld [vmem:[%s8597_s0 + $0xbc8] sm:$0xf0] }
 0x187   :  { %3531 = vmatpush.bf16.msra.mxu1 %v5284_v53  ;;  %3500 = vmatmul.bf16.vlgmr.msrb.gmra.mxu2 %v7282_v56  ;;  %v5693_v56 = vld [vmem:[%s8597_s0 + $0xbc4] sm:$0xf] }
 0x188   :  { %3513 = vmatmul.bf16.vlgmr.msrb.gmra.mxu3 %v7274_v50  ;;  %v5257_v50 = vld [vmem:[%s8597_s0 + $0xc48] sm:$0xf0]  ;;  %v5196_v11 = vor.u32 %v5693_v56, %v5193_v46 }
 0x189   :  { %v5260_v7 = vor.u32 %v5709_v19, %v5257_v50  ;;  %v5724_v19 = vld [vmem:[%s8599_s2 + $0x38] sm:$0xff] }
 0x18a   :  { %3519 = vmatpush.bf16.msra.mxu0 %v5212_v42  ;;  %v3293_v47 = vpop.f32.mrf.mxu2  ;;  %v3269_v13 = vpop.f32.mrf.mxu0  ;;  %3615 = vmatpush.bf16.msra.mxu2 %v5724_v19 }
 0x18b   :  { %3532 = vmatpush.bf16.msra.mxu1 %v5276_v62  ;;  %v3294_v63 = vadd.f32 %v3293_v47, %v3281_v45  ;;  %v3306_v55 = vpop.f32.mrf.mxu3  ;;  %v3282_v48 = vpop.f32.mrf.mxu1  ;;  %v5719_v45 = vld [vmem:[%s8599_s2 + $0x10] sm:$0xff] }
 0x18d   :  { %v3307_v14 = vadd.f32 %v3306_v55, %v3294_v63 }
 0x18e   :  { %3520 = vmatpush.bf16.msra.mxu0 %v5204_v4  ;;  %3616 = vmatpush.bf16.msra.mxu2 %v5723_v6 }
 0x18f   :  { %3533 = vmatpush.bf16.msra.mxu1 %v5268_v5 }
 0x192   :  { %3521 = vmatpush.bf16.msra.mxu0 %v5196_v11  ;;  %v3295_v26 = vpop.f32.mrf.mxu2  ;;  %3617 = vmatpush.bf16.msra.mxu2 %v5722_v16 }
 0x193   :  { %3534 = vmatpush.bf16.msra.mxu1 %v5260_v7  ;;  %v3308_v30 = vpop.f32.mrf.mxu3 }
 0x196   :  { %3522 = vmatpush.bf16.msra.mxu0 %v5188_v9  ;;  %3618 = vmatpush.bf16.msra.mxu2 %v5721_v1  ;;  %v5718_v9 = vld [vmem:[%s8599_s2 + $0x8] sm:$0xff]  ;;  %s5891_s2 = smov [#allocation7]  }
 0x197   :  { %3535 = vmatpush.bf16.msra.mxu1 %v5252_v10  ;;  %s3634_s22 = sshll.u32 %s5891_s2, 4  ;;  %s3635_s22 = int_to_ptr.vmem [resolvable:$true] %s3634_s22 }
 0x198   :  { %3639 = dma.vmem_to_hbm [thread:$0]  %s3635_s22, 128, %s3637_s24, [#allocation8]  }
 0x19a   :  { %3523 = vmatpush.bf16.msra.mxu0 %v5180_v49  ;;  %3619 = vmatpush.bf16.msra.mxu2 %v5720_v41 }
 0x19b   :  { %3536 = vmatpush.bf16.msra.mxu1 %v5244_v17 }
 0x19e   :  { %3524 = vmatpush.bf16.msra.mxu0 %v5172_v21  ;;  %3620 = vmatpush.bf16.msra.mxu2 %v5719_v45 }
 0x19f   :  { %3537 = vmatpush.bf16.msra.mxu1 %v5236_v15 }
 0x1a2   :  { %3525 = vmatpush.bf16.msra.mxu0 %v5164_v27  ;;  %v3319_v28 = vpop.f32.mrf.mxu0  ;;  %3621 = vmatpush.bf16.msra.mxu2 %v5718_v9 }
 0x1a3   :  { %3538 = vmatpush.bf16.msra.mxu1 %v5228_v38  ;;  %v3320_v8 = vadd.f32 %v3319_v28, %v3307_v14  ;;  %v3332_v31 = vpop.f32.mrf.mxu1  ;;  %v5837_v28 = vld [vmem:[%s8600_s3] ss:$0 sm:$0xff] }
 0x1a5   :  { %3526 = vmatmul.bf16.vlgmr.msra.gmra.mxu0 %v7284_v58  ;;  %v3333_v32 = vadd.f32 %v3332_v31, %v3320_v8 }
 0x1a6   :  { %3539 = vmatmul.bf16.vlgmr.msra.gmra.mxu1 %v7479_v36  ;;  %3622 = vmatpush.bf16.msra.mxu2 %v5717_v40 }
 0x1aa   :  { %v3345_v34 = vpop.f32.mrf.mxu2  ;;  %v3321_v44 = vpop.f32.mrf.mxu0 }
 0x1ab   :  { %v3346_v59 = vadd.f32 %v3345_v34, %v3333_v32  ;;  %v3358_v53 = vpop.f32.mrf.mxu3  ;;  %v3334_v52 = vpop.f32.mrf.mxu1 }
 0x1ad   :  { %v3359_v51 = vadd.f32 %v3358_v53, %v3346_v59 }
 0x1b2   :  { %v3347_v43 = vpop.f32.mrf.mxu2 }
 0x1b3   :  { %v3360_v60 = vpop.f32.mrf.mxu3 }
 0x1c2   :  { %v3371_v42 = vpop.f32.mrf.mxu0 }
 0x1c3   :  { %v3372_v62 = vadd.f32 %v3371_v42, %v3359_v51  ;;  %v3384_v0 = vpop.f32.mrf.mxu1 }
 0x1c5   :  { %v3385_v54 = vadd.f32 %v3384_v0, %v3372_v62 }
 0x1ca   :  { %v3397_v2 = vpop.f32.mrf.mxu2  ;;  %v3373_v3 = vpop.f32.mrf.mxu0 }
 0x1cb   :  { %v3410_v58 = vpop.f32.mrf.mxu3  ;;  %v3386_v36 = vpop.f32.mrf.mxu1  ;;  %v3398_v24 = vadd.f32 %v3397_v2, %v3385_v54 }
 0x1cd   :  { %v3411_v35 = vadd.f32 %v3410_v58, %v3398_v24 }
 0x1d2   :  { %v3399_v4 = vpop.f32.mrf.mxu2 }
 0x1d3   :  { %v3412_v5 = vpop.f32.mrf.mxu3 }
 0x1e2   :  { %v3423_v56 = vpop.f32.mrf.mxu0 }
 0x1e3   :  { %v3436_v46 = vpop.f32.mrf.mxu1  ;;  %v3424_v47 = vadd.f32 %v3423_v56, %v3411_v35 }
 0x1e5   :  { %v3437_v55 = vadd.f32 %v3436_v46, %v3424_v47 }
 0x1ea   :  { %v3449_v50 = vpop.f32.mrf.mxu2  ;;  %v3425_v33 = vpop.f32.mrf.mxu0 }
 0x1eb   :  { %v3462_v11 = vpop.f32.mrf.mxu3  ;;  %v3438_v7 = vpop.f32.mrf.mxu1  ;;  %v3450_v29 = vadd.f32 %v3449_v50, %v3437_v55 }
 0x1ed   :  { %v3463_v48 = vadd.f32 %v3462_v11, %v3450_v29 }
 0x1f2   :  { %v3451_v39 = vpop.f32.mrf.mxu2 }
 0x1f3   :  { %v3464_v37 = vpop.f32.mrf.mxu3 }
 0x202   :  { %v3475_v10 = vpop.f32.mrf.mxu0 }
 0x203   :  { %v3488_v12 = vpop.f32.mrf.mxu1  ;;  %v3476_v18 = vadd.f32 %v3475_v10, %v3463_v48 }
 0x205   :  { %v3489_v20 = vadd.f32 %v3488_v12, %v3476_v18 }
 0x20a   :  { %v3501_v63 = vpop.f32.mrf.mxu2  ;;  %v3477_v13 = vpop.f32.mrf.mxu0 }
 0x20b   :  { %v3514_v49 = vpop.f32.mrf.mxu3  ;;  %v3490_v17 = vpop.f32.mrf.mxu1  ;;  %v3502_v21 = vadd.f32 %v3501_v63, %v3489_v20 }
 0x20d   :  { %v3515_v15 = vadd.f32 %v3514_v49, %v3502_v21 }
 0x212   :  { %v3503_v57 = vpop.f32.mrf.mxu2 }
 0x213   :  { %v3516_v14 = vpop.f32.mrf.mxu3 }
 0x222   :  { %v3527_v61 = vpop.f32.mrf.mxu0 }
 0x223   :  { %v3528_v22 = vadd.f32 %v3527_v61, %v3515_v15  ;;  %v3540_v23 = vpop.f32.mrf.mxu1 }
 0x225   :  { %v3541_v25 = vadd.f32 %v3540_v23, %v3528_v22 }
 0x227   :  { %v3545_v26 = vmax.f32 %v3541_v25, 0.0 }
 0x229   :  { %v3546_v27 = vpack.c.bf16 %v3545_v26, %v3545_v26 }
 0x22a   :  { %v3529_v38 = vpop.f32.mrf.mxu0 }
 0x22b   :  { %v3542_v30 = vpop.f32.mrf.mxu1  ;;  %3623 = vmatmul.bf16.vlgmr.msra.gmra.mxu2 %v3546_v27 }
 0x2ae   :  { %v3624_v8 = vpop.f32.mrf.mxu2 }
 0x2af   :  { %v3625_v31 = vadd.f32 %v5837_v28, %v3624_v8 }
 0x2b1   :  { %3628 = vst [vmem:[#allocation9] sm:$0xff] %v3625_v31 }
 0x2b2   :  { %3650 = dma.vmem_to_hbm [thread:$0]  %s3646_s28, 128, %s3648_s8, [#allocation10]  }
 0x2b6   :  { %v3626_v32 = vpop.f32.mrf.mxu2 }
 0x2b7   :  { %5887 = dma.done.wait [#allocation8], 128  }
 0x2b8   :  { %5888 = vsyncadd [#allocation8], 4294967168 }
 0x2b9   :  { %5889 = dma.done.wait [#allocation10], 128  }
 0x2ba   :  { %5890 = vsyncadd [#allocation10], 4294967168 }
 0x2bb   :  { %3659 = vsyncpa [#allocation8], 1 }
 0x2bc   :  { %3660 = vsyncpa [#allocation10], 1 }

</bundles_post_ra>
